<compile_context>
chip_gen: v6e
topology: v6e:2x2x1
jax: 0.10.0
libtpu: 0.0.40
codegen_flags: <defaults>
</compile_context>

<pallas_src>
import jax
import jax.numpy as jnp
from jax.experimental import pallas as pl
from jax.experimental.pallas import tpu as pltpu


K1_PAD = 32     # conv1 contraction dim: 1*5*5 = 25  -> 32
K2_PAD = 160    # conv2 contraction dim: 6*5*5 = 150 -> 160
D_PAD = 768     # fc1 in features: 14*7*7 = 686 -> 768
H1_PAD = 128    # fc1 out: 120 -> 128
H2_PAD = 128    # fc2 out: 84 -> 128
N_OUT = 10
CONV_BT = 64    # images per conv grid step (keeps double-buffered blocks < ~10 MB)


# ----------------------------------------------------------------------------
# Kernel 1: fused Conv2d(k=5,s=1,p=2) + bias + ReLU + MaxPool2d(2), batch-blocked
# ----------------------------------------------------------------------------
def _conv_relu_pool_kernel(p_ref, w_ref, b_ref, o_ref):
    # p_ref: (4, R, Kp) bf16 -- im2col patches for Bt images, grouped by 2x2 offset
    # w_ref: (Kp, Cout)  bf16 -- VMEM-resident weights
    # b_ref: (1, Cout)   f32
    # o_ref: (R, Cout)   bf16 -- pooled output rows in (b, ho, wo) raster order
    w = w_ref[...]
    acc = jnp.dot(p_ref[0], w, preferred_element_type=jnp.float32)
    for k in range(1, 4):  # static unroll over the remaining pooling-window offsets
        acc = jnp.maximum(acc, jnp.dot(p_ref[k], w, preferred_element_type=jnp.float32))
    # relu(max(conv)+b) == maxpool(relu(conv+b)); bias added once, after the max.
    o_ref[...] = jnp.maximum(acc + b_ref[...], 0.0).astype(o_ref.dtype)


def conv_relu_pool(p4, wmat, bias2d, rows_tile):
    """p4: (4, B*M, Kp) bf16; wmat: (Kp, Cout) bf16; bias2d: (1, Cout) f32."""
    _, r_total, kp = p4.shape
    cout = wmat.shape[1]
    n_tiles = r_total // rows_tile
    flops = 2 * 4 * r_total * kp * cout
    bytes_acc = p4.size * 2 + wmat.size * 2 + bias2d.size * 4 + r_total * cout * 2
    return pl.pallas_call(
        _conv_relu_pool_kernel,
        out_shape=jax.ShapeDtypeStruct((r_total, cout), jnp.bfloat16),
        grid=(n_tiles,),
        in_specs=[
            pl.BlockSpec((4, rows_tile, kp), lambda i: (0, i, 0)),
            pl.BlockSpec((kp, cout), lambda i: (0, 0)),
            pl.BlockSpec((1, cout), lambda i: (0, 0)),
        ],
        out_specs=pl.BlockSpec((rows_tile, cout), lambda i: (i, 0)),
        compiler_params=pltpu.CompilerParams(dimension_semantics=("parallel",)),
        cost_estimate=pl.CostEstimate(flops=int(flops), transcendentals=0,
                                      bytes_accessed=int(bytes_acc)),
    )(p4, wmat, bias2d)


# ----------------------------------------------------------------------------
# Kernel 2: fused fc1 + ReLU + fc2 + ReLU + fc3  (all weights VMEM-resident)
# ----------------------------------------------------------------------------
def _fc3_kernel(x_ref, w1_ref, b1_ref, w2_ref, b2_ref, w3_ref, b3_ref, o_ref):
    h = jnp.dot(x_ref[...], w1_ref[...], preferred_element_type=jnp.float32) + b1_ref[...]
    h = jnp.maximum(h, 0.0)
    h = jnp.dot(h.astype(jnp.bfloat16), w2_ref[...],
                preferred_element_type=jnp.float32) + b2_ref[...]
    h = jnp.maximum(h, 0.0)
    out = jnp.dot(h.astype(jnp.bfloat16), w3_ref[...],
                  preferred_element_type=jnp.float32) + b3_ref[...]
    o_ref[...] = out.astype(o_ref.dtype)


def fc3_fused(x, w1, b1, w2, b2, w3, b3, bm):
    """x: (B, D) bf16 (D padded); weights bf16 (in, out) zero-padded; biases f32 (1, out)."""
    b, d = x.shape
    h1, h2, no = w1.shape[1], w2.shape[1], w3.shape[1]
    flops = 2 * b * (d * h1 + h1 * h2 + h2 * no)
    bytes_acc = (x.size * 2 + (w1.size + w2.size + w3.size) * 2
                 + (b1.size + b2.size + b3.size) * 4 + b * no * 4)
    return pl.pallas_call(
        _fc3_kernel,
        out_shape=jax.ShapeDtypeStruct((b, no), jnp.float32),
        grid=(b // bm,),
        in_specs=[
            pl.BlockSpec((bm, d), lambda i: (i, 0)),
            pl.BlockSpec((d, h1), lambda i: (0, 0)),
            pl.BlockSpec((1, h1), lambda i: (0, 0)),
            pl.BlockSpec((h1, h2), lambda i: (0, 0)),
            pl.BlockSpec((1, h2), lambda i: (0, 0)),
            pl.BlockSpec((h2, no), lambda i: (0, 0)),
            pl.BlockSpec((1, no), lambda i: (0, 0)),
        ],
        out_specs=pl.BlockSpec((bm, no), lambda i: (i, 0)),
        compiler_params=pltpu.CompilerParams(dimension_semantics=("parallel",)),
        cost_estimate=pl.CostEstimate(flops=int(flops), transcendentals=0,
                                      bytes_accessed=int(bytes_acc)),
    )(x, w1, b1, w2, b2, w3, b3)


# ----------------------------------------------------------------------------
# XLA glue: im2col ('same' padding, stride 1) regrouped by 2x2 pooling offset.
# Output layout (4, B*Ho*Wo, Kp): rows ordered (b, ho, wo), features (kh, kw, c).
# ----------------------------------------------------------------------------
def im2col_pool4(x, ksize=5, pad=2, k_pad=None):
    B, H, W, C = x.shape
    Ho, Wo = H // 2, W // 2
    K = ksize * ksize * C
    xp = jnp.pad(x, ((0, 0), (pad, pad), (pad, pad), (0, 0)))
    cols = [xp[:, kh:kh + H, kw:kw + W, :]
            for kh in range(ksize) for kw in range(ksize)]
    patches = jnp.concatenate(cols, axis=-1)                 # (B, H, W, K)
    if k_pad is not None and k_pad > K:
        patches = jnp.pad(patches, ((0, 0), (0, 0), (0, 0), (0, k_pad - K)))
        K = k_pad
    p = patches.reshape(B, Ho, 2, Wo, 2, K)
    p = jnp.transpose(p, (2, 4, 0, 1, 3, 5))                 # (dh, dw, B, Ho, Wo, K)
    return p.reshape(4, B * Ho * Wo, K).astype(jnp.bfloat16)


# ----------------------------------------------------------------------------
# Parameters: synthetic values in PyTorch layouts, converted once to kernel layouts.
# ----------------------------------------------------------------------------
def init_torch_like_params(key):
    ks = jax.random.split(key, 10)
    s = 0.05
    return {
        "conv1_w": jax.random.normal(ks[0], (6, 1, 5, 5), jnp.float32) * s,
        "conv1_b": jax.random.normal(ks[1], (6,), jnp.float32) * s,
        "conv2_w": jax.random.normal(ks[2], (14, 6, 5, 5), jnp.float32) * s,
        "conv2_b": jax.random.normal(ks[3], (14,), jnp.float32) * s,
        "fc1_w": jax.random.normal(ks[4], (120, 14 * 7 * 7), jnp.float32) * s,
        "fc1_b": jax.random.normal(ks[5], (120,), jnp.float32) * s,
        "fc2_w": jax.random.normal(ks[6], (84, 120), jnp.float32) * s,
        "fc2_b": jax.random.normal(ks[7], (84,), jnp.float32) * s,
        "fc3_w": jax.random.normal(ks[8], (10, 84), jnp.float32) * s,
        "fc3_b": jax.random.normal(ks[9], (10,), jnp.float32) * s,
    }


def _conv_w_to_mat(w, k_pad):
    # (Cout, Cin, kh, kw) -> (kh, kw, Cin, Cout) -> (K, Cout), zero-pad K, bf16.
    cout, cin, kh, kw = w.shape
    m = jnp.transpose(w, (2, 3, 1, 0)).reshape(kh * kw * cin, cout)
    if k_pad > m.shape[0]:
        m = jnp.pad(m, ((0, k_pad - m.shape[0]), (0, 0)))
    return m.astype(jnp.bfloat16)


def _pad2(m, rows, cols):
    return jnp.pad(m, ((0, rows - m.shape[0]), (0, cols - m.shape[1])))


def prepare_params(raw):
    # fc1_w rows index features in torch (c, h, w) order; the kernel flattens the
    # NHWC conv2 output in (h, w, c) order, so permute the weight ONCE here.
    fc1 = raw["fc1_w"].reshape(120, 14, 7, 7)                        # (out, c, h, w)
    fc1 = jnp.transpose(fc1, (2, 3, 1, 0)).reshape(14 * 7 * 7, 120)  # (686, 120)
    # Zero-pad fc dims to lane multiples; pads are zero on both sides of each
    # matmul so the results are bit-identical to the unpadded computation.
    return {
        "c1_w": _conv_w_to_mat(raw["conv1_w"], K1_PAD),
        "c1_b": raw["conv1_b"].reshape(1, -1).astype(jnp.float32),
        "c2_w": _conv_w_to_mat(raw["conv2_w"], K2_PAD),
        "c2_b": raw["conv2_b"].reshape(1, -1).astype(jnp.float32),
        "fc1_w": _pad2(fc1, D_PAD, H1_PAD).astype(jnp.bfloat16),
        "fc1_b": jnp.pad(raw["fc1_b"], (0, H1_PAD - 120)).reshape(1, -1).astype(jnp.float32),
        "fc2_w": _pad2(raw["fc2_w"].T, H1_PAD, H2_PAD).astype(jnp.bfloat16),
        "fc2_b": jnp.pad(raw["fc2_b"], (0, H2_PAD - 84)).reshape(1, -1).astype(jnp.float32),
        "fc3_w": _pad2(raw["fc3_w"].T, H2_PAD, N_OUT).astype(jnp.bfloat16),
        "fc3_b": raw["fc3_b"].reshape(1, -1).astype(jnp.float32),
    }


# ----------------------------------------------------------------------------
# Forward pass (mirrors Net.forward)
# ----------------------------------------------------------------------------
@jax.jit
def net_forward(params, x):
    # x: (B, 1, 28, 28) NCHW (torch layout) -> NHWC once; channels-last thereafter.
    B = x.shape[0]
    bt = B if B <= CONV_BT else CONV_BT              # images per conv grid step
    B_pad = ((B + bt - 1) // bt) * bt                # pad batch to a whole tile

    xn = jnp.transpose(x, (0, 2, 3, 1))              # (B, 28, 28, 1)
    if B_pad != B:
        xn = jnp.pad(xn, ((0, B_pad - B), (0, 0), (0, 0), (0, 0)))

    p1 = im2col_pool4(xn, 5, 2, K1_PAD)                                # (4, B*196, 32)
    y1 = conv_relu_pool(p1, params["c1_w"], params["c1_b"], bt * 196)  # (B*196, 6) bf16
    y1 = y1.reshape(B_pad, 14, 14, 6)                                  # NHWC

    p2 = im2col_pool4(y1, 5, 2, K2_PAD)                                # (4, B*49, 160)
    y2 = conv_relu_pool(p2, params["c2_w"], params["c2_b"], bt * 49)   # (B*49, 14) bf16

    feat = y2.reshape(B_pad, 14 * 7 * 7)                               # (h, w, c) order
    feat = jnp.pad(feat, ((0, 0), (0, D_PAD - 14 * 7 * 7)))            # (B, 768) bf16

    # fc M-tile: whole (padded) batch per step, up to 1024 rows.
    fc_bm = bt
    while fc_bm * 2 <= min(B_pad, 1024) and B_pad % (fc_bm * 2) == 0:
        fc_bm *= 2

    out = fc3_fused(feat, params["fc1_w"], params["fc1_b"],
                    params["fc2_w"], params["fc2_b"],
                    params["fc3_w"], params["fc3_b"], fc_bm)           # (B_pad, 10) f32
    return out[:B]


if __name__ == "__main__":
    key = jax.random.PRNGKey(0)
    k_in, k_par = jax.random.split(key)
    # Input implied by 14*7*7 in fc1: 28x28 single-channel images; batch=2.
    x = jax.random.normal(k_in, (2, 1, 28, 28), jnp.float32)
    params = prepare_params(init_torch_like_params(k_par))

    out = net_forward(params, x)
    out = jax.block_until_ready(out)
    assert out.shape == (2, 10), out.shape
    print("KERNEL_OK")
</pallas_src>

<mosaic_0001>
module attributes {stable_mosaic.version = 11 : i64} {
  func.func @_conv_relu_pool_kernel(%arg0: i32, %arg1: memref<4x392x32xbf16, #tpu.memory_space<vmem>>, %arg2: memref<32x6xbf16, #tpu.memory_space<vmem>>, %arg3: memref<1x6xf32, #tpu.memory_space<vmem>>, %arg4: memref<392x6xbf16, #tpu.memory_space<vmem>>) attributes {dimension_semantics = [#tpu.dimension_semantics<parallel>], iteration_bounds = array<i64: 1>, scalar_prefetch = 0 : i64, scratch_operands = 0 : i64, tpu.core_type = #tpu.core_type<tc>, window_params = [{transform_indices = @transform_0, window_bounds = array<i64: 4, 392, 32>}, {pipeline_mode = #tpu.pipeline_mode<synchronous>, transform_indices = @transform_1, window_bounds = array<i64: 32, 6>}, {pipeline_mode = #tpu.pipeline_mode<synchronous>, transform_indices = @transform_2, window_bounds = array<i64: 1, 6>}, {transform_indices = @transform_3, window_bounds = array<i64: 392, 6>}]} {
    %c0 = arith.constant 0 : index
    %c0_0 = arith.constant 0 : index
    %0 = vector.load %arg2[%c0, %c0_0] : memref<32x6xbf16, #tpu.memory_space<vmem>>, vector<32x6xbf16>
    %c0_1 = arith.constant 0 : index
    %c0_2 = arith.constant 0 : index
    %c0_3 = arith.constant 0 : index
    %1 = vector.load %arg1[%c0_1, %c0_2, %c0_3] : memref<4x392x32xbf16, #tpu.memory_space<vmem>>, vector<1x392x32xbf16>
    %2 = vector.shape_cast %1 : vector<1x392x32xbf16> to vector<392x32xbf16>
    %cst = arith.constant dense<0.000000e+00> : vector<392x6xf32>
    %3 = tpu.matmul %2, %0, %cst {dimension_numbers = #tpu.dot_dimension_numbers<[1], [0], [0], [1], [0, 0, 1, 1], [], []>} : vector<392x32xbf16>, vector<32x6xbf16>, vector<392x6xf32> -> vector<392x6xf32>
    %c1 = arith.constant 1 : index
    %c0_4 = arith.constant 0 : index
    %c0_5 = arith.constant 0 : index
    %4 = vector.load %arg1[%c1, %c0_4, %c0_5] : memref<4x392x32xbf16, #tpu.memory_space<vmem>>, vector<1x392x32xbf16>
    %5 = vector.shape_cast %4 : vector<1x392x32xbf16> to vector<392x32xbf16>
    %cst_6 = arith.constant dense<0.000000e+00> : vector<392x6xf32>
    %6 = tpu.matmul %5, %0, %cst_6 {dimension_numbers = #tpu.dot_dimension_numbers<[1], [0], [0], [1], [0, 0, 1, 1], [], []>} : vector<392x32xbf16>, vector<32x6xbf16>, vector<392x6xf32> -> vector<392x6xf32>
    %7 = arith.maximumf %3, %6 : vector<392x6xf32>
    %c2 = arith.constant 2 : index
    %c0_7 = arith.constant 0 : index
    %c0_8 = arith.constant 0 : index
    %8 = vector.load %arg1[%c2, %c0_7, %c0_8] : memref<4x392x32xbf16, #tpu.memory_space<vmem>>, vector<1x392x32xbf16>
    %9 = vector.shape_cast %8 : vector<1x392x32xbf16> to vector<392x32xbf16>
    %cst_9 = arith.constant dense<0.000000e+00> : vector<392x6xf32>
    %10 = tpu.matmul %9, %0, %cst_9 {dimension_numbers = #tpu.dot_dimension_numbers<[1], [0], [0], [1], [0, 0, 1, 1], [], []>} : vector<392x32xbf16>, vector<32x6xbf16>, vector<392x6xf32> -> vector<392x6xf32>
    %11 = arith.maximumf %7, %10 : vector<392x6xf32>
    %c3 = arith.constant 3 : index
    %c0_10 = arith.constant 0 : index
    %c0_11 = arith.constant 0 : index
    %12 = vector.load %arg1[%c3, %c0_10, %c0_11] : memref<4x392x32xbf16, #tpu.memory_space<vmem>>, vector<1x392x32xbf16>
    %13 = vector.shape_cast %12 : vector<1x392x32xbf16> to vector<392x32xbf16>
    %cst_12 = arith.constant dense<0.000000e+00> : vector<392x6xf32>
    %14 = tpu.matmul %13, %0, %cst_12 {dimension_numbers = #tpu.dot_dimension_numbers<[1], [0], [0], [1], [0, 0, 1, 1], [], []>} : vector<392x32xbf16>, vector<32x6xbf16>, vector<392x6xf32> -> vector<392x6xf32>
    %15 = arith.maximumf %11, %14 : vector<392x6xf32>
    %c0_13 = arith.constant 0 : index
    %c0_14 = arith.constant 0 : index
    %16 = vector.load %arg3[%c0_13, %c0_14] : memref<1x6xf32, #tpu.memory_space<vmem>>, vector<1x6xf32>
    %17 = vector.broadcast %16 : vector<1x6xf32> to vector<392x6xf32>
    %18 = arith.addf %15, %17 : vector<392x6xf32>
    %cst_15 = arith.constant 0.000000e+00 : f32
    %19 = vector.broadcast %cst_15 : f32 to vector<392x6xf32>
    %20 = arith.maximumf %18, %19 : vector<392x6xf32>
    %21 = arith.truncf %20 : vector<392x6xf32> to vector<392x6xbf16>
    %c0_16 = arith.constant 0 : index
    %c0_17 = arith.constant 0 : index
    %22 = vector.load %arg4[%c0_16, %c0_17] : memref<392x6xbf16, #tpu.memory_space<vmem>>, vector<392x6xbf16>
    tpu.vector_store %arg4[%c0_16, %c0_17], %21 {strides = array<i32>} : memref<392x6xbf16, #tpu.memory_space<vmem>>, vector<392x6xbf16>,
    return
  }
  func.func @transform_0(%arg0: i32) -> (i32, i32, i32) {
    %c0_i32 = arith.constant 0 : i32
    %c0_i32_0 = arith.constant 0 : i32
    %c0_i32_1 = arith.constant 0 : i32
    return %c0_i32, %arg0, %c0_i32_0 : i32, i32, i32
  }
  func.func @transform_1(%arg0: i32) -> (i32, i32) {
    %c0_i32 = arith.constant 0 : i32
    %c0_i32_0 = arith.constant 0 : i32
    %c0_i32_1 = arith.constant 0 : i32
    return %c0_i32, %c0_i32_0 : i32, i32
  }
  func.func @transform_2(%arg0: i32) -> (i32, i32) {
    %c0_i32 = arith.constant 0 : i32
    %c0_i32_0 = arith.constant 0 : i32
    %c0_i32_1 = arith.constant 0 : i32
    return %c0_i32, %c0_i32_0 : i32, i32
  }
  func.func @transform_3(%arg0: i32) -> (i32, i32) {
    %c0_i32 = arith.constant 0 : i32
    %c0_i32_0 = arith.constant 0 : i32
    return %arg0, %c0_i32 : i32, i32
  }
}

module attributes {stable_mosaic.version = 11 : i64} {
  func.func @_conv_relu_pool_kernel(%arg0: i32, %arg1: memref<4x98x160xbf16, #tpu.memory_space<vmem>>, %arg2: memref<160x14xbf16, #tpu.memory_space<vmem>>, %arg3: memref<1x14xf32, #tpu.memory_space<vmem>>, %arg4: memref<98x14xbf16, #tpu.memory_space<vmem>>) attributes {dimension_semantics = [#tpu.dimension_semantics<parallel>], iteration_bounds = array<i64: 1>, scalar_prefetch = 0 : i64, scratch_operands = 0 : i64, tpu.core_type = #tpu.core_type<tc>, window_params = [{transform_indices = @transform_0, window_bounds = array<i64: 4, 98, 160>}, {pipeline_mode = #tpu.pipeline_mode<synchronous>, transform_indices = @transform_1, window_bounds = array<i64: 160, 14>}, {pipeline_mode = #tpu.pipeline_mode<synchronous>, transform_indices = @transform_2, window_bounds = array<i64: 1, 14>}, {transform_indices = @transform_3, window_bounds = array<i64: 98, 14>}]} {
    %c0 = arith.constant 0 : index
    %c0_0 = arith.constant 0 : index
    %0 = vector.load %arg2[%c0, %c0_0] : memref<160x14xbf16, #tpu.memory_space<vmem>>, vector<160x14xbf16>
    %c0_1 = arith.constant 0 : index
    %c0_2 = arith.constant 0 : index
    %c0_3 = arith.constant 0 : index
    %1 = vector.load %arg1[%c0_1, %c0_2, %c0_3] : memref<4x98x160xbf16, #tpu.memory_space<vmem>>, vector<1x98x160xbf16>
    %2 = vector.shape_cast %1 : vector<1x98x160xbf16> to vector<98x160xbf16>
    %cst = arith.constant dense<0.000000e+00> : vector<98x14xf32>
    %3 = tpu.matmul %2, %0, %cst {dimension_numbers = #tpu.dot_dimension_numbers<[1], [0], [0], [1], [0, 0, 1, 1], [], []>} : vector<98x160xbf16>, vector<160x14xbf16>, vector<98x14xf32> -> vector<98x14xf32>
    %c1 = arith.constant 1 : index
    %c0_4 = arith.constant 0 : index
    %c0_5 = arith.constant 0 : index
    %4 = vector.load %arg1[%c1, %c0_4, %c0_5] : memref<4x98x160xbf16, #tpu.memory_space<vmem>>, vector<1x98x160xbf16>
    %5 = vector.shape_cast %4 : vector<1x98x160xbf16> to vector<98x160xbf16>
    %cst_6 = arith.constant dense<0.000000e+00> : vector<98x14xf32>
    %6 = tpu.matmul %5, %0, %cst_6 {dimension_numbers = #tpu.dot_dimension_numbers<[1], [0], [0], [1], [0, 0, 1, 1], [], []>} : vector<98x160xbf16>, vector<160x14xbf16>, vector<98x14xf32> -> vector<98x14xf32>
    %7 = arith.maximumf %3, %6 : vector<98x14xf32>
    %c2 = arith.constant 2 : index
    %c0_7 = arith.constant 0 : index
    %c0_8 = arith.constant 0 : index
    %8 = vector.load %arg1[%c2, %c0_7, %c0_8] : memref<4x98x160xbf16, #tpu.memory_space<vmem>>, vector<1x98x160xbf16>
    %9 = vector.shape_cast %8 : vector<1x98x160xbf16> to vector<98x160xbf16>
    %cst_9 = arith.constant dense<0.000000e+00> : vector<98x14xf32>
    %10 = tpu.matmul %9, %0, %cst_9 {dimension_numbers = #tpu.dot_dimension_numbers<[1], [0], [0], [1], [0, 0, 1, 1], [], []>} : vector<98x160xbf16>, vector<160x14xbf16>, vector<98x14xf32> -> vector<98x14xf32>
    %11 = arith.maximumf %7, %10 : vector<98x14xf32>
    %c3 = arith.constant 3 : index
    %c0_10 = arith.constant 0 : index
    %c0_11 = arith.constant 0 : index
    %12 = vector.load %arg1[%c3, %c0_10, %c0_11] : memref<4x98x160xbf16, #tpu.memory_space<vmem>>, vector<1x98x160xbf16>
    %13 = vector.shape_cast %12 : vector<1x98x160xbf16> to vector<98x160xbf16>
    %cst_12 = arith.constant dense<0.000000e+00> : vector<98x14xf32>
    %14 = tpu.matmul %13, %0, %cst_12 {dimension_numbers = #tpu.dot_dimension_numbers<[1], [0], [0], [1], [0, 0, 1, 1], [], []>} : vector<98x160xbf16>, vector<160x14xbf16>, vector<98x14xf32> -> vector<98x14xf32>
    %15 = arith.maximumf %11, %14 : vector<98x14xf32>
    %c0_13 = arith.constant 0 : index
    %c0_14 = arith.constant 0 : index
    %16 = vector.load %arg3[%c0_13, %c0_14] : memref<1x14xf32, #tpu.memory_space<vmem>>, vector<1x14xf32>
    %17 = vector.broadcast %16 : vector<1x14xf32> to vector<98x14xf32>
    %18 = arith.addf %15, %17 : vector<98x14xf32>
    %cst_15 = arith.constant 0.000000e+00 : f32
    %19 = vector.broadcast %cst_15 : f32 to vector<98x14xf32>
    %20 = arith.maximumf %18, %19 : vector<98x14xf32>
    %21 = arith.truncf %20 : vector<98x14xf32> to vector<98x14xbf16>
    %c0_16 = arith.constant 0 : index
    %c0_17 = arith.constant 0 : index
    %22 = vector.load %arg4[%c0_16, %c0_17] : memref<98x14xbf16, #tpu.memory_space<vmem>>, vector<98x14xbf16>
    tpu.vector_store %arg4[%c0_16, %c0_17], %21 {strides = array<i32>} : memref<98x14xbf16, #tpu.memory_space<vmem>>, vector<98x14xbf16>,
    return
  }
  func.func @transform_0(%arg0: i32) -> (i32, i32, i32) {
    %c0_i32 = arith.constant 0 : i32
    %c0_i32_0 = arith.constant 0 : i32
    %c0_i32_1 = arith.constant 0 : i32
    return %c0_i32, %arg0, %c0_i32_0 : i32, i32, i32
  }
  func.func @transform_1(%arg0: i32) -> (i32, i32) {
    %c0_i32 = arith.constant 0 : i32
    %c0_i32_0 = arith.constant 0 : i32
    %c0_i32_1 = arith.constant 0 : i32
    return %c0_i32, %c0_i32_0 : i32, i32
  }
  func.func @transform_2(%arg0: i32) -> (i32, i32) {
    %c0_i32 = arith.constant 0 : i32
    %c0_i32_0 = arith.constant 0 : i32
    %c0_i32_1 = arith.constant 0 : i32
    return %c0_i32, %c0_i32_0 : i32, i32
  }
  func.func @transform_3(%arg0: i32) -> (i32, i32) {
    %c0_i32 = arith.constant 0 : i32
    %c0_i32_0 = arith.constant 0 : i32
    return %arg0, %c0_i32 : i32, i32
  }
}

module attributes {stable_mosaic.version = 11 : i64} {
  func.func @_fc3_kernel(%arg0: i32, %arg1: memref<2x768xbf16, #tpu.memory_space<vmem>>, %arg2: memref<768x128xbf16, #tpu.memory_space<vmem>>, %arg3: memref<1x128xf32, #tpu.memory_space<vmem>>, %arg4: memref<128x128xbf16, #tpu.memory_space<vmem>>, %arg5: memref<1x128xf32, #tpu.memory_space<vmem>>, %arg6: memref<128x10xbf16, #tpu.memory_space<vmem>>, %arg7: memref<1x10xf32, #tpu.memory_space<vmem>>, %arg8: memref<2x10xf32, #tpu.memory_space<vmem>>) attributes {dimension_semantics = [#tpu.dimension_semantics<parallel>], iteration_bounds = array<i64: 1>, scalar_prefetch = 0 : i64, scratch_operands = 0 : i64, tpu.core_type = #tpu.core_type<tc>, window_params = [{transform_indices = @transform_0, window_bounds = array<i64: 2, 768>}, {pipeline_mode = #tpu.pipeline_mode<synchronous>, transform_indices = @transform_1, window_bounds = array<i64: 768, 128>}, {pipeline_mode = #tpu.pipeline_mode<synchronous>, transform_indices = @transform_2, window_bounds = array<i64: 1, 128>}, {pipeline_mode = #tpu.pipeline_mode<synchronous>, transform_indices = @transform_3, window_bounds = array<i64: 128, 128>}, {pipeline_mode = #tpu.pipeline_mode<synchronous>, transform_indices = @transform_4, window_bounds = array<i64: 1, 128>}, {pipeline_mode = #tpu.pipeline_mode<synchronous>, transform_indices = @transform_5, window_bounds = array<i64: 128, 10>}, {pipeline_mode = #tpu.pipeline_mode<synchronous>, transform_indices = @transform_6, window_bounds = array<i64: 1, 10>}, {transform_indices = @transform_7, window_bounds = array<i64: 2, 10>}]} {
    %c0 = arith.constant 0 : index
    %c0_0 = arith.constant 0 : index
    %0 = vector.load %arg1[%c0, %c0_0] : memref<2x768xbf16, #tpu.memory_space<vmem>>, vector<2x768xbf16>
    %c0_1 = arith.constant 0 : index
    %c0_2 = arith.constant 0 : index
    %1 = vector.load %arg2[%c0_1, %c0_2] : memref<768x128xbf16, #tpu.memory_space<vmem>>, vector<768x128xbf16>
    %cst = arith.constant dense<0.000000e+00> : vector<2x128xf32>
    %2 = tpu.matmul %0, %1, %cst {dimension_numbers = #tpu.dot_dimension_numbers<[1], [0], [0], [1], [0, 0, 1, 1], [], []>} : vector<2x768xbf16>, vector<768x128xbf16>, vector<2x128xf32> -> vector<2x128xf32>
    %c0_3 = arith.constant 0 : index
    %c0_4 = arith.constant 0 : index
    %3 = vector.load %arg3[%c0_3, %c0_4] : memref<1x128xf32, #tpu.memory_space<vmem>>, vector<1x128xf32>
    %4 = vector.broadcast %3 : vector<1x128xf32> to vector<2x128xf32>
    %5 = arith.addf %2, %4 : vector<2x128xf32>
    %cst_5 = arith.constant 0.000000e+00 : f32
    %6 = vector.broadcast %cst_5 : f32 to vector<2x128xf32>
    %7 = arith.maximumf %5, %6 : vector<2x128xf32>
    %8 = arith.truncf %7 : vector<2x128xf32> to vector<2x128xbf16>
    %c0_6 = arith.constant 0 : index
    %c0_7 = arith.constant 0 : index
    %9 = vector.load %arg4[%c0_6, %c0_7] : memref<128x128xbf16, #tpu.memory_space<vmem>>, vector<128x128xbf16>
    %cst_8 = arith.constant dense<0.000000e+00> : vector<2x128xf32>
    %10 = tpu.matmul %8, %9, %cst_8 {dimension_numbers = #tpu.dot_dimension_numbers<[1], [0], [0], [1], [0, 0, 1, 1], [], []>} : vector<2x128xbf16>, vector<128x128xbf16>, vector<2x128xf32> -> vector<2x128xf32>
    %c0_9 = arith.constant 0 : index
    %c0_10 = arith.constant 0 : index
    %11 = vector.load %arg5[%c0_9, %c0_10] : memref<1x128xf32, #tpu.memory_space<vmem>>, vector<1x128xf32>
    %12 = vector.broadcast %11 : vector<1x128xf32> to vector<2x128xf32>
    %13 = arith.addf %10, %12 : vector<2x128xf32>
    %cst_11 = arith.constant 0.000000e+00 : f32
    %14 = vector.broadcast %cst_11 : f32 to vector<2x128xf32>
    %15 = arith.maximumf %13, %14 : vector<2x128xf32>
    %16 = arith.truncf %15 : vector<2x128xf32> to vector<2x128xbf16>
    %c0_12 = arith.constant 0 : index
    %c0_13 = arith.constant 0 : index
    %17 = vector.load %arg6[%c0_12, %c0_13] : memref<128x10xbf16, #tpu.memory_space<vmem>>, vector<128x10xbf16>
    %cst_14 = arith.constant dense<0.000000e+00> : vector<2x10xf32>
    %18 = tpu.matmul %16, %17, %cst_14 {dimension_numbers = #tpu.dot_dimension_numbers<[1], [0], [0], [1], [0, 0, 1, 1], [], []>} : vector<2x128xbf16>, vector<128x10xbf16>, vector<2x10xf32> -> vector<2x10xf32>
    %c0_15 = arith.constant 0 : index
    %c0_16 = arith.constant 0 : index
    %19 = vector.load %arg7[%c0_15, %c0_16] : memref<1x10xf32, #tpu.memory_space<vmem>>, vector<1x10xf32>
    %20 = vector.broadcast %19 : vector<1x10xf32> to vector<2x10xf32>
    %21 = arith.addf %18, %20 : vector<2x10xf32>
    %c0_17 = arith.constant 0 : index
    %c0_18 = arith.constant 0 : index
    %22 = vector.load %arg8[%c0_17, %c0_18] : memref<2x10xf32, #tpu.memory_space<vmem>>, vector<2x10xf32>
    tpu.vector_store %arg8[%c0_17, %c0_18], %21 {strides = array<i32>} : memref<2x10xf32, #tpu.memory_space<vmem>>, vector<2x10xf32>,
    return
  }
  func.func @transform_0(%arg0: i32) -> (i32, i32) {
    %c0_i32 = arith.constant 0 : i32
    %c0_i32_0 = arith.constant 0 : i32
    return %arg0, %c0_i32 : i32, i32
  }
  func.func @transform_1(%arg0: i32) -> (i32, i32) {
    %c0_i32 = arith.constant 0 : i32
    %c0_i32_0 = arith.constant 0 : i32
    %c0_i32_1 = arith.constant 0 : i32
    return %c0_i32, %c0_i32_0 : i32, i32
  }
  func.func @transform_2(%arg0: i32) -> (i32, i32) {
    %c0_i32 = arith.constant 0 : i32
    %c0_i32_0 = arith.constant 0 : i32
    %c0_i32_1 = arith.constant 0 : i32
    return %c0_i32, %c0_i32_0 : i32, i32
  }
  func.func @transform_3(%arg0: i32) -> (i32, i32) {
    %c0_i32 = arith.constant 0 : i32
    %c0_i32_0 = arith.constant 0 : i32
    %c0_i32_1 = arith.constant 0 : i32
    return %c0_i32, %c0_i32_0 : i32, i32
  }
  func.func @transform_4(%arg0: i32) -> (i32, i32) {
    %c0_i32 = arith.constant 0 : i32
    %c0_i32_0 = arith.constant 0 : i32
    %c0_i32_1 = arith.constant 0 : i32
    return %c0_i32, %c0_i32_0 : i32, i32
  }
  func.func @transform_5(%arg0: i32) -> (i32, i32) {
    %c0_i32 = arith.constant 0 : i32
    %c0_i32_0 = arith.constant 0 : i32
    %c0_i32_1 = arith.constant 0 : i32
    return %c0_i32, %c0_i32_0 : i32, i32
  }
  func.func @transform_6(%arg0: i32) -> (i32, i32) {
    %c0_i32 = arith.constant 0 : i32
    %c0_i32_0 = arith.constant 0 : i32
    %c0_i32_1 = arith.constant 0 : i32
    return %c0_i32, %c0_i32_0 : i32, i32
  }
  func.func @transform_7(%arg0: i32) -> (i32, i32) {
    %c0_i32 = arith.constant 0 : i32
    %c0_i32_0 = arith.constant 0 : i32
    return %arg0, %c0_i32 : i32, i32
  }
}

</mosaic_0001>

<bundles_post_ra>
// kernel: net_forward.3
= control target key start
LH: loop header
LB: loop body
LE: loop exit
PB: predicated region body
PF: predicated region fallthrough
CT: control target
= control target key end

     0   :  { %v4861_v0 = vmov 0.0   ;;  %vm3531_vm0 = vmmov 0   ;;  %vm203_vm1 = vcmask 261120   ;;  %vm2400_vm2 = vcmask 44032   ;;  %s4857_s1 = inlined_call_operand.vmem [shape: bf16[32,6], index: 1, kind: input, shape index: {}]   ;;  %s4858_s0 = inlined_call_operand.vmem [shape: bf16[4,392,32], index: 0, kind: input, shape index: {}]   ;;  %s4859_s2 = inlined_call_operand.vmem [shape: f32[1,6], index: 2, kind: input, shape index: {}]   ;;  %s4860_s3 = inlined_call_operand.vmem [shape: bf16[392,6], index: 3, kind: output, shape index: {}]  }
   0x1   :  { %3010 = vmatprep.subr.bf16.mxu0 %v4861_v0  ;;  %3114 = vmatprep.subr.bf16.mxu1 %v4861_v0  ;;  %v3428_v1 = vld [vmem:[%s4857_s1 + $0x8] sm:$0xff]   ;;  %v3429_v2 = vld [vmem:[%s4857_s1] sm:$0xff]   ;;  %v3434_v7 = vld [vmem:[%s4858_s0 + $0x10] sm:$0xff]  }
   0x2   :  { %3014 = vmatprep.mubr.msk.bf16.mxu0 %vm3531_vm0, %v4861_v0  ;;  %3118 = vmatprep.mubr.msk.bf16.mxu1 %vm3531_vm0, %v4861_v0  ;;  %v3430_v3 = vld [vmem:[%s4858_s0] sm:$0xff]   ;;  %v3432_v5 = vld [vmem:[%s4858_s0 + $0x8] sm:$0xff]   ;;  %v3435_v8 = vld [vmem:[%s4858_s0 + $0xd4] sm:$0xff]  }
   0x3   :  { %3011 = vmatpush3.bf16.msra.mxu0 %v3428_v1  ;;  %3115 = vmatpush3.bf16.msra.mxu1 %v3428_v1  ;;  %v3431_v4 = vld [vmem:[%s4858_s0 + $0xc4] sm:$0xff]   ;;  %v3433_v6 = vld [vmem:[%s4858_s0 + $0xcc] sm:$0xff]   ;;  %v3436_v9 = vld [vmem:[%s4858_s0 + $0x18] sm:$0xff]  }
   0x4   :  { %3012 = vmatprep.subr.bf16.mxu0 %v4861_v0  ;;  %3116 = vmatprep.subr.bf16.mxu1 %v4861_v0  ;;  %v3437_v10 = vld [vmem:[%s4858_s0 + $0xdc] sm:$0xff]   ;;  %v3439_v12 = vld [vmem:[%s4858_s0 + $0xe4] sm:$0xff]   ;;  %v3441_v14 = vld [vmem:[%s4858_s0 + $0xec] sm:$0xff]  }
   0x5   :  { %v3438_v11 = vld [vmem:[%s4858_s0 + $0x20] sm:$0xff]   ;;  %v3440_v13 = vld [vmem:[%s4858_s0 + $0x28] sm:$0xff]   ;;  %v3442_v15 = vld [vmem:[%s4858_s0 + $0x30] sm:$0xff]  }
   0x6   :  { %v3443_v16 = vld [vmem:[%s4858_s0 + $0xf4] sm:$0xff]   ;;  %v3445_v18 = vld [vmem:[%s4858_s0 + $0xfc] sm:$0xff]   ;;  %v3447_v20 = vld [vmem:[%s4858_s0 + $0x104] sm:$0xff]  }
   0x7   :  { %3013 = vmatpush3.bf16.msra.mxu0 %v3429_v2  ;;  %3117 = vmatpush3.bf16.msra.mxu1 %v3429_v2  ;;  %v3444_v17 = vld [vmem:[%s4858_s0 + $0x38] sm:$0xff]   ;;  %v3446_v19 = vld [vmem:[%s4858_s0 + $0x40] sm:$0xff]   ;;  %v3448_v21 = vld [vmem:[%s4858_s0 + $0x48] sm:$0xff]  }
   0x8   :  { %3218 = vmatprep.subr.bf16.mxu0 %v4861_v0  ;;  %3322 = vmatprep.subr.bf16.mxu1 %v4861_v0  ;;  %v3449_v22 = vld [vmem:[%s4858_s0 + $0x10c] sm:$0xff]   ;;  %v3451_v24 = vld [vmem:[%s4858_s0 + $0x114] sm:$0xff]   ;;  %v3453_v26 = vld [vmem:[%s4858_s0 + $0x11c] sm:$0xff]  }
   0x9   :  { %v3450_v23 = vld [vmem:[%s4858_s0 + $0x50] sm:$0xff]   ;;  %v3452_v25 = vld [vmem:[%s4858_s0 + $0x58] sm:$0xff]   ;;  %v3454_v27 = vld [vmem:[%s4858_s0 + $0x60] sm:$0xff]  }
   0xa   :  { %3015 = vmatmul.mubr.msk.bf16.vlgmr.msra.gmra.mxu0 %vm203_vm1, %v3430_v3  ;;  %3119 = vmatmul.mubr.msk.bf16.vlgmr.msra.gmra.mxu1 %vm203_vm1, %v3431_v4  ;;  %v3455_v28 = vld [vmem:[%s4858_s0 + $0x124] sm:$0xff]   ;;  %v3457_v30 = vld [vmem:[%s4858_s0 + $0x12c] sm:$0xff]   ;;  %v3459_v32 = vld [vmem:[%s4858_s0 + $0x134] sm:$0xff]  }
   0xb   :  { %3219 = vmatpush3.bf16.msra.mxu0 %v3428_v1  ;;  %3323 = vmatpush3.bf16.msra.mxu1 %v3428_v1  ;;  %v3456_v29 = vld [vmem:[%s4858_s0 + $0x68] sm:$0xff]   ;;  %v3458_v31 = vld [vmem:[%s4858_s0 + $0x70] sm:$0xff]   ;;  %v3460_v33 = vld [vmem:[%s4858_s0 + $0x78] sm:$0xff]  }
   0xc   :  { %3018 = vmatprep.mubr.msk.bf16.mxu0 %vm3531_vm0, %v4861_v0  ;;  %3122 = vmatprep.mubr.msk.bf16.mxu1 %vm3531_vm0, %v4861_v0  ;;  %v3461_v34 = vld [vmem:[%s4858_s0 + $0x13c] sm:$0xff]   ;;  %v3463_v36 = vld [vmem:[%s4858_s0 + $0x144] sm:$0xff]   ;;  %v3465_v38 = vld [vmem:[%s4858_s0 + $0x14c] sm:$0xff]  }
   0xd   :  { %3220 = vmatprep.subr.bf16.mxu0 %v4861_v0  ;;  %3324 = vmatprep.subr.bf16.mxu1 %v4861_v0  ;;  %v3462_v35 = vld [vmem:[%s4858_s0 + $0x80] sm:$0xff]   ;;  %v3464_v37 = vld [vmem:[%s4858_s0 + $0x88] sm:$0xff]   ;;  %v3466_v39 = vld [vmem:[%s4858_s0 + $0x90] sm:$0xff]  }
   0xe   :  { %v3467_v40 = vld [vmem:[%s4858_s0 + $0x154] sm:$0xff]   ;;  %v3469_v42 = vld [vmem:[%s4858_s0 + $0x15c] sm:$0xff]   ;;  %v3471_v44 = vld [vmem:[%s4858_s0 + $0x164] sm:$0xff]  }
   0xf   :  { %3221 = vmatpush3.bf16.msra.mxu0 %v3429_v2  ;;  %3325 = vmatpush3.bf16.msra.mxu1 %v3429_v2  ;;  %v3468_v41 = vld [vmem:[%s4858_s0 + $0x98] sm:$0xff]   ;;  %v3470_v43 = vld [vmem:[%s4858_s0 + $0xa0] sm:$0xff]   ;;  %v3472_v45 = vld [vmem:[%s4858_s0 + $0xa8] sm:$0xff]  }
  0x10   :  { %v3473_v46 = vld [vmem:[%s4858_s0 + $0x16c] sm:$0xff]   ;;  %v3475_v48 = vld [vmem:[%s4858_s0 + $0x174] sm:$0xff]   ;;  %v3477_v50 = vld [vmem:[%s4858_s0 + $0x17c] sm:$0xff]  }
  0x11   :  { %v3474_v47 = vld [vmem:[%s4858_s0 + $0xb0] sm:$0xff]   ;;  %v3476_v49 = vld [vmem:[%s4858_s0 + $0xb8] sm:$0xff]   ;;  %v3478_v51 = vld [vmem:[%s4858_s0 + $0xc0] ss:$0 sps:$4 sm:$0xff]  }
  0x12   :  { %3019 = vmatmul.mubr.msk.bf16.gmra.mxu0 %vm203_vm1, %v3432_v5  ;;  %3123 = vmatmul.mubr.msk.bf16.gmra.mxu1 %vm203_vm1, %v3433_v6  ;;  %v3479_v52 = vld [vmem:[%s4858_s0 + $0x184] ss:$0 sps:$4 sm:$0xff]   ;;  %v3480_v60 = vld [vmem:[%s4858_s0 + $0x188] sm:$0xff]  }
  0x13   :  { %3022 = vmatprep.mubr.msk.bf16.mxu0 %vm3531_vm0, %v4861_v0  ;;  %3126 = vmatprep.mubr.msk.bf16.mxu1 %vm3531_vm0, %v4861_v0  ;;  %v3481_v61 = vld [vmem:[%s4858_s0 + $0x24c] sm:$0xff]  }
  0x1a   :  { %3023 = vmatmul.mubr.msk.bf16.gmra.mxu0 %vm203_vm1, %v3434_v7  ;;  %3127 = vmatmul.mubr.msk.bf16.gmra.mxu1 %vm203_vm1, %v3435_v8 }
  0x1b   :  { %3026 = vmatprep.mubr.msk.bf16.mxu0 %vm3531_vm0, %v4861_v0  ;;  %3130 = vmatprep.mubr.msk.bf16.mxu1 %vm3531_vm0, %v4861_v0 }
  0x22   :  { %3027 = vmatmul.mubr.msk.bf16.gmra.mxu0 %vm203_vm1, %v3436_v9  ;;  %3131 = vmatmul.mubr.msk.bf16.gmra.mxu1 %vm203_vm1, %v3437_v10  ;;  %v3482_v9 = vld [vmem:[%s4858_s0 + $0x190] sm:$0xff]  }
  0x23   :  { %3030 = vmatprep.mubr.msk.bf16.mxu0 %vm3531_vm0, %v4861_v0  ;;  %3134 = vmatprep.mubr.msk.bf16.mxu1 %vm3531_vm0, %v4861_v0  ;;  %v3483_v10 = vld [vmem:[%s4858_s0 + $0x254] sm:$0xff]  }
  0x2a   :  { %3031 = vmatmul.mubr.msk.bf16.gmra.mxu0 %vm203_vm1, %v3438_v11  ;;  %3135 = vmatmul.mubr.msk.bf16.gmra.mxu1 %vm203_vm1, %v3439_v12 }
  0x2b   :  { %3034 = vmatprep.mubr.msk.bf16.mxu0 %vm3531_vm0, %v4861_v0  ;;  %3138 = vmatprep.mubr.msk.bf16.mxu1 %vm3531_vm0, %v4861_v0 }
  0x32   :  { %3035 = vmatmul.mubr.msk.bf16.gmra.mxu0 %vm203_vm1, %v3440_v13  ;;  %3139 = vmatmul.mubr.msk.bf16.gmra.mxu1 %vm203_vm1, %v3441_v14 }
  0x33   :  { %3038 = vmatprep.mubr.msk.bf16.mxu0 %vm3531_vm0, %v4861_v0  ;;  %3142 = vmatprep.mubr.msk.bf16.mxu1 %vm3531_vm0, %v4861_v0 }
  0x3a   :  { %3039 = vmatmul.mubr.msk.bf16.gmra.mxu0 %vm203_vm1, %v3442_v15  ;;  %3143 = vmatmul.mubr.msk.bf16.gmra.mxu1 %vm203_vm1, %v3443_v16 }
  0x3b   :  { %3042 = vmatprep.mubr.msk.bf16.mxu0 %vm3531_vm0, %v4861_v0  ;;  %3146 = vmatprep.mubr.msk.bf16.mxu1 %vm3531_vm0, %v4861_v0 }
  0x42   :  { %3043 = vmatmul.mubr.msk.bf16.gmra.mxu0 %vm203_vm1, %v3444_v17  ;;  %3147 = vmatmul.mubr.msk.bf16.gmra.mxu1 %vm203_vm1, %v3445_v18 }
  0x43   :  { %3046 = vmatprep.mubr.msk.bf16.mxu0 %vm3531_vm0, %v4861_v0  ;;  %3150 = vmatprep.mubr.msk.bf16.mxu1 %vm3531_vm0, %v4861_v0 }
  0x4a   :  { %3047 = vmatmul.mubr.msk.bf16.gmra.mxu0 %vm203_vm1, %v3446_v19  ;;  %3151 = vmatmul.mubr.msk.bf16.gmra.mxu1 %vm203_vm1, %v3447_v20 }
  0x4b   :  { %3050 = vmatprep.mubr.msk.bf16.mxu0 %vm3531_vm0, %v4861_v0  ;;  %3154 = vmatprep.mubr.msk.bf16.mxu1 %vm3531_vm0, %v4861_v0 }
  0x52   :  { %3051 = vmatmul.mubr.msk.bf16.gmra.mxu0 %vm203_vm1, %v3448_v21  ;;  %3155 = vmatmul.mubr.msk.bf16.gmra.mxu1 %vm203_vm1, %v3449_v22  ;;  %v3484_v21 = vld [vmem:[%s4858_s0 + $0x198] sm:$0xff]  }
  0x53   :  { %3054 = vmatprep.mubr.msk.bf16.mxu0 %vm3531_vm0, %v4861_v0  ;;  %3158 = vmatprep.mubr.msk.bf16.mxu1 %vm3531_vm0, %v4861_v0  ;;  %v3485_v22 = vld [vmem:[%s4858_s0 + $0x25c] sm:$0xff]  }
  0x5a   :  { %3055 = vmatmul.mubr.msk.bf16.gmra.mxu0 %vm203_vm1, %v3450_v23  ;;  %3159 = vmatmul.mubr.msk.bf16.gmra.mxu1 %vm203_vm1, %v3451_v24 }
  0x5b   :  { %3058 = vmatprep.mubr.msk.bf16.mxu0 %vm3531_vm0, %v4861_v0  ;;  %3162 = vmatprep.mubr.msk.bf16.mxu1 %vm3531_vm0, %v4861_v0 }
  0x62   :  { %3059 = vmatmul.mubr.msk.bf16.gmra.mxu0 %vm203_vm1, %v3452_v25  ;;  %3163 = vmatmul.mubr.msk.bf16.gmra.mxu1 %vm203_vm1, %v3453_v26 }
  0x63   :  { %3062 = vmatprep.mubr.msk.bf16.mxu0 %vm3531_vm0, %v4861_v0  ;;  %3166 = vmatprep.mubr.msk.bf16.mxu1 %vm3531_vm0, %v4861_v0 }
  0x6a   :  { %3063 = vmatmul.mubr.msk.bf16.gmra.mxu0 %vm203_vm1, %v3454_v27  ;;  %3167 = vmatmul.mubr.msk.bf16.gmra.mxu1 %vm203_vm1, %v3455_v28 }
  0x6b   :  { %3066 = vmatprep.mubr.msk.bf16.mxu0 %vm3531_vm0, %v4861_v0  ;;  %3170 = vmatprep.mubr.msk.bf16.mxu1 %vm3531_vm0, %v4861_v0 }
  0x72   :  { %3067 = vmatmul.mubr.msk.bf16.gmra.mxu0 %vm203_vm1, %v3456_v29  ;;  %3171 = vmatmul.mubr.msk.bf16.gmra.mxu1 %vm203_vm1, %v3457_v30 }
  0x73   :  { %3070 = vmatprep.mubr.msk.bf16.mxu0 %vm3531_vm0, %v4861_v0  ;;  %3174 = vmatprep.mubr.msk.bf16.mxu1 %vm3531_vm0, %v4861_v0 }
  0x7a   :  { %3071 = vmatmul.mubr.msk.bf16.gmra.mxu0 %vm203_vm1, %v3458_v31  ;;  %3175 = vmatmul.mubr.msk.bf16.gmra.mxu1 %vm203_vm1, %v3459_v32 }
  0x7b   :  { %3074 = vmatprep.mubr.msk.bf16.mxu0 %vm3531_vm0, %v4861_v0  ;;  %3178 = vmatprep.mubr.msk.bf16.mxu1 %vm3531_vm0, %v4861_v0 }
  0x82   :  { %3075 = vmatmul.mubr.msk.bf16.gmra.mxu0 %vm203_vm1, %v3460_v33  ;;  %3179 = vmatmul.mubr.msk.bf16.gmra.mxu1 %vm203_vm1, %v3461_v34  ;;  %v3486_v33 = vld [vmem:[%s4858_s0 + $0x1a0] sm:$0xff]  }
  0x83   :  { %3078 = vmatprep.mubr.msk.bf16.mxu0 %vm3531_vm0, %v4861_v0  ;;  %3182 = vmatprep.mubr.msk.bf16.mxu1 %vm3531_vm0, %v4861_v0  ;;  %v3487_v34 = vld [vmem:[%s4858_s0 + $0x264] sm:$0xff]  }
  0x8a   :  { %3079 = vmatmul.mubr.msk.bf16.gmra.mxu0 %vm203_vm1, %v3462_v35  ;;  %3183 = vmatmul.mubr.msk.bf16.gmra.mxu1 %vm203_vm1, %v3463_v36 }
  0x8b   :  { %3082 = vmatprep.mubr.msk.bf16.mxu0 %vm3531_vm0, %v4861_v0  ;;  %3186 = vmatprep.mubr.msk.bf16.mxu1 %vm3531_vm0, %v4861_v0 }
  0x92   :  { %3083 = vmatmul.mubr.msk.bf16.gmra.mxu0 %vm203_vm1, %v3464_v37  ;;  %3187 = vmatmul.mubr.msk.bf16.gmra.mxu1 %vm203_vm1, %v3465_v38 }
  0x93   :  { %3086 = vmatprep.mubr.msk.bf16.mxu0 %vm3531_vm0, %v4861_v0  ;;  %3190 = vmatprep.mubr.msk.bf16.mxu1 %vm3531_vm0, %v4861_v0 }
  0x9a   :  { %3087 = vmatmul.mubr.msk.bf16.gmra.mxu0 %vm203_vm1, %v3466_v39  ;;  %3191 = vmatmul.mubr.msk.bf16.gmra.mxu1 %vm203_vm1, %v3467_v40 }
  0x9b   :  { %3090 = vmatprep.mubr.msk.bf16.mxu0 %vm3531_vm0, %v4861_v0  ;;  %3194 = vmatprep.mubr.msk.bf16.mxu1 %vm3531_vm0, %v4861_v0 }
  0xa2   :  { %3091 = vmatmul.mubr.msk.bf16.gmra.mxu0 %vm203_vm1, %v3468_v41  ;;  %3195 = vmatmul.mubr.msk.bf16.gmra.mxu1 %vm203_vm1, %v3469_v42 }
  0xa3   :  { %3094 = vmatprep.mubr.msk.bf16.mxu0 %vm3531_vm0, %v4861_v0  ;;  %3198 = vmatprep.mubr.msk.bf16.mxu1 %vm3531_vm0, %v4861_v0 }
  0xaa   :  { %3095 = vmatmul.mubr.msk.bf16.gmra.mxu0 %vm203_vm1, %v3470_v43  ;;  %3199 = vmatmul.mubr.msk.bf16.gmra.mxu1 %vm203_vm1, %v3471_v44 }
  0xab   :  { %3098 = vmatprep.mubr.msk.bf16.mxu0 %vm3531_vm0, %v4861_v0  ;;  %3202 = vmatprep.mubr.msk.bf16.mxu1 %vm3531_vm0, %v4861_v0 }
  0xb2   :  { %3099 = vmatmul.mubr.msk.bf16.gmra.mxu0 %vm203_vm1, %v3472_v45  ;;  %3203 = vmatmul.mubr.msk.bf16.gmra.mxu1 %vm203_vm1, %v3473_v46  ;;  %v3488_v45 = vld [vmem:[%s4858_s0 + $0x1a8] sm:$0xff]  }
  0xb3   :  { %3102 = vmatprep.mubr.msk.bf16.mxu0 %vm3531_vm0, %v4861_v0  ;;  %3206 = vmatprep.mubr.msk.bf16.mxu1 %vm3531_vm0, %v4861_v0  ;;  %v3489_v46 = vld [vmem:[%s4858_s0 + $0x26c] sm:$0xff]  }
  0xba   :  { %3103 = vmatmul.mubr.msk.bf16.gmra.mxu0 %vm203_vm1, %v3474_v47  ;;  %3207 = vmatmul.mubr.msk.bf16.gmra.mxu1 %vm203_vm1, %v3475_v48 }
  0xbb   :  { %3106 = vmatprep.mubr.msk.bf16.mxu0 %vm3531_vm0, %v4861_v0  ;;  %3210 = vmatprep.mubr.msk.bf16.mxu1 %vm3531_vm0, %v4861_v0 }
  0xc2   :  { %3107 = vmatmul.mubr.msk.bf16.gmra.mxu0 %vm203_vm1, %v3476_v49  ;;  %3211 = vmatmul.mubr.msk.bf16.gmra.mxu1 %vm203_vm1, %v3477_v50 }
  0xc3   :  { %3110 = vmatprep.mubr.msk.bf16.mxu0 %vm3531_vm0, %v4861_v0  ;;  %3214 = vmatprep.mubr.msk.bf16.mxu1 %vm3531_vm0, %v4861_v0 }
  0xca   :  { %v3864_v53 = vpop.f32.mrf.mxu0  ;;  %3111 = vmatmul.mubr.msk.bf16.gmra.mxu0 %vm203_vm1, %v3478_v51  ;;  %v3867_v54 = vpop.f32.mrf.mxu1  ;;  %3215 = vmatmul.mubr.msk.bf16.gmra.mxu1 %vm203_vm1, %v3479_v52 }
  0xcb   :  { %3222 = vmatprep.mubr.msk.bf16.mxu0 %vm3531_vm0, %v4861_v0  ;;  %3326 = vmatprep.mubr.msk.bf16.mxu1 %vm3531_vm0, %v4861_v0 }
  0xcc   :  { %v3016_v56 = vpop.f32.mrf.mxu0  ;;  %v3120_v57 = vpop.f32.mrf.mxu1 }
  0xce   :  { %v3876_v58 = vpop.f32.mrf.mxu0  ;;  %v3878_v59 = vpop.f32.mrf.mxu1 }
  0xd0   :  { %v3017_v63 = vpop.f32.mrf.mxu0  ;;  %v3121_v1 = vpop.f32.mrf.mxu1 }
  0xd1   :  { %v3490_v63 = vld [vmem:[%s4858_s0 + $0x1b0] sm:$0xff]  }
  0xd2   :  { %v3888_v2 = vpop.f32.mrf.mxu0  ;;  %v3890_v3 = vpop.f32.mrf.mxu1  ;;  %3223 = vmatmul.mubr.msk.bf16.vlgmr.msra.gmra.mxu0 %vm203_vm1, %v3480_v60  ;;  %3327 = vmatmul.mubr.msk.bf16.vlgmr.msra.gmra.mxu1 %vm203_vm1, %v3481_v61  ;;  %v3491_v1 = vld [vmem:[%s4858_s0 + $0x274] sm:$0xff]  }
  0xd3   :  { %3226 = vmatprep.mubr.msk.bf16.mxu0 %vm3531_vm0, %v4861_v0  ;;  %3330 = vmatprep.mubr.msk.bf16.mxu1 %vm3531_vm0, %v4861_v0 }
  0xd4   :  { %v3020_v5 = vpop.f32.mrf.mxu0  ;;  %v3124_v6 = vpop.f32.mrf.mxu1 }
  0xd6   :  { %v3900_v7 = vpop.f32.mrf.mxu0  ;;  %v3902_v8 = vpop.f32.mrf.mxu1 }
  0xd8   :  { %v3021_v12 = vpop.f32.mrf.mxu0  ;;  %v3125_v13 = vpop.f32.mrf.mxu1 }
  0xda   :  { %v3912_v14 = vpop.f32.mrf.mxu0  ;;  %v3914_v15 = vpop.f32.mrf.mxu1  ;;  %3227 = vmatmul.mubr.msk.bf16.gmra.mxu0 %vm203_vm1, %v3482_v9  ;;  %3331 = vmatmul.mubr.msk.bf16.gmra.mxu1 %vm203_vm1, %v3483_v10 }
  0xdb   :  { %3230 = vmatprep.mubr.msk.bf16.mxu0 %vm3531_vm0, %v4861_v0  ;;  %3334 = vmatprep.mubr.msk.bf16.mxu1 %vm3531_vm0, %v4861_v0 }
  0xdc   :  { %v3024_v17 = vpop.f32.mrf.mxu0  ;;  %v3128_v18 = vpop.f32.mrf.mxu1 }
  0xde   :  { %v3924_v19 = vpop.f32.mrf.mxu0  ;;  %v3926_v20 = vpop.f32.mrf.mxu1 }
  0xe0   :  { %v3025_v24 = vpop.f32.mrf.mxu0  ;;  %v3129_v25 = vpop.f32.mrf.mxu1 }
  0xe1   :  { %v3492_v24 = vld [vmem:[%s4858_s0 + $0x1b8] sm:$0xff]  }
  0xe2   :  { %v3936_v26 = vpop.f32.mrf.mxu0  ;;  %v3938_v27 = vpop.f32.mrf.mxu1  ;;  %3231 = vmatmul.mubr.msk.bf16.gmra.mxu0 %vm203_vm1, %v3484_v21  ;;  %3335 = vmatmul.mubr.msk.bf16.gmra.mxu1 %vm203_vm1, %v3485_v22  ;;  %v3493_v25 = vld [vmem:[%s4858_s0 + $0x27c] sm:$0xff]  }
  0xe3   :  { %3234 = vmatprep.mubr.msk.bf16.mxu0 %vm3531_vm0, %v4861_v0  ;;  %3338 = vmatprep.mubr.msk.bf16.mxu1 %vm3531_vm0, %v4861_v0 }
  0xe4   :  { %v3028_v29 = vpop.f32.mrf.mxu0  ;;  %v3132_v30 = vpop.f32.mrf.mxu1 }
  0xe6   :  { %v3948_v31 = vpop.f32.mrf.mxu0  ;;  %v3950_v32 = vpop.f32.mrf.mxu1 }
  0xe8   :  { %v3029_v36 = vpop.f32.mrf.mxu0  ;;  %v3133_v37 = vpop.f32.mrf.mxu1 }
  0xea   :  { %v3960_v38 = vpop.f32.mrf.mxu0  ;;  %v3962_v39 = vpop.f32.mrf.mxu1  ;;  %3235 = vmatmul.mubr.msk.bf16.gmra.mxu0 %vm203_vm1, %v3486_v33  ;;  %3339 = vmatmul.mubr.msk.bf16.gmra.mxu1 %vm203_vm1, %v3487_v34 }
  0xeb   :  { %3238 = vmatprep.mubr.msk.bf16.mxu0 %vm3531_vm0, %v4861_v0  ;;  %3342 = vmatprep.mubr.msk.bf16.mxu1 %vm3531_vm0, %v4861_v0 }
  0xec   :  { %v3032_v41 = vpop.f32.mrf.mxu0  ;;  %v3136_v42 = vpop.f32.mrf.mxu1 }
  0xee   :  { %v3972_v43 = vpop.f32.mrf.mxu0  ;;  %v3974_v44 = vpop.f32.mrf.mxu1 }
  0xf0   :  { %v3033_v48 = vpop.f32.mrf.mxu0  ;;  %v3137_v49 = vpop.f32.mrf.mxu1 }
  0xf1   :  { %v3494_v48 = vld [vmem:[%s4858_s0 + $0x1c0] sm:$0xff]  }
  0xf2   :  { %v3984_v50 = vpop.f32.mrf.mxu0  ;;  %v3986_v51 = vpop.f32.mrf.mxu1  ;;  %3239 = vmatmul.mubr.msk.bf16.gmra.mxu0 %vm203_vm1, %v3488_v45  ;;  %3343 = vmatmul.mubr.msk.bf16.gmra.mxu1 %vm203_vm1, %v3489_v46  ;;  %v3495_v49 = vld [vmem:[%s4858_s0 + $0x284] sm:$0xff]  }
  0xf3   :  { %3242 = vmatprep.mubr.msk.bf16.mxu0 %vm3531_vm0, %v4861_v0  ;;  %3346 = vmatprep.mubr.msk.bf16.mxu1 %vm3531_vm0, %v4861_v0 }
  0xf4   :  { %v3036_v56 = vpop.f32.mrf.mxu0  ;;  %v3140_v57 = vpop.f32.mrf.mxu1 }
  0xf6   :  { %v3996_v60 = vpop.f32.mrf.mxu0  ;;  %v3998_v61 = vpop.f32.mrf.mxu1 }
  0xf8   :  { %v3037_v6 = vpop.f32.mrf.mxu0  ;;  %v3141_v9 = vpop.f32.mrf.mxu1 }
  0xfa   :  { %v4008_v10 = vpop.f32.mrf.mxu0  ;;  %v4010_v12 = vpop.f32.mrf.mxu1  ;;  %3243 = vmatmul.mubr.msk.bf16.gmra.mxu0 %vm203_vm1, %v3490_v63  ;;  %3347 = vmatmul.mubr.msk.bf16.gmra.mxu1 %vm203_vm1, %v3491_v1 }
  0xfb   :  { %3246 = vmatprep.mubr.msk.bf16.mxu0 %vm3531_vm0, %v4861_v0  ;;  %3350 = vmatprep.mubr.msk.bf16.mxu1 %vm3531_vm0, %v4861_v0 }
  0xfc   :  { %v3040_v17 = vpop.f32.mrf.mxu0  ;;  %v3144_v18 = vpop.f32.mrf.mxu1 }
  0xfe   :  { %v4020_v21 = vpop.f32.mrf.mxu0  ;;  %v4022_v22 = vpop.f32.mrf.mxu1 }
 0x100   :  { %v3041_v30 = vpop.f32.mrf.mxu0  ;;  %v3145_v33 = vpop.f32.mrf.mxu1 }
 0x101   :  { %v3496_v30 = vld [vmem:[%s4858_s0 + $0x1c8] sm:$0xff]  }
 0x102   :  { %v4032_v34 = vpop.f32.mrf.mxu0  ;;  %v4034_v36 = vpop.f32.mrf.mxu1  ;;  %3247 = vmatmul.mubr.msk.bf16.gmra.mxu0 %vm203_vm1, %v3492_v24  ;;  %3351 = vmatmul.mubr.msk.bf16.gmra.mxu1 %vm203_vm1, %v3493_v25  ;;  %v3497_v33 = vld [vmem:[%s4858_s0 + $0x28c] sm:$0xff]  }
 0x103   :  { %3250 = vmatprep.mubr.msk.bf16.mxu0 %vm3531_vm0, %v4861_v0  ;;  %3354 = vmatprep.mubr.msk.bf16.mxu1 %vm3531_vm0, %v4861_v0 }
 0x104   :  { %v3044_v41 = vpop.f32.mrf.mxu0  ;;  %v3148_v42 = vpop.f32.mrf.mxu1 }
 0x106   :  { %v4044_v45 = vpop.f32.mrf.mxu0  ;;  %v4046_v46 = vpop.f32.mrf.mxu1 }
 0x108   :  { %v3045_v57 = vpop.f32.mrf.mxu0  ;;  %v3149_v63 = vpop.f32.mrf.mxu1 }
 0x10a   :  { %v4056_v1 = vpop.f32.mrf.mxu0  ;;  %v4058_v6 = vpop.f32.mrf.mxu1  ;;  %3251 = vmatmul.mubr.msk.bf16.gmra.mxu0 %vm203_vm1, %v3494_v48  ;;  %3355 = vmatmul.mubr.msk.bf16.gmra.mxu1 %vm203_vm1, %v3495_v49 }
 0x10b   :  { %3254 = vmatprep.mubr.msk.bf16.mxu0 %vm3531_vm0, %v4861_v0  ;;  %3358 = vmatprep.mubr.msk.bf16.mxu1 %vm3531_vm0, %v4861_v0 }
 0x10c   :  { %v3048_v17 = vpop.f32.mrf.mxu0  ;;  %v3152_v18 = vpop.f32.mrf.mxu1 }
 0x10e   :  { %v4068_v24 = vpop.f32.mrf.mxu0  ;;  %v4070_v25 = vpop.f32.mrf.mxu1 }
 0x110   :  { %v3049_v42 = vpop.f32.mrf.mxu0  ;;  %v3153_v48 = vpop.f32.mrf.mxu1 }
 0x112   :  { %v4080_v49 = vpop.f32.mrf.mxu0  ;;  %v4082_v57 = vpop.f32.mrf.mxu1  ;;  %3255 = vmatmul.mubr.msk.bf16.gmra.mxu0 %vm203_vm1, %v3496_v30  ;;  %3359 = vmatmul.mubr.msk.bf16.gmra.mxu1 %vm203_vm1, %v3497_v33  ;;  %v3498_v30 = vld [vmem:[%s4858_s0 + $0x1d0] sm:$0xff]  }
 0x113   :  { %3258 = vmatprep.mubr.msk.bf16.mxu0 %vm3531_vm0, %v4861_v0  ;;  %3362 = vmatprep.mubr.msk.bf16.mxu1 %vm3531_vm0, %v4861_v0  ;;  %v3499_v33 = vld [vmem:[%s4858_s0 + $0x294] sm:$0xff]  }
 0x114   :  { %v3052_v17 = vpop.f32.mrf.mxu0  ;;  %v3156_v18 = vpop.f32.mrf.mxu1 }
 0x116   :  { %v4092_v42 = vpop.f32.mrf.mxu0  ;;  %v4094_v48 = vpop.f32.mrf.mxu1 }
 0x118   :  { %v3053_v41 = vpop.f32.mrf.mxu0  ;;  %v3157_v9 = vpop.f32.mrf.mxu1 }
 0x11a   :  { %v4104_v56 = vpop.f32.mrf.mxu0  ;;  %v4106_v17 = vpop.f32.mrf.mxu1  ;;  %3259 = vmatmul.mubr.msk.bf16.gmra.mxu0 %vm203_vm1, %v3498_v30  ;;  %3363 = vmatmul.mubr.msk.bf16.gmra.mxu1 %vm203_vm1, %v3499_v33  ;;  %v3500_v30 = vld [vmem:[%s4858_s0 + $0x1d8] sm:$0xff]  }
 0x11b   :  { %3262 = vmatprep.mubr.msk.bf16.mxu0 %vm3531_vm0, %v4861_v0  ;;  %3366 = vmatprep.mubr.msk.bf16.mxu1 %vm3531_vm0, %v4861_v0  ;;  %v3501_v33 = vld [vmem:[%s4858_s0 + $0x29c] sm:$0xff]  }
 0x11c   :  { %v3056_v63 = vpop.f32.mrf.mxu0  ;;  %v3160_v41 = vpop.f32.mrf.mxu1 }
 0x11e   :  { %v4116_v9 = vpop.f32.mrf.mxu0  ;;  %v4118_v37 = vpop.f32.mrf.mxu1 }
 0x120   :  { %v3057_v29 = vpop.f32.mrf.mxu0  ;;  %v3161_v13 = vpop.f32.mrf.mxu1 }
 0x122   :  { %v4128_v5 = vpop.f32.mrf.mxu0  ;;  %v4130_v63 = vpop.f32.mrf.mxu1  ;;  %3263 = vmatmul.mubr.msk.bf16.gmra.mxu0 %vm203_vm1, %v3500_v30  ;;  %3367 = vmatmul.mubr.msk.bf16.gmra.mxu1 %vm203_vm1, %v3501_v33  ;;  %v3502_v30 = vld [vmem:[%s4858_s0 + $0x1e0] sm:$0xff]  }
 0x123   :  { %3266 = vmatprep.mubr.msk.bf16.mxu0 %vm3531_vm0, %v4861_v0  ;;  %3370 = vmatprep.mubr.msk.bf16.mxu1 %vm3531_vm0, %v4861_v0  ;;  %v3503_v33 = vld [vmem:[%s4858_s0 + $0x2a4] sm:$0xff]  }
 0x124   :  { %v3060_v18 = vpop.f32.mrf.mxu0  ;;  %v3164_v29 = vpop.f32.mrf.mxu1 }
 0x126   :  { %v4140_v13 = vpop.f32.mrf.mxu0  ;;  %v4142_v52 = vpop.f32.mrf.mxu1 }
 0x128   :  { %v3061_v47 = vpop.f32.mrf.mxu0  ;;  %v3165_v40 = vpop.f32.mrf.mxu1 }
 0x12a   :  { %v4152_v35 = vpop.f32.mrf.mxu0  ;;  %v4154_v18 = vpop.f32.mrf.mxu1  ;;  %3267 = vmatmul.mubr.msk.bf16.gmra.mxu0 %vm203_vm1, %v3502_v30  ;;  %3371 = vmatmul.mubr.msk.bf16.gmra.mxu1 %vm203_vm1, %v3503_v33  ;;  %v3504_v30 = vld [vmem:[%s4858_s0 + $0x1e8] sm:$0xff]  }
 0x12b   :  { %4913 = vst [vmem:[#allocation2_spill] sm:$0xff] %v4152_v35  ;;  %4914 = vst [vmem:[#allocation3_spill] sm:$0xff] %v4154_v18  ;;  %3270 = vmatprep.mubr.msk.bf16.mxu0 %vm3531_vm0, %v4861_v0  ;;  %3374 = vmatprep.mubr.msk.bf16.mxu1 %vm3531_vm0, %v4861_v0  ;;  %v3505_v33 = vld [vmem:[%s4858_s0 + $0x2ac] sm:$0xff]  }
 0x12c   :  { %v3064_v41 = vpop.f32.mrf.mxu0  ;;  %v3168_v47 = vpop.f32.mrf.mxu1 }
 0x12e   :  { %v4164_v40 = vpop.f32.mrf.mxu0  ;;  %v4166_v28 = vpop.f32.mrf.mxu1 }
 0x12f   :  { %4915 = vst [vmem:[#allocation4_spill] sm:$0xff] %v4164_v40  ;;  %4916 = vst [vmem:[#allocation5_spill] sm:$0xff] %v4166_v28 }
 0x130   :  { %v3065_v23 = vpop.f32.mrf.mxu0  ;;  %v3169_v16 = vpop.f32.mrf.mxu1 }
 0x132   :  { %v4176_v11 = vpop.f32.mrf.mxu0  ;;  %v4178_v41 = vpop.f32.mrf.mxu1  ;;  %3271 = vmatmul.mubr.msk.bf16.gmra.mxu0 %vm203_vm1, %v3504_v30  ;;  %3375 = vmatmul.mubr.msk.bf16.gmra.mxu1 %vm203_vm1, %v3505_v33  ;;  %v3506_v30 = vld [vmem:[%s4858_s0 + $0x1f0] sm:$0xff]  }
 0x133   :  { %4917 = vst [vmem:[#allocation6_spill] sm:$0xff] %v4176_v11  ;;  %4918 = vst [vmem:[#allocation7_spill] sm:$0xff] %v4178_v41  ;;  %3274 = vmatprep.mubr.msk.bf16.mxu0 %vm3531_vm0, %v4861_v0  ;;  %3378 = vmatprep.mubr.msk.bf16.mxu1 %vm3531_vm0, %v4861_v0  ;;  %v3507_v33 = vld [vmem:[%s4858_s0 + $0x2b4] sm:$0xff]   ;;  %v4923_v41 = vmov 0.0  }
 0x134   :  { %v3068_v29 = vpop.f32.mrf.mxu0  ;;  %v3172_v23 = vpop.f32.mrf.mxu1 }
 0x136   :  { %v4188_v16 = vpop.f32.mrf.mxu0  ;;  %v4190_v4 = vpop.f32.mrf.mxu1 }
 0x137   :  { %4919 = vst [vmem:[#allocation8_spill] sm:$0xff] %v4188_v16  ;;  %4920 = vst [vmem:[#allocation9_spill] sm:$0xff] %v4190_v4 }
 0x138   :  { %v3069_v62 = vpop.f32.mrf.mxu0  ;;  %v3173_v55 = vpop.f32.mrf.mxu1 }
 0x13a   :  { %v4200_v0 = vpop.f32.mrf.mxu0  ;;  %v4202_v29 = vpop.f32.mrf.mxu1  ;;  %3275 = vmatmul.mubr.msk.bf16.gmra.mxu0 %vm203_vm1, %v3506_v30  ;;  %3379 = vmatmul.mubr.msk.bf16.gmra.mxu1 %vm203_vm1, %v3507_v33  ;;  %v3508_v30 = vld [vmem:[%s4858_s0 + $0x1f8] sm:$0xff]  }
 0x13b   :  { %4921 = vst [vmem:[#allocation10_spill] sm:$0xff] %v4200_v0  ;;  %4922 = vst [vmem:[#allocation11_spill] sm:$0xff] %v4202_v29  ;;  %3278 = vmatprep.mubr.msk.bf16.mxu0 %vm3531_vm0, %v4923_v41  ;;  %3382 = vmatprep.mubr.msk.bf16.mxu1 %vm3531_vm0, %v4923_v41  ;;  %v3509_v33 = vld [vmem:[%s4858_s0 + $0x2bc] sm:$0xff]  }
 0x13c   :  { %v3072_v47 = vpop.f32.mrf.mxu0  ;;  %v3176_v62 = vpop.f32.mrf.mxu1 }
 0x13e   :  { %v4212_v55 = vpop.f32.mrf.mxu0  ;;  %v4214_v4 = vpop.f32.mrf.mxu1 }
 0x13f   :  { %4924 = vst [vmem:[#allocation12_spill] sm:$0xff] %v4212_v55  ;;  %4925 = vst [vmem:[#allocation13_spill] sm:$0xff] %v4214_v4 }
 0x140   :  { %v3073_v29 = vpop.f32.mrf.mxu0  ;;  %v3177_v0 = vpop.f32.mrf.mxu1 }
 0x142   :  { %v4224_v16 = vpop.f32.mrf.mxu0  ;;  %v4226_v47 = vpop.f32.mrf.mxu1  ;;  %3279 = vmatmul.mubr.msk.bf16.gmra.mxu0 %vm203_vm1, %v3508_v30  ;;  %3383 = vmatmul.mubr.msk.bf16.gmra.mxu1 %vm203_vm1, %v3509_v33  ;;  %v3510_v30 = vld [vmem:[%s4858_s0 + $0x200] sm:$0xff]  }
 0x143   :  { %4926 = vst [vmem:[#allocation14_spill] sm:$0xff] %v4224_v16  ;;  %4927 = vst [vmem:[#allocation15_spill] sm:$0xff] %v4226_v47  ;;  %3282 = vmatprep.mubr.msk.bf16.mxu0 %vm3531_vm0, %v4923_v41  ;;  %3386 = vmatprep.mubr.msk.bf16.mxu1 %vm3531_vm0, %v4923_v41  ;;  %v3511_v33 = vld [vmem:[%s4858_s0 + $0x2c4] sm:$0xff]  }
 0x144   :  { %v3076_v23 = vpop.f32.mrf.mxu0  ;;  %v3180_v29 = vpop.f32.mrf.mxu1 }
 0x146   :  { %v4236_v0 = vpop.f32.mrf.mxu0  ;;  %v4238_v4 = vpop.f32.mrf.mxu1 }
 0x147   :  { %4928 = vst [vmem:[#allocation16_spill] sm:$0xff] %v4236_v0  ;;  %4929 = vst [vmem:[#allocation17_spill] sm:$0xff] %v4238_v4 }
 0x148   :  { %v3077_v47 = vpop.f32.mrf.mxu0  ;;  %v3181_v16 = vpop.f32.mrf.mxu1 }
 0x14a   :  { %v4248_v55 = vpop.f32.mrf.mxu0  ;;  %v4250_v23 = vpop.f32.mrf.mxu1  ;;  %3283 = vmatmul.mubr.msk.bf16.gmra.mxu0 %vm203_vm1, %v3510_v30  ;;  %3387 = vmatmul.mubr.msk.bf16.gmra.mxu1 %vm203_vm1, %v3511_v33  ;;  %v3512_v30 = vld [vmem:[%s4858_s0 + $0x208] sm:$0xff]  }
 0x14b   :  { %4930 = vst [vmem:[#allocation18_spill] sm:$0xff] %v4248_v55  ;;  %4931 = vst [vmem:[#allocation19_spill] sm:$0xff] %v4250_v23  ;;  %3286 = vmatprep.mubr.msk.bf16.mxu0 %vm3531_vm0, %v4923_v41  ;;  %3390 = vmatprep.mubr.msk.bf16.mxu1 %vm3531_vm0, %v4923_v41  ;;  %v3513_v33 = vld [vmem:[%s4858_s0 + $0x2cc] sm:$0xff]  }
 0x14c   :  { %v3080_v62 = vpop.f32.mrf.mxu0  ;;  %v3184_v47 = vpop.f32.mrf.mxu1 }
 0x14e   :  { %v4260_v16 = vpop.f32.mrf.mxu0  ;;  %v4262_v4 = vpop.f32.mrf.mxu1 }
 0x14f   :  { %4932 = vst [vmem:[#allocation20_spill] sm:$0xff] %v4260_v16  ;;  %4933 = vst [vmem:[#allocation21_spill] sm:$0xff] %v4262_v4 }
 0x150   :  { %v3081_v23 = vpop.f32.mrf.mxu0  ;;  %v3185_v55 = vpop.f32.mrf.mxu1 }
 0x152   :  { %v4272_v0 = vpop.f32.mrf.mxu0  ;;  %v4274_v62 = vpop.f32.mrf.mxu1  ;;  %3287 = vmatmul.mubr.msk.bf16.gmra.mxu0 %vm203_vm1, %v3512_v30  ;;  %3391 = vmatmul.mubr.msk.bf16.gmra.mxu1 %vm203_vm1, %v3513_v33  ;;  %v3514_v30 = vld [vmem:[%s4858_s0 + $0x210] sm:$0xff]  }
 0x153   :  { %4934 = vst [vmem:[#allocation22_spill] sm:$0xff] %v4272_v0  ;;  %4935 = vst [vmem:[#allocation23_spill] sm:$0xff] %v4274_v62  ;;  %3290 = vmatprep.mubr.msk.bf16.mxu0 %vm3531_vm0, %v4923_v41  ;;  %3394 = vmatprep.mubr.msk.bf16.mxu1 %vm3531_vm0, %v4923_v41  ;;  %v3515_v33 = vld [vmem:[%s4858_s0 + $0x2d4] sm:$0xff]  }
 0x154   :  { %v3084_v29 = vpop.f32.mrf.mxu0  ;;  %v3188_v23 = vpop.f32.mrf.mxu1 }
 0x156   :  { %v4284_v55 = vpop.f32.mrf.mxu0  ;;  %v4286_v4 = vpop.f32.mrf.mxu1 }
 0x157   :  { %4936 = vst [vmem:[#allocation24_spill] sm:$0xff] %v4284_v55  ;;  %4937 = vst [vmem:[#allocation25_spill] sm:$0xff] %v4286_v4 }
 0x158   :  { %v3085_v62 = vpop.f32.mrf.mxu0  ;;  %v3189_v0 = vpop.f32.mrf.mxu1 }
 0x15a   :  { %v4296_v16 = vpop.f32.mrf.mxu0  ;;  %v4298_v29 = vpop.f32.mrf.mxu1  ;;  %3291 = vmatmul.mubr.msk.bf16.gmra.mxu0 %vm203_vm1, %v3514_v30  ;;  %3395 = vmatmul.mubr.msk.bf16.gmra.mxu1 %vm203_vm1, %v3515_v33  ;;  %v3516_v30 = vld [vmem:[%s4858_s0 + $0x218] sm:$0xff]  }
 0x15b   :  { %4938 = vst [vmem:[#allocation26_spill] sm:$0xff] %v4296_v16  ;;  %4939 = vst [vmem:[#allocation27_spill] sm:$0xff] %v4298_v29  ;;  %3294 = vmatprep.mubr.msk.bf16.mxu0 %vm3531_vm0, %v4923_v41  ;;  %3398 = vmatprep.mubr.msk.bf16.mxu1 %vm3531_vm0, %v4923_v41  ;;  %v3517_v33 = vld [vmem:[%s4858_s0 + $0x2dc] sm:$0xff]  }
 0x15c   :  { %v3088_v47 = vpop.f32.mrf.mxu0  ;;  %v3192_v62 = vpop.f32.mrf.mxu1 }
 0x15e   :  { %v4308_v0 = vpop.f32.mrf.mxu0  ;;  %v4310_v4 = vpop.f32.mrf.mxu1 }
 0x15f   :  { %4940 = vst [vmem:[#allocation28_spill] sm:$0xff] %v4308_v0  ;;  %4941 = vst [vmem:[#allocation29_spill] sm:$0xff] %v4310_v4 }
 0x160   :  { %v3089_v29 = vpop.f32.mrf.mxu0  ;;  %v3193_v16 = vpop.f32.mrf.mxu1 }
 0x162   :  { %v4320_v55 = vpop.f32.mrf.mxu0  ;;  %v4322_v47 = vpop.f32.mrf.mxu1  ;;  %3295 = vmatmul.mubr.msk.bf16.gmra.mxu0 %vm203_vm1, %v3516_v30  ;;  %3399 = vmatmul.mubr.msk.bf16.gmra.mxu1 %vm203_vm1, %v3517_v33  ;;  %v3518_v30 = vld [vmem:[%s4858_s0 + $0x220] sm:$0xff]  }
 0x163   :  { %4942 = vst [vmem:[#allocation30_spill] sm:$0xff] %v4320_v55  ;;  %4943 = vst [vmem:[#allocation31_spill] sm:$0xff] %v4322_v47  ;;  %3298 = vmatprep.mubr.msk.bf16.mxu0 %vm3531_vm0, %v4923_v41  ;;  %3402 = vmatprep.mubr.msk.bf16.mxu1 %vm3531_vm0, %v4923_v41  ;;  %v3519_v33 = vld [vmem:[%s4858_s0 + $0x2e4] sm:$0xff]  }
 0x164   :  { %v3092_v23 = vpop.f32.mrf.mxu0  ;;  %v3196_v29 = vpop.f32.mrf.mxu1 }
 0x166   :  { %v4332_v16 = vpop.f32.mrf.mxu0  ;;  %v4334_v4 = vpop.f32.mrf.mxu1 }
 0x167   :  { %4944 = vst [vmem:[#allocation32_spill] sm:$0xff] %v4332_v16  ;;  %4945 = vst [vmem:[#allocation33_spill] sm:$0xff] %v4334_v4 }
 0x168   :  { %v3093_v47 = vpop.f32.mrf.mxu0  ;;  %v3197_v55 = vpop.f32.mrf.mxu1 }
 0x16a   :  { %v4344_v0 = vpop.f32.mrf.mxu0  ;;  %v4346_v23 = vpop.f32.mrf.mxu1  ;;  %3299 = vmatmul.mubr.msk.bf16.gmra.mxu0 %vm203_vm1, %v3518_v30  ;;  %3403 = vmatmul.mubr.msk.bf16.gmra.mxu1 %vm203_vm1, %v3519_v33  ;;  %v3520_v30 = vld [vmem:[%s4858_s0 + $0x228] sm:$0xff]  }
 0x16b   :  { %4946 = vst [vmem:[#allocation34_spill] sm:$0xff] %v4344_v0  ;;  %4947 = vst [vmem:[#allocation35_spill] sm:$0xff] %v4346_v23  ;;  %3302 = vmatprep.mubr.msk.bf16.mxu0 %vm3531_vm0, %v4923_v41  ;;  %3406 = vmatprep.mubr.msk.bf16.mxu1 %vm3531_vm0, %v4923_v41  ;;  %v3521_v33 = vld [vmem:[%s4858_s0 + $0x2ec] sm:$0xff]  }
 0x16c   :  { %v3096_v62 = vpop.f32.mrf.mxu0  ;;  %v3200_v47 = vpop.f32.mrf.mxu1 }
 0x16e   :  { %v4356_v55 = vpop.f32.mrf.mxu0  ;;  %v4358_v4 = vpop.f32.mrf.mxu1 }
 0x16f   :  { %4948 = vst [vmem:[#allocation36_spill] sm:$0xff] %v4356_v55  ;;  %4949 = vst [vmem:[#allocation37_spill] sm:$0xff] %v4358_v4 }
 0x170   :  { %v3097_v23 = vpop.f32.mrf.mxu0  ;;  %v3201_v0 = vpop.f32.mrf.mxu1 }
 0x172   :  { %v4368_v16 = vpop.f32.mrf.mxu0  ;;  %v4370_v62 = vpop.f32.mrf.mxu1  ;;  %3303 = vmatmul.mubr.msk.bf16.gmra.mxu0 %vm203_vm1, %v3520_v30  ;;  %3407 = vmatmul.mubr.msk.bf16.gmra.mxu1 %vm203_vm1, %v3521_v33  ;;  %v3522_v30 = vld [vmem:[%s4858_s0 + $0x230] sm:$0xff]  }
 0x173   :  { %4950 = vst [vmem:[#allocation38_spill] sm:$0xff] %v4368_v16  ;;  %4951 = vst [vmem:[#allocation39_spill] sm:$0xff] %v4370_v62  ;;  %3306 = vmatprep.mubr.msk.bf16.mxu0 %vm3531_vm0, %v4923_v41  ;;  %3410 = vmatprep.mubr.msk.bf16.mxu1 %vm3531_vm0, %v4923_v41  ;;  %v3523_v33 = vld [vmem:[%s4858_s0 + $0x2f4] sm:$0xff]  }
 0x174   :  { %v3100_v29 = vpop.f32.mrf.mxu0  ;;  %v3204_v23 = vpop.f32.mrf.mxu1 }
 0x176   :  { %v4380_v0 = vpop.f32.mrf.mxu0  ;;  %v4382_v4 = vpop.f32.mrf.mxu1 }
 0x177   :  { %4952 = vst [vmem:[#allocation40_spill] sm:$0xff] %v4380_v0  ;;  %4953 = vst [vmem:[#allocation41_spill] sm:$0xff] %v4382_v4 }
 0x178   :  { %v3101_v62 = vpop.f32.mrf.mxu0  ;;  %v3205_v16 = vpop.f32.mrf.mxu1 }
 0x17a   :  { %v4392_v55 = vpop.f32.mrf.mxu0  ;;  %v4394_v29 = vpop.f32.mrf.mxu1  ;;  %3307 = vmatmul.mubr.msk.bf16.gmra.mxu0 %vm203_vm1, %v3522_v30  ;;  %3411 = vmatmul.mubr.msk.bf16.gmra.mxu1 %vm203_vm1, %v3523_v33  ;;  %v3524_v30 = vld [vmem:[%s4858_s0 + $0x238] sm:$0xff]  }
 0x17b   :  { %4954 = vst [vmem:[#allocation42_spill] sm:$0xff] %v4392_v55  ;;  %4955 = vst [vmem:[#allocation43_spill] sm:$0xff] %v4394_v29  ;;  %3310 = vmatprep.mubr.msk.bf16.mxu0 %vm3531_vm0, %v4923_v41  ;;  %3414 = vmatprep.mubr.msk.bf16.mxu1 %vm3531_vm0, %v4923_v41  ;;  %v3525_v33 = vld [vmem:[%s4858_s0 + $0x2fc] sm:$0xff]  }
 0x17c   :  { %v3104_v47 = vpop.f32.mrf.mxu0  ;;  %v3208_v62 = vpop.f32.mrf.mxu1 }
 0x17e   :  { %v4404_v16 = vpop.f32.mrf.mxu0  ;;  %v4406_v4 = vpop.f32.mrf.mxu1 }
 0x17f   :  { %4956 = vst [vmem:[#allocation44_spill] sm:$0xff] %v4404_v16  ;;  %4957 = vst [vmem:[#allocation45_spill] sm:$0xff] %v4406_v4 }
 0x180   :  { %v3105_v29 = vpop.f32.mrf.mxu0  ;;  %v3209_v55 = vpop.f32.mrf.mxu1 }
 0x182   :  { %v4416_v0 = vpop.f32.mrf.mxu0  ;;  %v4418_v47 = vpop.f32.mrf.mxu1  ;;  %3311 = vmatmul.mubr.msk.bf16.gmra.mxu0 %vm203_vm1, %v3524_v30  ;;  %3415 = vmatmul.mubr.msk.bf16.gmra.mxu1 %vm203_vm1, %v3525_v33  ;;  %v3526_v30 = vld [vmem:[%s4858_s0 + $0x240] sm:$0xff]  }
 0x183   :  { %4958 = vst [vmem:[#allocation46_spill] sm:$0xff] %v4416_v0  ;;  %4959 = vst [vmem:[#allocation47_spill] sm:$0xff] %v4418_v47  ;;  %3314 = vmatprep.mubr.msk.bf16.mxu0 %vm3531_vm0, %v4923_v41  ;;  %3418 = vmatprep.mubr.msk.bf16.mxu1 %vm3531_vm0, %v4923_v41  ;;  %v3527_v33 = vld [vmem:[%s4858_s0 + $0x304] sm:$0xff]  }
 0x184   :  { %v3108_v23 = vpop.f32.mrf.mxu0  ;;  %v3212_v29 = vpop.f32.mrf.mxu1 }
 0x186   :  { %v4428_v55 = vpop.f32.mrf.mxu0  ;;  %v4430_v4 = vpop.f32.mrf.mxu1 }
 0x187   :  { %4960 = vst [vmem:[#allocation48_spill] sm:$0xff] %v4428_v55  ;;  %4961 = vst [vmem:[#allocation49_spill] sm:$0xff] %v4430_v4  ;;  %v3528_v55 = vld [vmem:[%s4858_s0 + $0x248] ss:$0 sps:$4 sm:$0xff]  }
 0x188   :  { %v3109_v47 = vpop.f32.mrf.mxu0  ;;  %v3213_v0 = vpop.f32.mrf.mxu1 }
 0x18a   :  { %v4440_v16 = vpop.f32.mrf.mxu0  ;;  %v4442_v23 = vpop.f32.mrf.mxu1  ;;  %3315 = vmatmul.mubr.msk.bf16.gmra.mxu0 %vm203_vm1, %v3526_v30  ;;  %3419 = vmatmul.mubr.msk.bf16.gmra.mxu1 %vm203_vm1, %v3527_v33  ;;  %v3529_v30 = vld [vmem:[%s4858_s0 + $0x30c] ss:$0 sps:$4 sm:$0xff]  }
 0x18b   :  { %4962 = vst [vmem:[#allocation50_spill] sm:$0xff] %v4440_v16  ;;  %4963 = vst [vmem:[#allocation51_spill] sm:$0xff] %v4442_v23  ;;  %3318 = vmatprep.mubr.msk.bf16.mxu0 %vm3531_vm0, %v4923_v41  ;;  %3422 = vmatprep.mubr.msk.bf16.mxu1 %vm3531_vm0, %v4923_v41  ;;  %v4964_v41 = vmax.f32 %v3864_v53, %v3867_v54 }
 0x18c   :  { %v3112_v62 = vpop.f32.mrf.mxu0  ;;  %v3216_v47 = vpop.f32.mrf.mxu1 }
 0x18d   :  { %v4466_v62 = vld [vmem:[%s4859_s2] ss:$0 sm:$0xff] }
 0x18e   :  { %v508_v0 = vpop.f32.mrf.mxu0  ;;  %v988_v4 = vpop.f32.mrf.mxu1 }
 0x190   :  { %v3113_v33 = vpop.f32.mrf.mxu0  ;;  %v3217_v29 = vpop.f32.mrf.mxu1 }
 0x192   :  { %v1322_v23 = vpop.f32.mrf.mxu0  ;;  %3319 = vmatmul.mubr.msk.bf16.gmra.mxu0 %vm203_vm1, %v3528_v55  ;;  %v1851_v16 = vpop.f32.mrf.mxu1  ;;  %3423 = vmatmul.mubr.msk.bf16.gmra.mxu1 %vm203_vm1, %v3529_v30  ;;  %v4965_v55 = vmax.f32 %v3876_v58, %v3878_v59 }
 0x193   :  { %v1520_v4 = vmax.f32 %v4964_v41, %v1322_v23 }
 0x194   :  { %v3224_v47 = vpop.f32.mrf.mxu0  ;;  %v3328_v0 = vpop.f32.mrf.mxu1 }
 0x195   :  { %v2049_v11 = vmax.f32 %v1520_v4, %v1851_v16  ;;  %v4966_v16 = vmax.f32 %v3888_v2, %v3890_v3 }
 0x196   :  { %v1325_v33 = vpop.f32.mrf.mxu0  ;;  %v1854_v29 = vpop.f32.mrf.mxu1 }
 0x197   :  { %v2105_v28 = vadd.f32 %v4466_v62, %v2049_v11  ;;  %v1521_v30 = vmax.f32 %v4965_v55, %v1325_v33 }
 0x198   :  { %v3225_v40 = vpop.f32.mrf.mxu0  ;;  %v3329_v18 = vpop.f32.mrf.mxu1 }
 0x199   :  { %v2154_v53 = vmax.f32 %v2105_v28, 0.0  ;;  %v2050_v54 = vmax.f32 %v1521_v30, %v1854_v29  ;;  %v4967_v29 = vmax.f32 %v3900_v7, %v3902_v8 }
 0x19a   :  { %v1330_v23 = vpop.f32.mrf.mxu0  ;;  %v1859_v41 = vpop.f32.mrf.mxu1 }
 0x19b   :  { %v2853_v35 = vpack.c.bf16 %v2154_v53, %v2154_v53  ;;  %v2106_v47 = vadd.f32 %v4466_v62, %v2050_v54  ;;  %v1522_v4 = vmax.f32 %v4966_v16, %v1330_v23 }
 0x19c   :  { %v3228_v0 = vpop.f32.mrf.mxu0  ;;  %v3332_v11 = vpop.f32.mrf.mxu1 }
 0x19d   :  { %2401 = vst.msk [vmem:[%s4860_s3] sm:$0xf] %vm2400_vm2, %v2853_v35  ;;  %v2155_v58 = vmax.f32 %v2106_v47, 0.0  ;;  %v2051_v59 = vmax.f32 %v1522_v4, %v1859_v41  ;;  %v4968_v47 = vmax.f32 %v3912_v14, %v3914_v15 }
 0x19e   :  { %v1333_v28 = vpop.f32.mrf.mxu0  ;;  %v1862_v18 = vpop.f32.mrf.mxu1 }
 0x19f   :  { %v2854_v40 = vpack.c.bf16 %v2155_v58, %v2155_v58  ;;  %v2107_v33 = vadd.f32 %v4466_v62, %v2051_v59  ;;  %v1523_v55 = vmax.f32 %v4967_v29, %v1333_v28 }
 0x1a0   :  { %v3229_v2 = vpop.f32.mrf.mxu0  ;;  %v3333_v3 = vpop.f32.mrf.mxu1 }
 0x1a1   :  { %2402 = vst.msk [vmem:[%s4860_s3 + $0x4] sm:$0xf] %vm2400_vm2, %v2854_v40  ;;  %v2156_v30 = vmax.f32 %v2107_v33, 0.0  ;;  %v2052_v35 = vmax.f32 %v1523_v55, %v1862_v18  ;;  %v4969_v18 = vmax.f32 %v3924_v19, %v3926_v20 }
 0x1a2   :  { %v1338_v53 = vpop.f32.mrf.mxu0  ;;  %v1867_v54 = vpop.f32.mrf.mxu1 }
 0x1a3   :  { %v2855_v23 = vpack.c.bf16 %v2156_v30, %v2156_v30  ;;  %v2108_v41 = vadd.f32 %v4466_v62, %v2052_v35  ;;  %v1524_v16 = vmax.f32 %v4968_v47, %v1338_v53  ;;  %v4970_v35 = vmax.f32 %v3936_v26, %v3938_v27 }
 0x1a4   :  { %v3232_v7 = vpop.f32.mrf.mxu0  ;;  %v3336_v8 = vpop.f32.mrf.mxu1 }
 0x1a5   :  { %2403 = vst.msk [vmem:[%s4860_s3 + $0x8] sm:$0xf] %vm2400_vm2, %v2855_v23  ;;  %v2157_v4 = vmax.f32 %v2108_v41, 0.0  ;;  %v2053_v0 = vmax.f32 %v1524_v16, %v1867_v54  ;;  %v4971_v8 = vmax.f32 %v3948_v31, %v3950_v32 }
 0x1a6   :  { %v1341_v11 = vpop.f32.mrf.mxu0  ;;  %v1870_v58 = vpop.f32.mrf.mxu1 }
 0x1a7   :  { %v2856_v59 = vpack.c.bf16 %v2157_v4, %v2157_v4  ;;  %v2109_v28 = vadd.f32 %v4466_v62, %v2053_v0  ;;  %v1525_v40 = vmax.f32 %v4969_v18, %v1341_v11 }
 0x1a8   :  { %v3233_v14 = vpop.f32.mrf.mxu0  ;;  %v3337_v15 = vpop.f32.mrf.mxu1 }
 0x1a9   :  { %2404 = vst.msk [vmem:[%s4860_s3 + $0xc] sm:$0xf] %vm2400_vm2, %v2856_v59  ;;  %v2158_v33 = vmax.f32 %v2109_v28, 0.0  ;;  %v2054_v29 = vmax.f32 %v1525_v40, %v1870_v58  ;;  %v4972_v40 = vmax.f32 %v3960_v38, %v3962_v39 }
 0x1aa   :  { %v1346_v55 = vpop.f32.mrf.mxu0  ;;  %v1875_v2 = vpop.f32.mrf.mxu1 }
 0x1ab   :  { %v2857_v3 = vpack.c.bf16 %v2158_v33, %v2158_v33  ;;  %v2110_v30 = vadd.f32 %v4466_v62, %v2054_v29  ;;  %v1526_v53 = vmax.f32 %v4970_v35, %v1346_v55 }
 0x1ac   :  { %v3236_v19 = vpop.f32.mrf.mxu0  ;;  %v3340_v20 = vpop.f32.mrf.mxu1 }
 0x1ad   :  { %2405 = vst.msk [vmem:[%s4860_s3 + $0x10] sm:$0xf] %vm2400_vm2, %v2857_v3  ;;  %v2159_v54 = vmax.f32 %v2110_v30, 0.0  ;;  %v2055_v23 = vmax.f32 %v1526_v53, %v1875_v2  ;;  %v4973_v30 = vmax.f32 %v3972_v43, %v3974_v44 }
 0x1ae   :  { %v1349_v41 = vpop.f32.mrf.mxu0  ;;  %v1878_v47 = vpop.f32.mrf.mxu1 }
 0x1af   :  { %v2858_v16 = vpack.c.bf16 %v2159_v54, %v2159_v54  ;;  %v2111_v7 = vadd.f32 %v4466_v62, %v2055_v23  ;;  %v1527_v4 = vmax.f32 %v4971_v8, %v1349_v41 }
 0x1b0   :  { %v3237_v26 = vpop.f32.mrf.mxu0  ;;  %v3341_v27 = vpop.f32.mrf.mxu1 }
 0x1b1   :  { %2406 = vst.msk [vmem:[%s4860_s3 + $0x14] sm:$0xf] %vm2400_vm2, %v2858_v16  ;;  %v2160_v0 = vmax.f32 %v2111_v7, 0.0  ;;  %v2056_v11 = vmax.f32 %v1527_v4, %v1878_v47  ;;  %v4974_v47 = vmax.f32 %v3984_v50, %v3986_v51 }
 0x1b2   :  { %v1354_v58 = vpop.f32.mrf.mxu0  ;;  %v1883_v59 = vpop.f32.mrf.mxu1 }
 0x1b3   :  { %v2859_v28 = vpack.c.bf16 %v2160_v0, %v2160_v0  ;;  %v2112_v18 = vadd.f32 %v4466_v62, %v2056_v11  ;;  %v1528_v14 = vmax.f32 %v4972_v40, %v1354_v58  ;;  %v4975_v11 = vmax.f32 %v3996_v60, %v3998_v61 }
 0x1b4   :  { %v3240_v31 = vpop.f32.mrf.mxu0  ;;  %v3344_v32 = vpop.f32.mrf.mxu1 }
 0x1b5   :  { %2407 = vst.msk [vmem:[%s4860_s3 + $0x18] sm:$0xf] %vm2400_vm2, %v2859_v28  ;;  %v2161_v15 = vmax.f32 %v2112_v18, 0.0  ;;  %v2057_v33 = vmax.f32 %v1528_v14, %v1883_v59  ;;  %v4976_v32 = vmax.f32 %v4008_v10, %v4010_v12 }
 0x1b6   :  { %v1357_v29 = vpop.f32.mrf.mxu0  ;;  %v1886_v55 = vpop.f32.mrf.mxu1 }
 0x1b7   :  { %v2860_v2 = vpack.c.bf16 %v2161_v15, %v2161_v15  ;;  %v2113_v3 = vadd.f32 %v4466_v62, %v2057_v33  ;;  %v1529_v35 = vmax.f32 %v4973_v30, %v1357_v29 }
 0x1b8   :  { %v3241_v38 = vpop.f32.mrf.mxu0  ;;  %v3345_v39 = vpop.f32.mrf.mxu1 }
 0x1b9   :  { %2408 = vst.msk [vmem:[%s4860_s3 + $0x1c] sm:$0xf] %vm2400_vm2, %v2860_v2  ;;  %v2162_v53 = vmax.f32 %v2113_v3, 0.0  ;;  %v2058_v19 = vmax.f32 %v1529_v35, %v1886_v55  ;;  %v4977_v35 = vmax.f32 %v4020_v21, %v4022_v22 }
 0x1ba   :  { %v1362_v20 = vpop.f32.mrf.mxu0  ;;  %v1891_v54 = vpop.f32.mrf.mxu1 }
 0x1bb   :  { %v2861_v23 = vpack.c.bf16 %v2162_v53, %v2162_v53  ;;  %v2114_v41 = vadd.f32 %v4466_v62, %v2058_v19  ;;  %v1530_v16 = vmax.f32 %v4974_v47, %v1362_v20 }
 0x1bc   :  { %v3244_v43 = vpop.f32.mrf.mxu0  ;;  %v3348_v44 = vpop.f32.mrf.mxu1 }
 0x1bd   :  { %2409 = vst.msk [vmem:[%s4860_s3 + $0x20] sm:$0xf] %vm2400_vm2, %v2861_v23  ;;  %v2163_v7 = vmax.f32 %v2114_v41, 0.0  ;;  %v2059_v8 = vmax.f32 %v1530_v16, %v1891_v54  ;;  %v4978_v41 = vmax.f32 %v4032_v34, %v4034_v36 }
 0x1be   :  { %v1365_v4 = vpop.f32.mrf.mxu0  ;;  %v1894_v26 = vpop.f32.mrf.mxu1 }
 0x1bf   :  { %v2862_v27 = vpack.c.bf16 %v2163_v7, %v2163_v7  ;;  %v2115_v0 = vadd.f32 %v4466_v62, %v2059_v8  ;;  %v1531_v58 = vmax.f32 %v4975_v11, %v1365_v4 }
 0x1c0   :  { %v3245_v50 = vpop.f32.mrf.mxu0  ;;  %v3349_v51 = vpop.f32.mrf.mxu1 }
 0x1c1   :  { %2410 = vst.msk [vmem:[%s4860_s3 + $0x24] sm:$0xf] %vm2400_vm2, %v2862_v27  ;;  %v2164_v59 = vmax.f32 %v2115_v0, 0.0  ;;  %v2060_v28 = vmax.f32 %v1531_v58, %v1894_v26  ;;  %v4979_v26 = vmax.f32 %v4044_v45, %v4046_v46 }
 0x1c2   :  { %v1370_v18 = vpop.f32.mrf.mxu0  ;;  %v1899_v40 = vpop.f32.mrf.mxu1 }
 0x1c3   :  { %v2863_v14 = vpack.c.bf16 %v2164_v59, %v2164_v59  ;;  %v2116_v31 = vadd.f32 %v4466_v62, %v2060_v28  ;;  %v1532_v15 = vmax.f32 %v4976_v32, %v1370_v18  ;;  %v4980_v28 = vmax.f32 %v4056_v1, %v4058_v6 }
 0x1c4   :  { %v3248_v60 = vpop.f32.mrf.mxu0  ;;  %v3352_v61 = vpop.f32.mrf.mxu1 }
 0x1c5   :  { %2411 = vst.msk [vmem:[%s4860_s3 + $0x28] sm:$0xf] %vm2400_vm2, %v2863_v14  ;;  %v2165_v33 = vmax.f32 %v2116_v31, 0.0  ;;  %v2061_v29 = vmax.f32 %v1532_v15, %v1899_v40  ;;  %v4981_v61 = vmax.f32 %v4068_v24, %v4070_v25 }
 0x1c6   :  { %v1373_v55 = vpop.f32.mrf.mxu0  ;;  %v1902_v2 = vpop.f32.mrf.mxu1 }
 0x1c7   :  { %v2864_v3 = vpack.c.bf16 %v2165_v33, %v2165_v33  ;;  %v2117_v30 = vadd.f32 %v4466_v62, %v2061_v29  ;;  %v1533_v38 = vmax.f32 %v4977_v35, %v1373_v55 }
 0x1c8   :  { %v3249_v10 = vpop.f32.mrf.mxu0  ;;  %v3353_v12 = vpop.f32.mrf.mxu1 }
 0x1c9   :  { %2412 = vst.msk [vmem:[%s4860_s3 + $0x2c] sm:$0xf] %vm2400_vm2, %v2864_v3  ;;  %v2166_v39 = vmax.f32 %v2117_v30, 0.0  ;;  %v2062_v53 = vmax.f32 %v1533_v38, %v1902_v2  ;;  %v4982_v38 = vmax.f32 %v4080_v49, %v4082_v57 }
 0x1ca   :  { %v1378_v19 = vpop.f32.mrf.mxu0  ;;  %v1907_v20 = vpop.f32.mrf.mxu1 }
 0x1cb   :  { %v2865_v54 = vpack.c.bf16 %v2166_v39, %v2166_v39  ;;  %v2118_v23 = vadd.f32 %v4466_v62, %v2062_v53  ;;  %v1534_v47 = vmax.f32 %v4978_v41, %v1378_v19 }
 0x1cc   :  { %v3252_v21 = vpop.f32.mrf.mxu0  ;;  %v3356_v22 = vpop.f32.mrf.mxu1 }
 0x1cd   :  { %2413 = vst.msk [vmem:[%s4860_s3 + $0x30] sm:$0xf] %vm2400_vm2, %v2865_v54  ;;  %v2167_v16 = vmax.f32 %v2118_v23, 0.0  ;;  %v2063_v43 = vmax.f32 %v1534_v47, %v1907_v20  ;;  %v4983_v23 = vmax.f32 %v4092_v42, %v4094_v48 }
 0x1ce   :  { %v1381_v44 = vpop.f32.mrf.mxu0  ;;  %v1910_v7 = vpop.f32.mrf.mxu1 }
 0x1cf   :  { %v2866_v8 = vpack.c.bf16 %v2167_v16, %v2167_v16  ;;  %v2119_v4 = vadd.f32 %v4466_v62, %v2063_v43  ;;  %v1535_v27 = vmax.f32 %v4979_v26, %v1381_v44 }
 0x1d0   :  { %v3253_v34 = vpop.f32.mrf.mxu0  ;;  %v3357_v36 = vpop.f32.mrf.mxu1 }
 0x1d1   :  { %2414 = vst.msk [vmem:[%s4860_s3 + $0x34] sm:$0xf] %vm2400_vm2, %v2866_v8  ;;  %v2168_v0 = vmax.f32 %v2119_v4, 0.0  ;;  %v2064_v11 = vmax.f32 %v1535_v27, %v1910_v7  ;;  %v4984_v7 = vmax.f32 %v4104_v56, %v4106_v17 }
 0x1d2   :  { %v1386_v58 = vpop.f32.mrf.mxu0  ;;  %v1915_v50 = vpop.f32.mrf.mxu1 }
 0x1d3   :  { %v2867_v51 = vpack.c.bf16 %v2168_v0, %v2168_v0  ;;  %v2120_v59 = vadd.f32 %v4466_v62, %v2064_v11  ;;  %v1536_v18 = vmax.f32 %v4980_v28, %v1386_v58  ;;  %v4985_v11 = vmax.f32 %v4116_v9, %v4118_v37 }
 0x1d4   :  { %v3256_v45 = vpop.f32.mrf.mxu0  ;;  %v3360_v46 = vpop.f32.mrf.mxu1 }
 0x1d5   :  { %2415 = vst.msk [vmem:[%s4860_s3 + $0x38] sm:$0xf] %vm2400_vm2, %v2867_v51  ;;  %v2169_v40 = vmax.f32 %v2120_v59, 0.0  ;;  %v2065_v14 = vmax.f32 %v1536_v18, %v1915_v50  ;;  %v4986_v46 = vmax.f32 %v4128_v5, %v4130_v63 }
 0x1d6   :  { %v1389_v31 = vpop.f32.mrf.mxu0  ;;  %v1918_v32 = vpop.f32.mrf.mxu1 }
 0x1d7   :  { %v2868_v15 = vpack.c.bf16 %v2169_v40, %v2169_v40  ;;  %v2121_v60 = vadd.f32 %v4466_v62, %v2065_v14  ;;  %v1537_v33 = vmax.f32 %v4981_v61, %v1389_v31 }
 0x1d8   :  { %v3257_v1 = vpop.f32.mrf.mxu0  ;;  %v3361_v6 = vpop.f32.mrf.mxu1 }
 0x1d9   :  { %2416 = vst.msk [vmem:[%s4860_s3 + $0x3c] sm:$0xf] %vm2400_vm2, %v2868_v15  ;;  %v2170_v29 = vmax.f32 %v2121_v60, 0.0  ;;  %v2066_v55 = vmax.f32 %v1537_v33, %v1918_v32  ;;  %v4987_v33 = vmax.f32 %v4140_v13, %v4142_v52 }
 0x1da   :  { %v1394_v2 = vpop.f32.mrf.mxu0  ;;  %v1923_v3 = vpop.f32.mrf.mxu1 }
 0x1db   :  { %v2869_v30 = vpack.c.bf16 %v2170_v29, %v2170_v29  ;;  %v2122_v35 = vadd.f32 %v4466_v62, %v2066_v55  ;;  %v1538_v10 = vmax.f32 %v4982_v38, %v1394_v2  ;;  %v4989_v38 = vld [vmem:[#allocation3_spill] sm:$0xff] }
 0x1dc   :  { %v3260_v24 = vpop.f32.mrf.mxu0  ;;  %v3364_v25 = vpop.f32.mrf.mxu1 }
 0x1dd   :  { %2417 = vst.msk [vmem:[%s4860_s3 + $0x40] sm:$0xf] %vm2400_vm2, %v2869_v30  ;;  %v2171_v12 = vmax.f32 %v2122_v35, 0.0  ;;  %v2067_v39 = vmax.f32 %v1538_v10, %v1923_v3  ;;  %v4988_v35 = vld [vmem:[#allocation2_spill] sm:$0xff] }
 0x1de   :  { %v1397_v53 = vpop.f32.mrf.mxu0  ;;  %v1926_v19 = vpop.f32.mrf.mxu1  ;;  %v4990_v10 = vmax.f32 %v4988_v35, %v4989_v38 }
 0x1df   :  { %v2870_v20 = vpack.c.bf16 %v2171_v12, %v2171_v12  ;;  %v2123_v54 = vadd.f32 %v4466_v62, %v2067_v39  ;;  %v1539_v41 = vmax.f32 %v4983_v23, %v1397_v53  ;;  %v4992_v23 = vld [vmem:[#allocation5_spill] sm:$0xff] }
 0x1e0   :  { %v3261_v49 = vpop.f32.mrf.mxu0  ;;  %v3365_v57 = vpop.f32.mrf.mxu1 }
 0x1e1   :  { %2418 = vst.msk [vmem:[%s4860_s3 + $0x44] sm:$0xf] %vm2400_vm2, %v2870_v20  ;;  %v2172_v47 = vmax.f32 %v2123_v54, 0.0  ;;  %v2068_v21 = vmax.f32 %v1539_v41, %v1926_v19  ;;  %v4991_v54 = vld [vmem:[#allocation4_spill] sm:$0xff] }
 0x1e2   :  { %v1402_v22 = vpop.f32.mrf.mxu0  ;;  %v1931_v16 = vpop.f32.mrf.mxu1  ;;  %v4993_v41 = vmax.f32 %v4991_v54, %v4992_v23 }
 0x1e3   :  { %v2871_v43 = vpack.c.bf16 %v2172_v47, %v2172_v47  ;;  %v2124_v44 = vadd.f32 %v4466_v62, %v2068_v21  ;;  %v1540_v8 = vmax.f32 %v4984_v7, %v1402_v22 }
 0x1e4   :  { %v3264_v42 = vpop.f32.mrf.mxu0  ;;  %v3368_v48 = vpop.f32.mrf.mxu1 }
 0x1e5   :  { %2419 = vst.msk [vmem:[%s4860_s3 + $0x48] sm:$0xf] %vm2400_vm2, %v2871_v43  ;;  %v2173_v4 = vmax.f32 %v2124_v44, 0.0  ;;  %v2069_v26 = vmax.f32 %v1540_v8, %v1931_v16  ;;  %v4994_v8 = vld [vmem:[#allocation6_spill] sm:$0xff]  ;;  %v4995_v42 = vld [vmem:[#allocation7_spill] sm:$0xff] }
 0x1e6   :  { %v1405_v27 = vpop.f32.mrf.mxu0  ;;  %v1934_v34 = vpop.f32.mrf.mxu1  ;;  %v4996_v48 = vmax.f32 %v4994_v8, %v4995_v42 }
 0x1e7   :  { %v2872_v36 = vpack.c.bf16 %v2173_v4, %v2173_v4  ;;  %v2125_v0 = vadd.f32 %v4466_v62, %v2069_v26  ;;  %v1541_v58 = vmax.f32 %v4985_v11, %v1405_v27 }
 0x1e8   :  { %v3265_v56 = vpop.f32.mrf.mxu0  ;;  %v3369_v17 = vpop.f32.mrf.mxu1 }
 0x1e9   :  { %2420 = vst.msk [vmem:[%s4860_s3 + $0x4c] sm:$0xf] %vm2400_vm2, %v2872_v36  ;;  %v2174_v50 = vmax.f32 %v2125_v0, 0.0  ;;  %v2070_v51 = vmax.f32 %v1541_v58, %v1934_v34  ;;  %v4997_v17 = vld [vmem:[#allocation8_spill] sm:$0xff] }
 0x1ea   :  { %v1410_v59 = vpop.f32.mrf.mxu0  ;;  %v1939_v28 = vpop.f32.mrf.mxu1 }
 0x1eb   :  { %v2873_v18 = vpack.c.bf16 %v2174_v50, %v2174_v50  ;;  %v2126_v45 = vadd.f32 %v4466_v62, %v2070_v51  ;;  %v1542_v40 = vmax.f32 %v4986_v46, %v1410_v59  ;;  %v4998_v50 = vld [vmem:[#allocation9_spill] sm:$0xff] }
 0x1ec   :  { %v3268_v37 = vpop.f32.mrf.mxu0  ;;  %v3372_v9 = vpop.f32.mrf.mxu1  ;;  %v4999_v51 = vmax.f32 %v4997_v17, %v4998_v50 }
 0x1ed   :  { %2421 = vst.msk [vmem:[%s4860_s3 + $0x50] sm:$0xf] %vm2400_vm2, %v2873_v18  ;;  %v2175_v14 = vmax.f32 %v2126_v45, 0.0  ;;  %v2071_v31 = vmax.f32 %v1542_v40, %v1939_v28 }
 0x1ee   :  { %v1413_v32 = vpop.f32.mrf.mxu0  ;;  %v1942_v15 = vpop.f32.mrf.mxu1 }
 0x1ef   :  { %v2874_v60 = vpack.c.bf16 %v2175_v14, %v2175_v14  ;;  %v2127_v61 = vadd.f32 %v4466_v62, %v2071_v31  ;;  %v1543_v1 = vmax.f32 %v4987_v33, %v1413_v32  ;;  %v5000_v31 = vld [vmem:[#allocation10_spill] sm:$0xff]  ;;  %v5001_v32 = vld [vmem:[#allocation11_spill] sm:$0xff] }
 0x1f0   :  { %v3269_v5 = vpop.f32.mrf.mxu0  ;;  %v3373_v63 = vpop.f32.mrf.mxu1 }
 0x1f1   :  { %2422 = vst.msk [vmem:[%s4860_s3 + $0x54] sm:$0xf] %vm2400_vm2, %v2874_v60  ;;  %v2176_v6 = vmax.f32 %v2127_v61, 0.0  ;;  %v2072_v29 = vmax.f32 %v1543_v1, %v1942_v15  ;;  %v5002_v15 = vmax.f32 %v5000_v31, %v5001_v32 }
 0x1f2   :  { %v1418_v55 = vpop.f32.mrf.mxu0  ;;  %v1947_v2 = vpop.f32.mrf.mxu1 }
 0x1f3   :  { %v2875_v3 = vpack.c.bf16 %v2176_v6, %v2176_v6  ;;  %v2128_v30 = vadd.f32 %v4466_v62, %v2072_v29  ;;  %v1544_v24 = vmax.f32 %v4990_v10, %v1418_v55 }
 0x1f4   :  { %v3272_v52 = vpop.f32.mrf.mxu0  ;;  %v3376_v13 = vpop.f32.mrf.mxu1 }
 0x1f5   :  { %2423 = vst.msk [vmem:[%s4860_s3 + $0x58] sm:$0xf] %vm2400_vm2, %v2875_v3  ;;  %v2177_v25 = vmax.f32 %v2128_v30, 0.0  ;;  %v2073_v12 = vmax.f32 %v1544_v24, %v1947_v2  ;;  %v5003_v2 = vld [vmem:[#allocation12_spill] sm:$0xff]  ;;  %v5004_v3 = vld [vmem:[#allocation13_spill] sm:$0xff] }
 0x1f6   :  { %v1421_v39 = vpop.f32.mrf.mxu0  ;;  %v1950_v53 = vpop.f32.mrf.mxu1  ;;  %v5005_v30 = vmax.f32 %v5003_v2, %v5004_v3 }
 0x1f7   :  { %v2876_v19 = vpack.c.bf16 %v2177_v25, %v2177_v25  ;;  %v2129_v20 = vadd.f32 %v4466_v62, %v2073_v12  ;;  %v1545_v49 = vmax.f32 %v4993_v41, %v1421_v39 }
 0x1f8   :  { %v3273_v57 = vpop.f32.mrf.mxu0  ;;  %v3377_v47 = vpop.f32.mrf.mxu1 }
 0x1f9   :  { %2424 = vst.msk [vmem:[%s4860_s3 + $0x5c] sm:$0xf] %vm2400_vm2, %v2876_v19  ;;  %v2178_v21 = vmax.f32 %v2129_v20, 0.0  ;;  %v2074_v22 = vmax.f32 %v1545_v49, %v1950_v53  ;;  %v5006_v53 = vld [vmem:[#allocation14_spill] sm:$0xff]  ;;  %v5007_v19 = vld [vmem:[#allocation15_spill] sm:$0xff] }
 0x1fa   :  { %v1426_v16 = vpop.f32.mrf.mxu0  ;;  %v1955_v43 = vpop.f32.mrf.mxu1  ;;  %v5008_v20 = vmax.f32 %v5006_v53, %v5007_v19 }
 0x1fb   :  { %v2877_v44 = vpack.c.bf16 %v2178_v21, %v2178_v21  ;;  %v2130_v7 = vadd.f32 %v4466_v62, %v2074_v22  ;;  %v1546_v4 = vmax.f32 %v4996_v48, %v1426_v16 }
 0x1fc   :  { %v3276_v26 = vpop.f32.mrf.mxu0  ;;  %v3380_v27 = vpop.f32.mrf.mxu1 }
 0x1fd   :  { %2425 = vst.msk [vmem:[%s4860_s3 + $0x60] sm:$0xf] %vm2400_vm2, %v2877_v44  ;;  %v2179_v34 = vmax.f32 %v2130_v7, 0.0  ;;  %v2075_v36 = vmax.f32 %v1546_v4, %v1955_v43  ;;  %v5009_v43 = vld [vmem:[#allocation16_spill] sm:$0xff]  ;;  %v5010_v44 = vld [vmem:[#allocation17_spill] sm:$0xff] }
 0x1fe   :  { %v1429_v0 = vpop.f32.mrf.mxu0  ;;  %v1958_v11 = vpop.f32.mrf.mxu1  ;;  %v5011_v7 = vmax.f32 %v5009_v43, %v5010_v44 }
 0x1ff   :  { %v2878_v58 = vpack.c.bf16 %v2179_v34, %v2179_v34  ;;  %v2131_v56 = vadd.f32 %v4466_v62, %v2075_v36  ;;  %v1547_v59 = vmax.f32 %v4999_v51, %v1429_v0 }
 0x200   :  { %v3277_v28 = vpop.f32.mrf.mxu0  ;;  %v3381_v18 = vpop.f32.mrf.mxu1 }
 0x201   :  { %2426 = vst.msk [vmem:[%s4860_s3 + $0x64] sm:$0xf] %vm2400_vm2, %v2878_v58  ;;  %v2180_v45 = vmax.f32 %v2131_v56, 0.0  ;;  %v2076_v46 = vmax.f32 %v1547_v59, %v1958_v11  ;;  %v5012_v11 = vld [vmem:[#allocation18_spill] sm:$0xff]  ;;  %v5013_v58 = vld [vmem:[#allocation19_spill] sm:$0xff] }
 0x202   :  { %v1434_v40 = vpop.f32.mrf.mxu0  ;;  %v1963_v37 = vpop.f32.mrf.mxu1  ;;  %v5014_v56 = vmax.f32 %v5012_v11, %v5013_v58 }
 0x203   :  { %v2879_v9 = vpack.c.bf16 %v2180_v45, %v2180_v45  ;;  %v2132_v14 = vadd.f32 %v4466_v62, %v2076_v46  ;;  %v1548_v60 = vmax.f32 %v5002_v15, %v1434_v40 }
 0x204   :  { %v3280_v61 = vpop.f32.mrf.mxu0  ;;  %v3384_v33 = vpop.f32.mrf.mxu1 }
 0x205   :  { %2427 = vst.msk [vmem:[%s4860_s3 + $0x68] sm:$0xf] %vm2400_vm2, %v2879_v9  ;;  %v2181_v1 = vmax.f32 %v2132_v14, 0.0  ;;  %v2077_v5 = vmax.f32 %v1548_v60, %v1963_v37  ;;  %v5015_v37 = vld [vmem:[#allocation20_spill] sm:$0xff]  ;;  %v5016_v9 = vld [vmem:[#allocation21_spill] sm:$0xff] }
 0x206   :  { %v1437_v63 = vpop.f32.mrf.mxu0  ;;  %v1966_v6 = vpop.f32.mrf.mxu1  ;;  %v5017_v14 = vmax.f32 %v5015_v37, %v5016_v9 }
 0x207   :  { %v2880_v29 = vpack.c.bf16 %v2181_v1, %v2181_v1  ;;  %v2133_v55 = vadd.f32 %v4466_v62, %v2077_v5  ;;  %v1549_v35 = vmax.f32 %v5005_v30, %v1437_v63 }
 0x208   :  { %v3281_v38 = vpop.f32.mrf.mxu0  ;;  %v3385_v10 = vpop.f32.mrf.mxu1 }
 0x209   :  { %2428 = vst.msk [vmem:[%s4860_s3 + $0x6c] sm:$0xf] %vm2400_vm2, %v2880_v29  ;;  %v2182_v24 = vmax.f32 %v2133_v55, 0.0  ;;  %v2078_v52 = vmax.f32 %v1549_v35, %v1966_v6  ;;  %v5018_v6 = vld [vmem:[#allocation22_spill] sm:$0xff]  ;;  %v5019_v29 = vld [vmem:[#allocation23_spill] sm:$0xff] }
 0x20a   :  { %v1442_v13 = vpop.f32.mrf.mxu0  ;;  %v1971_v25 = vpop.f32.mrf.mxu1  ;;  %v5020_v55 = vmax.f32 %v5018_v6, %v5019_v29 }
 0x20b   :  { %v2881_v12 = vpack.c.bf16 %v2182_v24, %v2182_v24  ;;  %v2134_v39 = vadd.f32 %v4466_v62, %v2078_v52  ;;  %v1550_v54 = vmax.f32 %v5008_v20, %v1442_v13 }
 0x20c   :  { %v3284_v23 = vpop.f32.mrf.mxu0  ;;  %v3388_v41 = vpop.f32.mrf.mxu1 }
 0x20d   :  { %2429 = vst.msk [vmem:[%s4860_s3 + $0x70] sm:$0xf] %vm2400_vm2, %v2881_v12  ;;  %v2183_v49 = vmax.f32 %v2134_v39, 0.0  ;;  %v2079_v57 = vmax.f32 %v1550_v54, %v1971_v25  ;;  %v5021_v25 = vld [vmem:[#allocation24_spill] sm:$0xff]  ;;  %v5022_v12 = vld [vmem:[#allocation25_spill] sm:$0xff] }
 0x20e   :  { %v1445_v47 = vpop.f32.mrf.mxu0  ;;  %v1974_v21 = vpop.f32.mrf.mxu1  ;;  %v5023_v39 = vmax.f32 %v5021_v25, %v5022_v12 }
 0x20f   :  { %v2882_v22 = vpack.c.bf16 %v2183_v49, %v2183_v49  ;;  %v2135_v16 = vadd.f32 %v4466_v62, %v2079_v57  ;;  %v1551_v8 = vmax.f32 %v5011_v7, %v1445_v47 }
 0x210   :  { %v3285_v42 = vpop.f32.mrf.mxu0  ;;  %v3389_v48 = vpop.f32.mrf.mxu1 }
 0x211   :  { %2430 = vst.msk [vmem:[%s4860_s3 + $0x74] sm:$0xf] %vm2400_vm2, %v2882_v22  ;;  %v2184_v4 = vmax.f32 %v2135_v16, 0.0  ;;  %v2080_v26 = vmax.f32 %v1551_v8, %v1974_v21  ;;  %v5024_v21 = vld [vmem:[#allocation26_spill] sm:$0xff]  ;;  %v5025_v22 = vld [vmem:[#allocation27_spill] sm:$0xff] }
 0x212   :  { %v1450_v27 = vpop.f32.mrf.mxu0  ;;  %v1979_v34 = vpop.f32.mrf.mxu1  ;;  %v5026_v16 = vmax.f32 %v5024_v21, %v5025_v22 }
 0x213   :  { %v2883_v36 = vpack.c.bf16 %v2184_v4, %v2184_v4  ;;  %v2136_v0 = vadd.f32 %v4466_v62, %v2080_v26  ;;  %v1552_v17 = vmax.f32 %v5014_v56, %v1450_v27 }
 0x214   :  { %v3288_v50 = vpop.f32.mrf.mxu0  ;;  %v3392_v51 = vpop.f32.mrf.mxu1 }
 0x215   :  { %2431 = vst.msk [vmem:[%s4860_s3 + $0x78] sm:$0xf] %vm2400_vm2, %v2883_v36  ;;  %v2185_v59 = vmax.f32 %v2136_v0, 0.0  ;;  %v2081_v28 = vmax.f32 %v1552_v17, %v1979_v34  ;;  %v5027_v34 = vld [vmem:[#allocation28_spill] sm:$0xff]  ;;  %v5028_v36 = vld [vmem:[#allocation29_spill] sm:$0xff] }
 0x216   :  { %v1453_v18 = vpop.f32.mrf.mxu0  ;;  %v1982_v45 = vpop.f32.mrf.mxu1  ;;  %v5029_v0 = vmax.f32 %v5027_v34, %v5028_v36 }
 0x217   :  { %v2884_v46 = vpack.c.bf16 %v2185_v59, %v2185_v59  ;;  %v2137_v40 = vadd.f32 %v4466_v62, %v2081_v28  ;;  %v1553_v31 = vmax.f32 %v5017_v14, %v1453_v18 }
 0x218   :  { %v3289_v32 = vpop.f32.mrf.mxu0  ;;  %v3393_v15 = vpop.f32.mrf.mxu1 }
 0x219   :  { %2432 = vst.msk [vmem:[%s4860_s3 + $0x7c] sm:$0xf] %vm2400_vm2, %v2884_v46  ;;  %v2186_v60 = vmax.f32 %v2137_v40, 0.0  ;;  %v2082_v61 = vmax.f32 %v1553_v31, %v1982_v45  ;;  %v5030_v45 = vld [vmem:[#allocation30_spill] sm:$0xff]  ;;  %v5031_v46 = vld [vmem:[#allocation31_spill] sm:$0xff] }
 0x21a   :  { %v1458_v33 = vpop.f32.mrf.mxu0  ;;  %v1987_v1 = vpop.f32.mrf.mxu1  ;;  %v5032_v40 = vmax.f32 %v5030_v45, %v5031_v46 }
 0x21b   :  { %v2885_v5 = vpack.c.bf16 %v2186_v60, %v2186_v60  ;;  %v2138_v63 = vadd.f32 %v4466_v62, %v2082_v61  ;;  %v1554_v2 = vmax.f32 %v5020_v55, %v1458_v33 }
 0x21c   :  { %v3292_v3 = vpop.f32.mrf.mxu0  ;;  %v3396_v30 = vpop.f32.mrf.mxu1 }
 0x21d   :  { %2433 = vst.msk [vmem:[%s4860_s3 + $0x80] sm:$0xf] %vm2400_vm2, %v2885_v5  ;;  %v2187_v35 = vmax.f32 %v2138_v63, 0.0  ;;  %v2083_v38 = vmax.f32 %v1554_v2, %v1987_v1  ;;  %v5033_v1 = vld [vmem:[#allocation32_spill] sm:$0xff]  ;;  %v5034_v5 = vld [vmem:[#allocation33_spill] sm:$0xff] }
 0x21e   :  { %v1461_v10 = vpop.f32.mrf.mxu0  ;;  %v1990_v24 = vpop.f32.mrf.mxu1  ;;  %v5035_v63 = vmax.f32 %v5033_v1, %v5034_v5 }
 0x21f   :  { %v2886_v52 = vpack.c.bf16 %v2187_v35, %v2187_v35  ;;  %v2139_v13 = vadd.f32 %v4466_v62, %v2083_v38  ;;  %v1555_v53 = vmax.f32 %v5023_v39, %v1461_v10 }
 0x220   :  { %v3293_v19 = vpop.f32.mrf.mxu0  ;;  %v3397_v20 = vpop.f32.mrf.mxu1 }
 0x221   :  { %2434 = vst.msk [vmem:[%s4860_s3 + $0x84] sm:$0xf] %vm2400_vm2, %v2886_v52  ;;  %v2188_v54 = vmax.f32 %v2139_v13, 0.0  ;;  %v2084_v23 = vmax.f32 %v1555_v53, %v1990_v24  ;;  %v5036_v24 = vld [vmem:[#allocation34_spill] sm:$0xff]  ;;  %v5037_v52 = vld [vmem:[#allocation35_spill] sm:$0xff] }
 0x222   :  { %v1466_v41 = vpop.f32.mrf.mxu0  ;;  %v1995_v49 = vpop.f32.mrf.mxu1  ;;  %v5038_v13 = vmax.f32 %v5036_v24, %v5037_v52 }
 0x223   :  { %v2887_v57 = vpack.c.bf16 %v2188_v54, %v2188_v54  ;;  %v2140_v47 = vadd.f32 %v4466_v62, %v2084_v23  ;;  %v1556_v43 = vmax.f32 %v5026_v16, %v1466_v41 }
 0x224   :  { %v3296_v44 = vpop.f32.mrf.mxu0  ;;  %v3400_v7 = vpop.f32.mrf.mxu1 }
 0x225   :  { %2435 = vst.msk [vmem:[%s4860_s3 + $0x88] sm:$0xf] %vm2400_vm2, %v2887_v57  ;;  %v2189_v8 = vmax.f32 %v2140_v47, 0.0  ;;  %v2085_v42 = vmax.f32 %v1556_v43, %v1995_v49  ;;  %v5039_v49 = vld [vmem:[#allocation36_spill] sm:$0xff]  ;;  %v5040_v57 = vld [vmem:[#allocation37_spill] sm:$0xff] }
 0x226   :  { %v1469_v48 = vpop.f32.mrf.mxu0  ;;  %v1998_v4 = vpop.f32.mrf.mxu1  ;;  %v5041_v47 = vmax.f32 %v5039_v49, %v5040_v57 }
 0x227   :  { %v2888_v26 = vpack.c.bf16 %v2189_v8, %v2189_v8  ;;  %v2141_v27 = vadd.f32 %v4466_v62, %v2085_v42  ;;  %v1557_v11 = vmax.f32 %v5029_v0, %v1469_v48 }
 0x228   :  { %v3297_v58 = vpop.f32.mrf.mxu0  ;;  %v3401_v56 = vpop.f32.mrf.mxu1 }
 0x229   :  { %2436 = vst.msk [vmem:[%s4860_s3 + $0x8c] sm:$0xf] %vm2400_vm2, %v2888_v26  ;;  %v2190_v17 = vmax.f32 %v2141_v27, 0.0  ;;  %v2086_v50 = vmax.f32 %v1557_v11, %v1998_v4  ;;  %v5042_v4 = vld [vmem:[#allocation38_spill] sm:$0xff]  ;;  %v5043_v26 = vld [vmem:[#allocation39_spill] sm:$0xff] }
 0x22a   :  { %v1474_v51 = vpop.f32.mrf.mxu0  ;;  %v2003_v59 = vpop.f32.mrf.mxu1  ;;  %v5044_v27 = vmax.f32 %v5042_v4, %v5043_v26 }
 0x22b   :  { %v2889_v28 = vpack.c.bf16 %v2190_v17, %v2190_v17  ;;  %v2142_v18 = vadd.f32 %v4466_v62, %v2086_v50  ;;  %v1558_v37 = vmax.f32 %v5032_v40, %v1474_v51 }
 0x22c   :  { %v3300_v9 = vpop.f32.mrf.mxu0  ;;  %v3404_v14 = vpop.f32.mrf.mxu1 }
 0x22d   :  { %2437 = vst.msk [vmem:[%s4860_s3 + $0x90] sm:$0xf] %vm2400_vm2, %v2889_v28  ;;  %v2191_v31 = vmax.f32 %v2142_v18, 0.0  ;;  %v2087_v32 = vmax.f32 %v1558_v37, %v2003_v59  ;;  %v5045_v59 = vld [vmem:[#allocation40_spill] sm:$0xff]  ;;  %v5046_v28 = vld [vmem:[#allocation41_spill] sm:$0xff] }
 0x22e   :  { %v1477_v15 = vpop.f32.mrf.mxu0  ;;  %v2006_v60 = vpop.f32.mrf.mxu1  ;;  %v5047_v18 = vmax.f32 %v5045_v59, %v5046_v28 }
 0x22f   :  { %v2890_v61 = vpack.c.bf16 %v2191_v31, %v2191_v31  ;;  %v2143_v33 = vadd.f32 %v4466_v62, %v2087_v32  ;;  %v1559_v6 = vmax.f32 %v5035_v63, %v1477_v15 }
 0x230   :  { %v3301_v29 = vpop.f32.mrf.mxu0  ;;  %v3405_v55 = vpop.f32.mrf.mxu1 }
 0x231   :  { %2438 = vst.msk [vmem:[%s4860_s3 + $0x94] sm:$0xf] %vm2400_vm2, %v2890_v61  ;;  %v2192_v2 = vmax.f32 %v2143_v33, 0.0  ;;  %v2088_v3 = vmax.f32 %v1559_v6, %v2006_v60  ;;  %v5048_v60 = vld [vmem:[#allocation42_spill] sm:$0xff]  ;;  %v5049_v61 = vld [vmem:[#allocation43_spill] sm:$0xff] }
 0x232   :  { %v1482_v30 = vpop.f32.mrf.mxu0  ;;  %v2011_v35 = vpop.f32.mrf.mxu1  ;;  %v5050_v33 = vmax.f32 %v5048_v60, %v5049_v61 }
 0x233   :  { %v2891_v38 = vpack.c.bf16 %v2192_v2, %v2192_v2  ;;  %v2144_v10 = vadd.f32 %v4466_v62, %v2088_v3  ;;  %v1560_v25 = vmax.f32 %v5038_v13, %v1482_v30 }
 0x234   :  { %v3304_v12 = vpop.f32.mrf.mxu0  ;;  %v3408_v39 = vpop.f32.mrf.mxu1 }
 0x235   :  { %2439 = vst.msk [vmem:[%s4860_s3 + $0x98] sm:$0xf] %vm2400_vm2, %v2891_v38  ;;  %v2193_v53 = vmax.f32 %v2144_v10, 0.0  ;;  %v2089_v19 = vmax.f32 %v1560_v25, %v2011_v35  ;;  %v5051_v35 = vld [vmem:[#allocation44_spill] sm:$0xff]  ;;  %v5052_v38 = vld [vmem:[#allocation45_spill] sm:$0xff] }
 0x236   :  { %v1485_v20 = vpop.f32.mrf.mxu0  ;;  %v2014_v54 = vpop.f32.mrf.mxu1  ;;  %v5053_v10 = vmax.f32 %v5051_v35, %v5052_v38 }
 0x237   :  { %v2892_v23 = vpack.c.bf16 %v2193_v53, %v2193_v53  ;;  %v2145_v41 = vadd.f32 %v4466_v62, %v2089_v19  ;;  %v1561_v21 = vmax.f32 %v5041_v47, %v1485_v20 }
 0x238   :  { %v3305_v22 = vpop.f32.mrf.mxu0  ;;  %v3409_v16 = vpop.f32.mrf.mxu1 }
 0x239   :  { %2440 = vst.msk [vmem:[%s4860_s3 + $0x9c] sm:$0xf] %vm2400_vm2, %v2892_v23  ;;  %v2194_v43 = vmax.f32 %v2145_v41, 0.0  ;;  %v2090_v44 = vmax.f32 %v1561_v21, %v2014_v54  ;;  %v5054_v54 = vld [vmem:[#allocation46_spill] sm:$0xff]  ;;  %v5055_v23 = vld [vmem:[#allocation47_spill] sm:$0xff] }
 0x23a   :  { %v1490_v7 = vpop.f32.mrf.mxu0  ;;  %v2019_v8 = vpop.f32.mrf.mxu1  ;;  %v5056_v41 = vmax.f32 %v5054_v54, %v5055_v23 }
 0x23b   :  { %v2893_v42 = vpack.c.bf16 %v2194_v43, %v2194_v43  ;;  %v2146_v48 = vadd.f32 %v4466_v62, %v2090_v44  ;;  %v1562_v34 = vmax.f32 %v5044_v27, %v1490_v7 }
 0x23c   :  { %v3308_v36 = vpop.f32.mrf.mxu0  ;;  %v3412_v0 = vpop.f32.mrf.mxu1 }
 0x23d   :  { %2441 = vst.msk [vmem:[%s4860_s3 + $0xa0] sm:$0xf] %vm2400_vm2, %v2893_v42  ;;  %v2195_v11 = vmax.f32 %v2146_v48, 0.0  ;;  %v2091_v58 = vmax.f32 %v1562_v34, %v2019_v8  ;;  %v5057_v8 = vld [vmem:[#allocation48_spill] sm:$0xff]  ;;  %v5058_v42 = vld [vmem:[#allocation49_spill] sm:$0xff] }
 0x23e   :  { %v1493_v56 = vpop.f32.mrf.mxu0  ;;  %v2022_v17 = vpop.f32.mrf.mxu1  ;;  %v5059_v48 = vmax.f32 %v5057_v8, %v5058_v42 }
 0x23f   :  { %v2894_v50 = vpack.c.bf16 %v2195_v11, %v2195_v11  ;;  %v2147_v51 = vadd.f32 %v4466_v62, %v2091_v58  ;;  %v1563_v45 = vmax.f32 %v5047_v18, %v1493_v56 }
 0x240   :  { %v3309_v46 = vpop.f32.mrf.mxu0  ;;  %v3413_v40 = vpop.f32.mrf.mxu1 }
 0x241   :  { %2442 = vst.msk [vmem:[%s4860_s3 + $0xa4] sm:$0xf] %vm2400_vm2, %v2894_v50  ;;  %v2196_v37 = vmax.f32 %v2147_v51, 0.0  ;;  %v2092_v9 = vmax.f32 %v1563_v45, %v2022_v17  ;;  %v5060_v17 = vld [vmem:[#allocation50_spill] sm:$0xff]  ;;  %v5061_v50 = vld [vmem:[#allocation51_spill] sm:$0xff] }
 0x242   :  { %v1498_v14 = vpop.f32.mrf.mxu0  ;;  %v2027_v31 = vpop.f32.mrf.mxu1  ;;  %v5062_v51 = vmax.f32 %v5060_v17, %v5061_v50 }
 0x243   :  { %v2895_v32 = vpack.c.bf16 %v2196_v37, %v2196_v37  ;;  %v2148_v15 = vadd.f32 %v4466_v62, %v2092_v9  ;;  %v1564_v1 = vmax.f32 %v5050_v33, %v1498_v14 }
 0x244   :  { %v3312_v5 = vpop.f32.mrf.mxu0  ;;  %v3416_v63 = vpop.f32.mrf.mxu1 }
 0x245   :  { %2443 = vst.msk [vmem:[%s4860_s3 + $0xa8] sm:$0xf] %vm2400_vm2, %v2895_v32  ;;  %v2197_v6 = vmax.f32 %v2148_v15, 0.0  ;;  %v2093_v29 = vmax.f32 %v1564_v1, %v2027_v31 }
 0x246   :  { %v1501_v55 = vpop.f32.mrf.mxu0  ;;  %v2030_v2 = vpop.f32.mrf.mxu1 }
 0x247   :  { %v2896_v3 = vpack.c.bf16 %v2197_v6, %v2197_v6  ;;  %v2149_v30 = vadd.f32 %v4466_v62, %v2093_v29  ;;  %v1565_v24 = vmax.f32 %v5053_v10, %v1501_v55 }
 0x248   :  { %v3313_v52 = vpop.f32.mrf.mxu0  ;;  %v3417_v13 = vpop.f32.mrf.mxu1 }
 0x249   :  { %2444 = vst.msk [vmem:[%s4860_s3 + $0xac] sm:$0xf] %vm2400_vm2, %v2896_v3  ;;  %v2198_v25 = vmax.f32 %v2149_v30, 0.0  ;;  %v2094_v12 = vmax.f32 %v1565_v24, %v2030_v2 }
 0x24a   :  { %v1506_v39 = vpop.f32.mrf.mxu0  ;;  %v2035_v53 = vpop.f32.mrf.mxu1 }
 0x24b   :  { %v2897_v19 = vpack.c.bf16 %v2198_v25, %v2198_v25  ;;  %v2150_v20 = vadd.f32 %v4466_v62, %v2094_v12  ;;  %v1566_v49 = vmax.f32 %v5056_v41, %v1506_v39 }
 0x24c   :  { %v3316_v57 = vpop.f32.mrf.mxu0  ;;  %v3420_v47 = vpop.f32.mrf.mxu1 }
 0x24d   :  { %2445 = vst.msk [vmem:[%s4860_s3 + $0xb0] sm:$0xf] %vm2400_vm2, %v2897_v19  ;;  %v2199_v21 = vmax.f32 %v2150_v20, 0.0  ;;  %v2095_v22 = vmax.f32 %v1566_v49, %v2035_v53 }
 0x24e   :  { %v1509_v16 = vpop.f32.mrf.mxu0  ;;  %v2038_v43 = vpop.f32.mrf.mxu1 }
 0x24f   :  { %v2898_v44 = vpack.c.bf16 %v2199_v21, %v2199_v21  ;;  %v2151_v7 = vadd.f32 %v4466_v62, %v2095_v22  ;;  %v1567_v4 = vmax.f32 %v5059_v48, %v1509_v16 }
 0x250   :  { %v3317_v26 = vpop.f32.mrf.mxu0  ;;  %v3421_v27 = vpop.f32.mrf.mxu1 }
 0x251   :  { %2446 = vst.msk [vmem:[%s4860_s3 + $0xb4] sm:$0xf] %vm2400_vm2, %v2898_v44  ;;  %v2200_v34 = vmax.f32 %v2151_v7, 0.0  ;;  %v2096_v36 = vmax.f32 %v1567_v4, %v2038_v43 }
 0x252   :  { %v1514_v0 = vpop.f32.mrf.mxu0  ;;  %v2043_v11 = vpop.f32.mrf.mxu1 }
 0x253   :  { %v2899_v58 = vpack.c.bf16 %v2200_v34, %v2200_v34  ;;  %v2152_v56 = vadd.f32 %v4466_v62, %v2096_v36  ;;  %v1568_v59 = vmax.f32 %v5062_v51, %v1514_v0 }
 0x254   :  { %v3320_v28 = vpop.f32.mrf.mxu0  ;;  %v3424_v18 = vpop.f32.mrf.mxu1 }
 0x255   :  { %2447 = vst.msk [vmem:[%s4860_s3 + $0xb8] sm:$0xf] %vm2400_vm2, %v2899_v58  ;;  %v2201_v45 = vmax.f32 %v2152_v56, 0.0  ;;  %v2097_v46 = vmax.f32 %v1568_v59, %v2043_v11 }
 0x256   :  { %v1517_v40 = vpop.f32.mrf.mxu0  ;;  %v2046_v37 = vpop.f32.mrf.mxu1 }
 0x257   :  { %v2900_v9 = vpack.c.bf16 %v2201_v45, %v2201_v45  ;;  %v2153_v14 = vadd.f32 %v4466_v62, %v2097_v46 }
 0x258   :  { %v3321_v31 = vpop.f32.mrf.mxu0  ;;  %v3425_v32 = vpop.f32.mrf.mxu1 }
 0x259   :  { %2448 = vst.msk [vmem:[%s4860_s3 + $0xbc] sm:$0xf] %vm2400_vm2, %v2900_v9  ;;  %v2202_v15 = vmax.f32 %v2153_v14, 0.0 }
 0x25b   :  { %v2901_v60 = vpack.c.bf16 %v2202_v15, %v2202_v15 }
 0x25d   :  { %2449 = vst.msk [vmem:[%s4860_s3 + $0xc0] sm:$0xf] %vm2400_vm2, %v2901_v60 }

// kernel: net_forward.4
= control target key start
LH: loop header
LB: loop body
LE: loop exit
PB: predicated region body
PF: predicated region fallthrough
CT: control target
= control target key end

     0   :  { %v1222_v0 = vmov 0   ;;  %vm168_vm0 = vcmask 261120   ;;  %vm952_vm1 = vcmask 109568   ;;  %vm965_vm2 = vcmask 106496   ;;  %s1692_s1 = inlined_call_operand.vmem [shape: bf16[160,14], index: 1, kind: input, shape index: {}]   ;;  %s1693_s0 = inlined_call_operand.vmem [shape: bf16[4,98,160], index: 0, kind: input, shape index: {}]   ;;  %s1694_s2 = inlined_call_operand.vmem [shape: f32[1,14], index: 2, kind: input, shape index: {}]   ;;  %s1695_s3 = inlined_call_operand.vmem [shape: bf16[98,14], index: 3, kind: output, shape index: {}]  }
   0x1   :  { %190 = vmatprep.subr.bf16.mxu0 %v1222_v0  ;;  %373 = vmatprep.subr.bf16.mxu1 %v1222_v0  ;;  %v1132_v1 = vld [vmem:[%s1692_s1 + $0x38] sm:$0xff]   ;;  %v1251_v2 = vld [vmem:[%s1692_s1 + $0x30] sm:$0xff]   ;;  %v1260_v3 = vld [vmem:[%s1692_s1 + $0x28] sm:$0xff]  }
   0x2   :  { %191 = vmatpush1.bf16.msra.mxu0 %v1132_v1  ;;  %374 = vmatpush1.bf16.msra.mxu1 %v1132_v1  ;;  %v1269_v4 = vld [vmem:[%s1692_s1 + $0x20] sm:$0xff]   ;;  %v1147_v6 = vld [vmem:[%s1693_s0 + $0x6c] ss:$8 sps:$4 sm:$0xff]   ;;  %v1285_v7 = vld [vmem:[%s1692_s1 + $0x18] sm:$0xff]  }
   0x3   :  { %192 = vmatprep.subr.bf16.mxu0 %v1222_v0  ;;  %375 = vmatprep.subr.bf16.mxu1 %v1222_v0  ;;  %v1144_v5 = vld [vmem:[%s1693_s0 + $0x4] ss:$8 sps:$4 sm:$0xff]   ;;  %v1295_v8 = vld [vmem:[%s1692_s1 + $0x10] sm:$0xff]   ;;  %v1142_v13 = vld [vmem:[%s1693_s0] ss:$8 sps:$4 sm:$0xff]  }
   0x4   :  { %995 = vmatprep.mubr.msk.bf16.mxu0 %vm168_vm0, %v1144_v5  ;;  %1029 = vmatprep.mubr.msk.bf16.mxu1 %vm168_vm0, %v1147_v6  ;;  %v1304_v9 = vld [vmem:[%s1692_s1 + $0x8] sm:$0xff]   ;;  %v1313_v10 = vld [vmem:[%s1692_s1] sm:$0xff]   ;;  %v1148_v15 = vld [vmem:[%s1693_s0 + $0x14] ss:$8 sps:$4 sm:$0xff]  }
   0x5   :  { %v1322_v11 = vld [vmem:[%s1692_s1 + $0x48] sm:$0xff]   ;;  %v1331_v12 = vld [vmem:[%s1692_s1 + $0x40] sm:$0xff]   ;;  %v1152_v17 = vld [vmem:[%s1693_s0 + $0x10] ss:$8 sps:$4 sm:$0xff]  }
   0x6   :  { %193 = vmatpush1.bf16.msra.mxu0 %v1251_v2  ;;  %376 = vmatpush1.bf16.msra.mxu1 %v1251_v2  ;;  %v1145_v14 = vld [vmem:[%s1693_s0 + $0x68] ss:$8 sps:$4 sm:$0xff]   ;;  %v1150_v16 = vld [vmem:[%s1693_s0 + $0x7c] ss:$8 sps:$4 sm:$0xff]   ;;  %v1153_v18 = vld [vmem:[%s1693_s0 + $0x78] ss:$8 sps:$4 sm:$0xff]  }
   0x7   :  { %194 = vmatprep.subr.bf16.mxu0 %v1222_v0  ;;  %377 = vmatprep.subr.bf16.mxu1 %v1222_v0  ;;  %v1154_v19 = vld [vmem:[%s1693_s0 + $0x24] ss:$8 sps:$4 sm:$0xff]   ;;  %v1158_v21 = vld [vmem:[%s1693_s0 + $0x20] ss:$8 sps:$4 sm:$0xff]   ;;  %v1160_v23 = vld [vmem:[%s1693_s0 + $0x34] ss:$8 sps:$4 sm:$0xff]  }
   0x8   :  { %v1156_v20 = vld [vmem:[%s1693_s0 + $0x8c] ss:$8 sps:$4 sm:$0xff]   ;;  %v1159_v22 = vld [vmem:[%s1693_s0 + $0x88] ss:$8 sps:$4 sm:$0xff]   ;;  %v1162_v24 = vld [vmem:[%s1693_s0 + $0x9c] ss:$8 sps:$4 sm:$0xff]  }
   0x9   :  { %v1164_v25 = vld [vmem:[%s1693_s0 + $0x30] ss:$8 sps:$4 sm:$0xff]   ;;  %v1166_v27 = vld [vmem:[%s1693_s0 + $0x44] ss:$8 sps:$4 sm:$0xff]   ;;  %v1170_v29 = vld [vmem:[%s1693_s0 + $0x40] ss:$8 sps:$4 sm:$0xff]  }
   0xa   :  { %195 = vmatpush1.bf16.msra.mxu0 %v1260_v3  ;;  %378 = vmatpush1.bf16.msra.mxu1 %v1260_v3  ;;  %v1165_v26 = vld [vmem:[%s1693_s0 + $0x98] ss:$8 sps:$4 sm:$0xff]   ;;  %v1168_v28 = vld [vmem:[%s1693_s0 + $0xac] ss:$8 sps:$4 sm:$0xff]   ;;  %v1171_v30 = vld [vmem:[%s1693_s0 + $0xa8] ss:$8 sps:$4 sm:$0xff]  }
   0xb   :  { %196 = vmatprep.subr.bf16.mxu0 %v1222_v0  ;;  %379 = vmatprep.subr.bf16.mxu1 %v1222_v0  ;;  %v1172_v31 = vld [vmem:[%s1693_s0 + $0x54] ss:$8 sps:$4 sm:$0xff]   ;;  %v47_v33 = vld [vmem:[%s1693_s0 + $0x60] sm:$0x11]  ;;  %v1014_v34 = vld [vmem:[%s1693_s0 + $0xc8] sm:$0x11] }
   0xc   :  { %v1174_v32 = vld [vmem:[%s1693_s0 + $0xbc] ss:$8 sps:$4 sm:$0xff]   ;;  %v1176_v35 = vld [vmem:[%s1693_s0 + $0x50] ss:$8 sps:$4 sm:$0xff]   ;;  %v984_v37 = vcombine.high %v47_v33, %v47_v33  ;;  %v1028_v38 = vcombine.high %v1014_v34, %v1014_v34  ;;  %v983_v39 = vcombine.low %v47_v33, %v47_v33  ;;  %v1027_v40 = vcombine.low %v1014_v34, %v1014_v34  ;;  %v1190_v46 = vld [vmem:[%s1693_s0 + $0x14c] ss:$8 sps:$4 sm:$0xff]  }
   0xd   :  { %v1177_v36 = vld [vmem:[%s1693_s0 + $0xb8] ss:$8 sps:$4 sm:$0xff]   ;;  %v1184_v41 = vld [vmem:[%s1693_s0 + $0xd4] ss:$8 sps:$4 sm:$0xff]   ;;  %v1188_v45 = vld [vmem:[%s1693_s0 + $0xe4] ss:$8 sps:$4 sm:$0xff]  }
   0xe   :  { %197 = vmatpush1.bf16.msra.mxu0 %v1269_v4  ;;  %380 = vmatpush1.bf16.msra.mxu1 %v1269_v4  ;;  %v1187_v42 = vld [vmem:[%s1693_s0 + $0x13c] ss:$8 sps:$4 sm:$0xff]   ;;  %v1182_v43 = vld [vmem:[%s1693_s0 + $0xd0] ss:$8 sps:$4 sm:$0xff]   ;;  %v1192_v47 = vld [vmem:[%s1693_s0 + $0xe0] ss:$8 sps:$4 sm:$0xff]  }
   0xf   :  { %198 = vmatprep.subr.bf16.mxu0 %v1222_v0  ;;  %381 = vmatprep.subr.bf16.mxu1 %v1222_v0  ;;  %v1185_v44 = vld [vmem:[%s1693_s0 + $0x138] ss:$8 sps:$4 sm:$0xff]   ;;  %v1193_v48 = vld [vmem:[%s1693_s0 + $0x148] ss:$8 sps:$4 sm:$0xff]   ;;  %v1194_v49 = vld [vmem:[%s1693_s0 + $0xf4] ss:$8 sps:$4 sm:$0xff]  }
  0x10   :  { %v1196_v50 = vld [vmem:[%s1693_s0 + $0x15c] ss:$8 sps:$4 sm:$0xff]   ;;  %v1198_v51 = vld [vmem:[%s1693_s0 + $0xf0] ss:$8 sps:$4 sm:$0xff]   ;;  %v1202_v54 = vld [vmem:[%s1693_s0 + $0x16c] ss:$8 sps:$4 sm:$0xff]  }
  0x11   :  { %v1199_v52 = vld [vmem:[%s1693_s0 + $0x158] ss:$8 sps:$4 sm:$0xff]   ;;  %v1200_v53 = vld [vmem:[%s1693_s0 + $0x104] ss:$8 sps:$4 sm:$0xff]   ;;  %v1205_v56 = vld [vmem:[%s1693_s0 + $0x168] ss:$8 sps:$4 sm:$0xff]  }
  0x12   :  { %199 = vmatpush1.bf16.msra.mxu0 %v1285_v7  ;;  %382 = vmatpush1.bf16.msra.mxu1 %v1285_v7  ;;  %v1204_v55 = vld [vmem:[%s1693_s0 + $0x100] ss:$8 sps:$4 sm:$0xff]   ;;  %v1206_v57 = vld [vmem:[%s1693_s0 + $0x114] ss:$8 sps:$4 sm:$0xff]   ;;  %v1210_v59 = vld [vmem:[%s1693_s0 + $0x110] ss:$8 sps:$4 sm:$0xff]  }
  0x13   :  { %200 = vmatprep.subr.bf16.mxu0 %v1222_v0  ;;  %383 = vmatprep.subr.bf16.mxu1 %v1222_v0  ;;  %v1208_v58 = vld [vmem:[%s1693_s0 + $0x17c] ss:$8 sps:$4 sm:$0xff]   ;;  %v1211_v60 = vld [vmem:[%s1693_s0 + $0x178] ss:$8 sps:$4 sm:$0xff]   ;;  %v1214_v62 = vld [vmem:[%s1693_s0 + $0x18c] ss:$8 sps:$4 sm:$0xff]  }
  0x14   :  { %v1212_v61 = vld [vmem:[%s1693_s0 + $0x124] ss:$8 sps:$4 sm:$0xff]   ;;  %v1048_v63 = vld [vmem:[%s1693_s0 + $0x130] sm:$0x11] }
  0x15   :  { %v1061_v5 = vcombine.low %v1048_v63, %v1048_v63 }
  0x16   :  { %201 = vmatpush1.bf16.msra.mxu0 %v1295_v8  ;;  %384 = vmatpush1.bf16.msra.mxu1 %v1295_v8 }
  0x17   :  { %202 = vmatprep.subr.bf16.mxu0 %v1222_v0  ;;  %385 = vmatprep.subr.bf16.mxu1 %v1222_v0 }
  0x1a   :  { %203 = vmatpush1.bf16.msra.mxu0 %v1304_v9  ;;  %386 = vmatpush1.bf16.msra.mxu1 %v1304_v9 }
  0x1b   :  { %204 = vmatprep.subr.bf16.mxu0 %v1222_v0  ;;  %387 = vmatprep.subr.bf16.mxu1 %v1222_v0 }
  0x1e   :  { %205 = vmatpush1.bf16.msra.mxu0 %v1313_v10  ;;  %388 = vmatpush1.bf16.msra.mxu1 %v1313_v10 }
  0x1f   :  { %218 = vmatprep.subr.bf16.mxu0 %v1222_v0  ;;  %401 = vmatprep.subr.bf16.mxu1 %v1222_v0 }
  0x22   :  { %219 = vmatpush2.bf16.msra.mxu0 %v1322_v11  ;;  %402 = vmatpush2.bf16.msra.mxu1 %v1322_v11 }
  0x23   :  { %220 = vmatprep.subr.bf16.mxu0 %v1222_v0  ;;  %403 = vmatprep.subr.bf16.mxu1 %v1222_v0 }
  0x26   :  { %221 = vmatpush2.bf16.msra.mxu0 %v1331_v12  ;;  %404 = vmatpush2.bf16.msra.mxu1 %v1331_v12 }
  0x27   :  { %569 = vmatprep.subr.bf16.mxu0 %v1222_v0  ;;  %765 = vmatprep.subr.bf16.mxu1 %v1222_v0 }
  0x29   :  { %223 = vmatmul.mubr.bf16.vlgmr.msra.gmra.mxu0 %v1142_v13  ;;  %406 = vmatmul.mubr.bf16.vlgmr.msra.gmra.mxu1 %v1145_v14 }
  0x2a   :  { %570 = vmatpush1.bf16.msra.mxu0 %v1132_v1  ;;  %766 = vmatpush1.bf16.msra.mxu1 %v1132_v1  ;;  %v1216_v1 = vld [vmem:[%s1693_s0 + $0x120] ss:$8 sps:$4 sm:$0xff]  }
  0x2b   :  { %571 = vmatprep.subr.bf16.mxu0 %v1222_v0  ;;  %996 = vmatprep.mubr.msk.bf16.mxu0 %vm168_vm0, %v1148_v15 }
  0x2c   :  { %1030 = vmatprep.mubr.msk.bf16.mxu1 %vm168_vm0, %v1150_v16  ;;  %767 = vmatprep.subr.bf16.mxu1 %v1222_v0 }
  0x2e   :  { %572 = vmatpush1.bf16.msra.mxu0 %v1251_v2  ;;  %768 = vmatpush1.bf16.msra.mxu1 %v1251_v2  ;;  %v1217_v2 = vld [vmem:[%s1693_s0 + $0x188] ss:$8 sps:$4 sm:$0xff]  }
  0x2f   :  { %573 = vmatprep.subr.bf16.mxu0 %v1222_v0  ;;  %769 = vmatprep.subr.bf16.mxu1 %v1222_v0 }
  0x31   :  { %231 = vmatmul.mubr.bf16.gmra.mxu0 %v1152_v17  ;;  %414 = vmatmul.mubr.bf16.gmra.mxu1 %v1153_v18 }
  0x32   :  { %574 = vmatpush1.bf16.msra.mxu0 %v1260_v3  ;;  %997 = vmatprep.mubr.msk.bf16.mxu0 %vm168_vm0, %v1154_v19 }
  0x33   :  { %1031 = vmatprep.mubr.msk.bf16.mxu1 %vm168_vm0, %v1156_v20  ;;  %770 = vmatpush1.bf16.msra.mxu1 %v1260_v3  ;;  %v1062_v3 = vcombine.high %v1048_v63, %v1048_v63 }
  0x34   :  { %575 = vmatprep.subr.bf16.mxu0 %v1222_v0  ;;  %771 = vmatprep.subr.bf16.mxu1 %v1222_v0 }
  0x36   :  { %576 = vmatpush1.bf16.msra.mxu0 %v1269_v4 }
  0x37   :  { %772 = vmatpush1.bf16.msra.mxu1 %v1269_v4  ;;  %577 = vmatprep.subr.bf16.mxu0 %v1222_v0 }
  0x38   :  { %773 = vmatprep.subr.bf16.mxu1 %v1222_v0 }
  0x39   :  { %239 = vmatmul.mubr.bf16.gmra.mxu0 %v1158_v21  ;;  %422 = vmatmul.mubr.bf16.gmra.mxu1 %v1159_v22 }
  0x3a   :  { %998 = vmatprep.mubr.msk.bf16.mxu0 %vm168_vm0, %v1160_v23  ;;  %1032 = vmatprep.mubr.msk.bf16.mxu1 %vm168_vm0, %v1162_v24 }
  0x3b   :  { %578 = vmatpush1.bf16.msra.mxu0 %v1285_v7  ;;  %774 = vmatpush1.bf16.msra.mxu1 %v1285_v7 }
  0x3c   :  { %579 = vmatprep.subr.bf16.mxu0 %v1222_v0  ;;  %775 = vmatprep.subr.bf16.mxu1 %v1222_v0 }
  0x3f   :  { %580 = vmatpush1.bf16.msra.mxu0 %v1295_v8  ;;  %776 = vmatpush1.bf16.msra.mxu1 %v1295_v8 }
  0x40   :  { %581 = vmatprep.subr.bf16.mxu0 %v1222_v0  ;;  %777 = vmatprep.subr.bf16.mxu1 %v1222_v0 }
  0x41   :  { %247 = vmatmul.mubr.bf16.gmra.mxu0 %v1164_v25  ;;  %430 = vmatmul.mubr.bf16.gmra.mxu1 %v1165_v26 }
  0x42   :  { %999 = vmatprep.mubr.msk.bf16.mxu0 %vm168_vm0, %v1166_v27  ;;  %1033 = vmatprep.mubr.msk.bf16.mxu1 %vm168_vm0, %v1168_v28 }
  0x43   :  { %582 = vmatpush1.bf16.msra.mxu0 %v1304_v9  ;;  %778 = vmatpush1.bf16.msra.mxu1 %v1304_v9 }
  0x44   :  { %583 = vmatprep.subr.bf16.mxu0 %v1222_v0  ;;  %779 = vmatprep.subr.bf16.mxu1 %v1222_v0 }
  0x47   :  { %584 = vmatpush1.bf16.msra.mxu0 %v1313_v10  ;;  %780 = vmatpush1.bf16.msra.mxu1 %v1313_v10 }
  0x48   :  { %597 = vmatprep.subr.bf16.mxu0 %v1222_v0  ;;  %793 = vmatprep.subr.bf16.mxu1 %v1222_v0 }
  0x49   :  { %255 = vmatmul.mubr.bf16.gmra.mxu0 %v1170_v29  ;;  %438 = vmatmul.mubr.bf16.gmra.mxu1 %v1171_v30 }
  0x4a   :  { %1000 = vmatprep.mubr.msk.bf16.mxu0 %vm168_vm0, %v1172_v31  ;;  %1034 = vmatprep.mubr.msk.bf16.mxu1 %vm168_vm0, %v1174_v32 }
  0x4b   :  { %598 = vmatpush2.bf16.msra.mxu0 %v1322_v11  ;;  %794 = vmatpush2.bf16.msra.mxu1 %v1322_v11 }
  0x4c   :  { %599 = vmatprep.subr.bf16.mxu0 %v1222_v0  ;;  %795 = vmatprep.subr.bf16.mxu1 %v1222_v0  ;;  %v1082_v0 = vld [vmem:[%s1693_s0 + $0x198] sm:$0x11] }
  0x4d   :  { %v1096_v4 = vcombine.high %v1082_v0, %v1082_v0  ;;  %v1095_v6 = vcombine.low %v1082_v0, %v1082_v0 }
  0x4f   :  { %600 = vmatpush2.bf16.msra.mxu0 %v1331_v12  ;;  %796 = vmatpush2.bf16.msra.mxu1 %v1331_v12 }
  0x51   :  { %263 = vmatmul.mubr.bf16.gmra.mxu0 %v1176_v35  ;;  %446 = vmatmul.mubr.bf16.gmra.mxu1 %v1177_v36 }
  0x52   :  { %1001 = vmatprep.mubr.msk.bf16.mxu0 %vm168_vm0, %v984_v37  ;;  %1035 = vmatprep.mubr.msk.bf16.mxu1 %vm168_vm0, %v1028_v38 }
  0x59   :  { %271 = vmatmul.mubr.bf16.gmra.mxu0 %v983_v39  ;;  %454 = vmatmul.mubr.bf16.gmra.mxu1 %v1027_v40 }
  0x5a   :  { %1063 = vmatprep.mubr.msk.bf16.mxu0 %vm168_vm0, %v1184_v41  ;;  %1097 = vmatprep.mubr.msk.bf16.mxu1 %vm168_vm0, %v1187_v42 }
  0x61   :  { %602 = vmatmul.mubr.bf16.vlgmr.msra.gmra.mxu0 %v1182_v43  ;;  %798 = vmatmul.mubr.bf16.vlgmr.msra.gmra.mxu1 %v1185_v44 }
  0x62   :  { %1064 = vmatprep.mubr.msk.bf16.mxu0 %vm168_vm0, %v1188_v45  ;;  %1098 = vmatprep.mubr.msk.bf16.mxu1 %vm168_vm0, %v1190_v46 }
  0x69   :  { %610 = vmatmul.mubr.bf16.gmra.mxu0 %v1192_v47  ;;  %806 = vmatmul.mubr.bf16.gmra.mxu1 %v1193_v48 }
  0x6a   :  { %1065 = vmatprep.mubr.msk.bf16.mxu0 %vm168_vm0, %v1194_v49  ;;  %1099 = vmatprep.mubr.msk.bf16.mxu1 %vm168_vm0, %v1196_v50 }
  0x71   :  { %618 = vmatmul.mubr.bf16.gmra.mxu0 %v1198_v51  ;;  %814 = vmatmul.mubr.bf16.gmra.mxu1 %v1199_v52 }
  0x72   :  { %1066 = vmatprep.mubr.msk.bf16.mxu0 %vm168_vm0, %v1200_v53  ;;  %1100 = vmatprep.mubr.msk.bf16.mxu1 %vm168_vm0, %v1202_v54 }
  0x79   :  { %626 = vmatmul.mubr.bf16.gmra.mxu0 %v1204_v55  ;;  %822 = vmatmul.mubr.bf16.gmra.mxu1 %v1205_v56 }
  0x7a   :  { %1067 = vmatprep.mubr.msk.bf16.mxu0 %vm168_vm0, %v1206_v57  ;;  %1101 = vmatprep.mubr.msk.bf16.mxu1 %vm168_vm0, %v1208_v58 }
  0x81   :  { %634 = vmatmul.mubr.bf16.gmra.mxu0 %v1210_v59  ;;  %830 = vmatmul.mubr.bf16.gmra.mxu1 %v1211_v60 }
  0x82   :  { %1068 = vmatprep.mubr.msk.bf16.mxu0 %vm168_vm0, %v1212_v61  ;;  %1102 = vmatprep.mubr.msk.bf16.mxu1 %vm168_vm0, %v1214_v62 }
  0x89   :  { %642 = vmatmul.mubr.bf16.gmra.mxu0 %v1216_v1  ;;  %838 = vmatmul.mubr.bf16.gmra.mxu1 %v1217_v2 }
  0x8a   :  { %1069 = vmatprep.mubr.msk.bf16.mxu0 %vm168_vm0, %v1062_v3  ;;  %1103 = vmatprep.mubr.msk.bf16.mxu1 %vm168_vm0, %v1096_v4  ;;  %v1602_v3 = vld [vmem:[%s1694_s2] ss:$0 sm:$0xff] }
  0x91   :  { %650 = vmatmul.mubr.bf16.gmra.mxu0 %v1061_v5  ;;  %846 = vmatmul.mubr.bf16.gmra.mxu1 %v1095_v6 }
  0xe9   :  { %v224_v7 = vpop.f32.mrf.mxu0  ;;  %v407_v8 = vpop.f32.mrf.mxu1 }
  0xea   :  { %v461_v63 = vmax.f32 %v224_v7, %v407_v8 }
  0xeb   :  { %v226_v9 = vpop.f32.mrf.mxu0  ;;  %v409_v10 = vpop.f32.mrf.mxu1 }
  0xed   :  { %v1551_v11 = vpop.f32.mrf.mxu0  ;;  %v1553_v12 = vpop.f32.mrf.mxu1 }
  0xee   :  { %v462_v6 = vmax.f32 %v1551_v11, %v1553_v12 }
  0xef   :  { %v229_v13 = vpop.f32.mrf.mxu0  ;;  %v412_v14 = vpop.f32.mrf.mxu1 }
  0xf1   :  { %v1555_v15 = vpop.f32.mrf.mxu0  ;;  %v1557_v16 = vpop.f32.mrf.mxu1 }
  0xf3   :  { %v234_v17 = vpop.f32.mrf.mxu0  ;;  %v417_v18 = vpop.f32.mrf.mxu1 }
  0xf4   :  { %v463_v18 = vmax.f32 %v1555_v15, %v1557_v16 }
  0xf5   :  { %v1559_v19 = vpop.f32.mrf.mxu0  ;;  %v1561_v20 = vpop.f32.mrf.mxu1 }
  0xf7   :  { %v237_v21 = vpop.f32.mrf.mxu0  ;;  %v420_v22 = vpop.f32.mrf.mxu1 }
  0xf9   :  { %v1563_v23 = vpop.f32.mrf.mxu0  ;;  %v1565_v24 = vpop.f32.mrf.mxu1 }
  0xfb   :  { %v242_v25 = vpop.f32.mrf.mxu0  ;;  %v425_v26 = vpop.f32.mrf.mxu1 }
  0xfd   :  { %v1567_v27 = vpop.f32.mrf.mxu0  ;;  %v1569_v28 = vpop.f32.mrf.mxu1 }
  0xff   :  { %v245_v29 = vpop.f32.mrf.mxu0  ;;  %v428_v30 = vpop.f32.mrf.mxu1 }
 0x101   :  { %v1571_v31 = vpop.f32.mrf.mxu0  ;;  %v1573_v32 = vpop.f32.mrf.mxu1 }
 0x103   :  { %v250_v33 = vpop.f32.mrf.mxu0  ;;  %v433_v34 = vpop.f32.mrf.mxu1 }
 0x104   :  { %v464_v34 = vmax.f32 %v1559_v19, %v1561_v20 }
 0x105   :  { %v1575_v35 = vpop.f32.mrf.mxu0  ;;  %v1577_v36 = vpop.f32.mrf.mxu1 }
 0x107   :  { %v253_v37 = vpop.f32.mrf.mxu0  ;;  %v436_v38 = vpop.f32.mrf.mxu1 }
 0x109   :  { %v1579_v39 = vpop.f32.mrf.mxu0  ;;  %v1581_v40 = vpop.f32.mrf.mxu1 }
 0x10b   :  { %v258_v41 = vpop.f32.mrf.mxu0  ;;  %v441_v42 = vpop.f32.mrf.mxu1 }
 0x10d   :  { %v1583_v43 = vpop.f32.mrf.mxu0  ;;  %v1585_v44 = vpop.f32.mrf.mxu1 }
 0x10f   :  { %v261_v45 = vpop.f32.mrf.mxu0  ;;  %v444_v46 = vpop.f32.mrf.mxu1 }
 0x111   :  { %v1587_v47 = vpop.f32.mrf.mxu0  ;;  %v1589_v48 = vpop.f32.mrf.mxu1 }
 0x113   :  { %v266_v49 = vpop.f32.mrf.mxu0  ;;  %v449_v50 = vpop.f32.mrf.mxu1 }
 0x114   :  { %v465_v50 = vmax.f32 %v1563_v23, %v1565_v24 }
 0x115   :  { %v1591_v51 = vpop.f32.mrf.mxu0  ;;  %v1593_v52 = vpop.f32.mrf.mxu1 }
 0x117   :  { %v269_v53 = vpop.f32.mrf.mxu0  ;;  %v452_v54 = vpop.f32.mrf.mxu1 }
 0x119   :  { %v1595_v55 = vpop.f32.mrf.mxu0  ;;  %v1597_v56 = vpop.f32.mrf.mxu1 }
 0x11b   :  { %v274_v57 = vpop.f32.mrf.mxu0  ;;  %v457_v58 = vpop.f32.mrf.mxu1 }
 0x11d   :  { %v275_v59 = vpop.f32.mrf.mxu0  ;;  %v458_v60 = vpop.f32.mrf.mxu1 }
 0x11f   :  { %v276_v61 = vpop.f32.mrf.mxu0  ;;  %v459_v62 = vpop.f32.mrf.mxu1 }
 0x120   :  { %v466_v62 = vmax.f32 %v1567_v27, %v1569_v28 }
 0x121   :  { %v603_v0 = vpop.f32.mrf.mxu0  ;;  %v799_v1 = vpop.f32.mrf.mxu1 }
 0x122   :  { %v657_v2 = vmax.f32 %v461_v63, %v603_v0 }
 0x123   :  { %v605_v4 = vpop.f32.mrf.mxu0  ;;  %v801_v5 = vpop.f32.mrf.mxu1 }
 0x124   :  { %v853_v9 = vmax.f32 %v657_v2, %v799_v1 }
 0x125   :  { %v606_v10 = vpop.f32.mrf.mxu0  ;;  %v802_v13 = vpop.f32.mrf.mxu1 }
 0x126   :  { %v873_v14 = vadd.f32 %v1602_v3, %v853_v9  ;;  %v658_v17 = vmax.f32 %v462_v6, %v606_v10  ;;  %v467_v9 = vmax.f32 %v1571_v31, %v1573_v32 }
 0x127   :  { %v608_v7 = vpop.f32.mrf.mxu0  ;;  %v804_v8 = vpop.f32.mrf.mxu1 }
 0x128   :  { %v886_v21 = vmax.f32 %v873_v14, 0.0  ;;  %v854_v22 = vmax.f32 %v658_v17, %v802_v13 }
 0x129   :  { %v611_v25 = vpop.f32.mrf.mxu0  ;;  %v807_v26 = vpop.f32.mrf.mxu1 }
 0x12a   :  { %v1118_v29 = vpack.c.bf16 %v886_v21, %v886_v21  ;;  %v874_v30 = vadd.f32 %v1602_v3, %v854_v22  ;;  %v659_v11 = vmax.f32 %v463_v18, %v611_v25  ;;  %v468_v21 = vmax.f32 %v1575_v35, %v1577_v36 }
 0x12b   :  { %v613_v12 = vpop.f32.mrf.mxu0  ;;  %v809_v33 = vpop.f32.mrf.mxu1 }
 0x12c   :  { %953 = vst.msk [vmem:[%s1695_s3] sm:$0xf] %vm952_vm1, %v1118_v29  ;;  %v887_v15 = vmax.f32 %v874_v30, 0.0  ;;  %v855_v16 = vmax.f32 %v659_v11, %v807_v26  ;;  %v469_v33 = vmax.f32 %v1579_v39, %v1581_v40 }
 0x12d   :  { %v614_v37 = vpop.f32.mrf.mxu0  ;;  %v810_v38 = vpop.f32.mrf.mxu1 }
 0x12e   :  { %v1119_v41 = vpack.c.bf16 %v887_v15, %v887_v15  ;;  %v875_v42 = vadd.f32 %v1602_v3, %v855_v16  ;;  %v660_v45 = vmax.f32 %v464_v34, %v614_v37 }
 0x12f   :  { %v616_v46 = vpop.f32.mrf.mxu0  ;;  %v812_v49 = vpop.f32.mrf.mxu1 }
 0x130   :  { %954 = vst.msk [vmem:[%s1695_s3 + $0x4] sm:$0xf] %vm952_vm1, %v1119_v41  ;;  %v888_v19 = vmax.f32 %v875_v42, 0.0  ;;  %v856_v20 = vmax.f32 %v660_v45, %v810_v38  ;;  %v470_v45 = vmax.f32 %v1583_v43, %v1585_v44 }
 0x131   :  { %v619_v53 = vpop.f32.mrf.mxu0  ;;  %v815_v54 = vpop.f32.mrf.mxu1 }
 0x132   :  { %v1120_v57 = vpack.c.bf16 %v888_v19, %v888_v19  ;;  %v876_v58 = vadd.f32 %v1602_v3, %v856_v20  ;;  %v661_v59 = vmax.f32 %v465_v50, %v619_v53 }
 0x133   :  { %v621_v60 = vpop.f32.mrf.mxu0  ;;  %v817_v61 = vpop.f32.mrf.mxu1 }
 0x134   :  { %955 = vst.msk [vmem:[%s1695_s3 + $0x8] sm:$0xf] %vm952_vm1, %v1120_v57  ;;  %v889_v23 = vmax.f32 %v876_v58, 0.0  ;;  %v857_v24 = vmax.f32 %v661_v59, %v815_v54  ;;  %v471_v57 = vmax.f32 %v1587_v47, %v1589_v48 }
 0x135   :  { %v622_v63 = vpop.f32.mrf.mxu0  ;;  %v818_v0 = vpop.f32.mrf.mxu1 }
 0x136   :  { %v1121_v1 = vpack.c.bf16 %v889_v23, %v889_v23  ;;  %v877_v2 = vadd.f32 %v1602_v3, %v857_v24  ;;  %v662_v4 = vmax.f32 %v466_v62, %v622_v63  ;;  %v472_v63 = vmax.f32 %v1591_v51, %v1593_v52 }
 0x137   :  { %v624_v5 = vpop.f32.mrf.mxu0  ;;  %v820_v6 = vpop.f32.mrf.mxu1 }
 0x138   :  { %956 = vst.msk [vmem:[%s1695_s3 + $0xc] sm:$0xf] %vm952_vm1, %v1121_v1  ;;  %v890_v27 = vmax.f32 %v877_v2, 0.0  ;;  %v858_v28 = vmax.f32 %v662_v4, %v818_v0 }
 0x139   :  { %v627_v10 = vpop.f32.mrf.mxu0  ;;  %v823_v13 = vpop.f32.mrf.mxu1 }
 0x13a   :  { %v1122_v14 = vpack.c.bf16 %v890_v27, %v890_v27  ;;  %v878_v17 = vadd.f32 %v1602_v3, %v858_v28  ;;  %v663_v7 = vmax.f32 %v467_v9, %v627_v10  ;;  %v473_v27 = vmax.f32 %v1595_v55, %v1597_v56 }
 0x13b   :  { %v629_v8 = vpop.f32.mrf.mxu0  ;;  %v825_v18 = vpop.f32.mrf.mxu1 }
 0x13c   :  { %957 = vst.msk [vmem:[%s1695_s3 + $0x10] sm:$0xf] %vm952_vm1, %v1122_v14  ;;  %v891_v31 = vmax.f32 %v878_v17, 0.0  ;;  %v859_v32 = vmax.f32 %v663_v7, %v823_v13 }
 0x13d   :  { %v630_v22 = vpop.f32.mrf.mxu0  ;;  %v826_v25 = vpop.f32.mrf.mxu1 }
 0x13e   :  { %v1123_v26 = vpack.c.bf16 %v891_v31, %v891_v31  ;;  %v879_v29 = vadd.f32 %v1602_v3, %v859_v32  ;;  %v664_v30 = vmax.f32 %v468_v21, %v630_v22 }
 0x13f   :  { %v632_v11 = vpop.f32.mrf.mxu0  ;;  %v828_v12 = vpop.f32.mrf.mxu1 }
 0x140   :  { %958 = vst.msk [vmem:[%s1695_s3 + $0x14] sm:$0xf] %vm952_vm1, %v1123_v26  ;;  %v892_v35 = vmax.f32 %v879_v29, 0.0  ;;  %v860_v36 = vmax.f32 %v664_v30, %v826_v25 }
 0x141   :  { %v635_v34 = vpop.f32.mrf.mxu0  ;;  %v831_v15 = vpop.f32.mrf.mxu1 }
 0x142   :  { %v1124_v16 = vpack.c.bf16 %v892_v35, %v892_v35  ;;  %v880_v37 = vadd.f32 %v1602_v3, %v860_v36  ;;  %v665_v38 = vmax.f32 %v469_v33, %v635_v34 }
 0x143   :  { %v637_v41 = vpop.f32.mrf.mxu0  ;;  %v833_v42 = vpop.f32.mrf.mxu1 }
 0x144   :  { %959 = vst.msk [vmem:[%s1695_s3 + $0x18] sm:$0xf] %vm952_vm1, %v1124_v16  ;;  %v893_v39 = vmax.f32 %v880_v37, 0.0  ;;  %v861_v40 = vmax.f32 %v665_v38, %v831_v15 }
 0x145   :  { %v638_v46 = vpop.f32.mrf.mxu0  ;;  %v834_v49 = vpop.f32.mrf.mxu1 }
 0x146   :  { %v1125_v50 = vpack.c.bf16 %v893_v39, %v893_v39  ;;  %v881_v19 = vadd.f32 %v1602_v3, %v861_v40  ;;  %v666_v20 = vmax.f32 %v470_v45, %v638_v46 }
 0x147   :  { %v640_v53 = vpop.f32.mrf.mxu0  ;;  %v836_v54 = vpop.f32.mrf.mxu1 }
 0x148   :  { %960 = vst.msk [vmem:[%s1695_s3 + $0x1c] sm:$0xf] %vm952_vm1, %v1125_v50  ;;  %v894_v43 = vmax.f32 %v881_v19, 0.0  ;;  %v862_v44 = vmax.f32 %v666_v20, %v834_v49 }
 0x149   :  { %v643_v58 = vpop.f32.mrf.mxu0  ;;  %v839_v59 = vpop.f32.mrf.mxu1 }
 0x14a   :  { %v1126_v60 = vpack.c.bf16 %v894_v43, %v894_v43  ;;  %v882_v61 = vadd.f32 %v1602_v3, %v862_v44  ;;  %v667_v62 = vmax.f32 %v471_v57, %v643_v58 }
 0x14b   :  { %v645_v23 = vpop.f32.mrf.mxu0  ;;  %v841_v24 = vpop.f32.mrf.mxu1 }
 0x14c   :  { %961 = vst.msk [vmem:[%s1695_s3 + $0x20] sm:$0xf] %vm952_vm1, %v1126_v60  ;;  %v895_v47 = vmax.f32 %v882_v61, 0.0  ;;  %v863_v48 = vmax.f32 %v667_v62, %v839_v59 }
 0x14d   :  { %v646_v0 = vpop.f32.mrf.mxu0  ;;  %v842_v1 = vpop.f32.mrf.mxu1 }
 0x14e   :  { %v1127_v2 = vpack.c.bf16 %v895_v47, %v895_v47  ;;  %v883_v4 = vadd.f32 %v1602_v3, %v863_v48  ;;  %v668_v5 = vmax.f32 %v472_v63, %v646_v0 }
 0x14f   :  { %v648_v6 = vpop.f32.mrf.mxu0  ;;  %v844_v9 = vpop.f32.mrf.mxu1 }
 0x150   :  { %962 = vst.msk [vmem:[%s1695_s3 + $0x24] sm:$0xf] %vm952_vm1, %v1127_v2  ;;  %v896_v51 = vmax.f32 %v883_v4, 0.0  ;;  %v864_v52 = vmax.f32 %v668_v5, %v842_v1 }
 0x151   :  { %v651_v28 = vpop.f32.mrf.mxu0  ;;  %v847_v10 = vpop.f32.mrf.mxu1 }
 0x152   :  { %v1128_v13 = vpack.c.bf16 %v896_v51, %v896_v51  ;;  %v884_v14 = vadd.f32 %v1602_v3, %v864_v52  ;;  %v669_v17 = vmax.f32 %v473_v27, %v651_v28 }
 0x153   :  { %v653_v7 = vpop.f32.mrf.mxu0  ;;  %v849_v8 = vpop.f32.mrf.mxu1 }
 0x154   :  { %963 = vst.msk [vmem:[%s1695_s3 + $0x28] sm:$0xf] %vm952_vm1, %v1128_v13  ;;  %v897_v55 = vmax.f32 %v884_v14, 0.0  ;;  %v865_v56 = vmax.f32 %v669_v17, %v847_v10 }
 0x155   :  { %v654_v18 = vpop.f32.mrf.mxu0  ;;  %v850_v21 = vpop.f32.mrf.mxu1 }
 0x156   :  { %v1129_v31 = vpack.c.bf16 %v897_v55, %v897_v55  ;;  %v885_v32 = vadd.f32 %v1602_v3, %v865_v56 }
 0x157   :  { %v655_v22 = vpop.f32.mrf.mxu0  ;;  %v851_v25 = vpop.f32.mrf.mxu1 }
 0x158   :  { %964 = vst.msk [vmem:[%s1695_s3 + $0x2c] sm:$0xf] %vm952_vm1, %v1129_v31  ;;  %v898_v26 = vmax.f32 %v885_v32, 0.0 }
 0x15a   :  { %v1130_v29 = vpack.c.bf16 %v898_v26, %v898_v26 }
 0x15c   :  { %966 = vst.msk [vmem:[%s1695_s3 + $0x30] sm:$0x1] %vm965_vm2, %v1130_v29 }

// kernel: net_forward.5
= control target key start
LH: loop header
LB: loop body
LE: loop exit
PB: predicated region body
PF: predicated region fallthrough
CT: control target
= control target key end

     0   :  { %v137_v29 = vlaneseq  ;;  %v1118_v33 = vmov 1966171168   ;;  %s1387_s0 = inlined_call_operand.vmem [shape: bf16[2,768], index: 0, kind: input, shape index: {}]   ;;  %s1388_s1 = inlined_call_operand.vmem [shape: bf16[768,128], index: 1, kind: input, shape index: {}]   ;;  %s1389_s2 = inlined_call_operand.vmem [shape: f32[1,128], index: 2, kind: input, shape index: {}]   ;;  %s1390_s3 = inlined_call_operand.vmem [shape: bf16[128,128], index: 3, kind: input, shape index: {}]   ;;  %s1391_s4 = inlined_call_operand.vmem [shape: f32[1,128], index: 4, kind: input, shape index: {}]   ;;  %s1392_s5 = inlined_call_operand.vmem [shape: bf16[128,10], index: 5, kind: input, shape index: {}]   ;;  %s1393_s6 = inlined_call_operand.vmem [shape: f32[1,10], index: 6, kind: input, shape index: {}]   ;;  %s1394_s7 = inlined_call_operand.hbm [shape: f32[2,10], index: 7, kind: output, shape index: {}]  }
   0x1   :  { %v1031_v0 = vld [vmem:[%s1388_s1 + $0x78] sm:$0xff]   ;;  %v1035_v4 = vld [vmem:[%s1388_s1 + $0x70] sm:$0xff]   ;;  %v1039_v8 = vld [vmem:[%s1388_s1 + $0x68] sm:$0xff]   ;;  %v135_v34 = vunpack.c.l.s4 %v1118_v33 }
   0x2   :  { %v1032_v1 = vld [vmem:[%s1388_s1 + $0x38] sm:$0xff]   ;;  %903 = vmatprep.subr.bf16.mxu0 %v1031_v0  ;;  %v1036_v5 = vld [vmem:[%s1388_s1 + $0x30] sm:$0xff]   ;;  %v1040_v9 = vld [vmem:[%s1388_s1 + $0x28] sm:$0xff]   ;;  %v138_v35 = vshrl.u32 %v137_v29, 7 }
   0x3   :  { %v1033_v2 = vld [vmem:[%s1388_s1 + $0xf8] sm:$0xff]   ;;  %904 = vmatpush3.bf16.msra.mxu0 %v1032_v1  ;;  %v1037_v6 = vld [vmem:[%s1388_s1 + $0xf0] sm:$0xff]   ;;  %v1041_v10 = vld [vmem:[%s1388_s1 + $0xe8] sm:$0xff]   ;;  %v136_v39 = vunpack.c.0.s8 %v135_v34 }
   0x4   :  { %v1034_v3 = vld [vmem:[%s1388_s1 + $0xb8] sm:$0xff]   ;;  %925 = vmatprep.subr.bf16.mxu1 %v1033_v2  ;;  %905 = vmatprep.subr.bf16.mxu0 %v1035_v4  ;;  %v1038_v7 = vld [vmem:[%s1388_s1 + $0xb0] sm:$0xff]   ;;  %v1042_v11 = vld [vmem:[%s1388_s1 + $0xa8] sm:$0xff]  }
   0x5   :  { %926 = vmatpush3.bf16.msra.mxu1 %v1034_v3  ;;  %v1043_v12 = vld [vmem:[%s1388_s1 + $0x60] sm:$0xff]   ;;  %v1047_v16 = vld [vmem:[%s1388_s1 + $0x58] sm:$0xff]   ;;  %v1051_v20 = vld [vmem:[%s1388_s1 + $0x50] sm:$0xff]   ;;  %v139_v40 = vsub.s32 %v136_v39, %v138_v35 }
   0x6   :  { %927 = vmatprep.subr.bf16.mxu1 %v1037_v6  ;;  %v1044_v13 = vld [vmem:[%s1388_s1 + $0x20] sm:$0xff]   ;;  %v1048_v17 = vld [vmem:[%s1388_s1 + $0x18] sm:$0xff]   ;;  %v1052_v21 = vld [vmem:[%s1388_s1 + $0x10] sm:$0xff]  }
   0x7   :  { %906 = vmatpush3.bf16.msra.mxu0 %v1036_v5  ;;  %v1045_v14 = vld [vmem:[%s1388_s1 + $0xe0] sm:$0xff]   ;;  %v1049_v18 = vld [vmem:[%s1388_s1 + $0xd8] sm:$0xff]   ;;  %v1053_v22 = vld [vmem:[%s1388_s1 + $0xd0] sm:$0xff]  }
   0x8   :  { %907 = vmatprep.subr.bf16.mxu0 %v1039_v8  ;;  %v1046_v15 = vld [vmem:[%s1388_s1 + $0xa0] sm:$0xff]   ;;  %v1050_v19 = vld [vmem:[%s1388_s1 + $0x98] sm:$0xff]   ;;  %v1054_v23 = vld [vmem:[%s1388_s1 + $0x90] sm:$0xff]  }
   0x9   :  { %928 = vmatpush3.bf16.msra.mxu1 %v1038_v7  ;;  %v1055_v24 = vld [vmem:[%s1388_s1 + $0x48] sm:$0xff]   ;;  %v1059_v28 = vld [vmem:[%s1388_s1 + $0x40] sm:$0xff]   ;;  %v1064_v37 = vld [vmem:[%s1388_s1 + $0x178] sm:$0xff]  }
   0xa   :  { %929 = vmatprep.subr.bf16.mxu1 %v1041_v10  ;;  %v1056_v25 = vld [vmem:[%s1388_s1 + $0x8] sm:$0xff]   ;;  %v1060_v30 = vld [vmem:[%s1388_s1] sm:$0xff]   ;;  %v1065_v47 = vld [vmem:[%s1388_s1 + $0x138] sm:$0xff]  }
   0xb   :  { %908 = vmatpush3.bf16.msra.mxu0 %v1040_v9  ;;  %v1057_v26 = vld [vmem:[%s1388_s1 + $0xc8] sm:$0xff]   ;;  %v1061_v31 = vld [vmem:[%s1388_s1 + $0xc0] sm:$0xff]   ;;  %v1066_v49 = vld [vmem:[%s1388_s1 + $0x170] sm:$0xff]  }
   0xc   :  { %909 = vmatprep.subr.bf16.mxu0 %v1043_v12  ;;  %v1058_v27 = vld [vmem:[%s1388_s1 + $0x88] sm:$0xff]   ;;  %v28_v32 = vld [vmem:[%s1387_s0] sm:$0x3f]  ;;  %v1067_v52 = vld [vmem:[%s1388_s1 + $0x130] sm:$0xff]  }
   0xd   :  { %930 = vmatpush3.bf16.msra.mxu1 %v1042_v11  ;;  %v1063_v36 = vld [vmem:[%s1388_s1 + $0x80] sm:$0xff]   ;;  %v133_v38 = vcombine.high %v28_v32, %v28_v32  ;;  %v140_v41 = vrot.slane %v28_v32, %v139_v40  ;;  %v1068_v53 = vld [vmem:[%s1388_s1 + $0x168] sm:$0xff]   ;;  %v1072_v57 = vld [vmem:[%s1388_s1 + $0x158] sm:$0xff]  }
   0xe   :  { %931 = vmatprep.subr.bf16.mxu1 %v1045_v14  ;;  %v1069_v54 = vld [vmem:[%s1388_s1 + $0x128] sm:$0xff]   ;;  %v1070_v55 = vld [vmem:[%s1388_s1 + $0x160] sm:$0xff]   ;;  %v1073_v58 = vld [vmem:[%s1388_s1 + $0x118] sm:$0xff]  }
   0xf   :  { %910 = vmatpush3.bf16.msra.mxu0 %v1044_v13  ;;  %v147_v42 = vrot.slane %v133_v38, %v139_v40  ;;  %v148_v43 = vcombine.high %v140_v41, %v140_v41  ;;  %v156_v44 = vrot.slane %v140_v41, %v139_v40  ;;  %v1071_v56 = vld [vmem:[%s1388_s1 + $0x120] sm:$0xff]   ;;  %v1074_v59 = vld [vmem:[%s1388_s1 + $0x150] sm:$0xff]  }
  0x10   :  { %911 = vmatprep.subr.bf16.mxu0 %v1047_v16 }
  0x11   :  { %932 = vmatpush3.bf16.msra.mxu1 %v1046_v15  ;;  %v149_v45 = vcombine.high %v147_v42, %v147_v42  ;;  %v170_v46 = vrot.slane %v148_v43, %v139_v40  ;;  %v178_v48 = vcombine.high %v156_v44, %v156_v44 }
  0x12   :  { %933 = vmatprep.subr.bf16.mxu1 %v1049_v18 }
  0x13   :  { %912 = vmatpush3.bf16.msra.mxu0 %v1048_v17  ;;  %506 = vmatprep.mubr.bf16.mxu0 %v170_v46  ;;  %v179_v50 = vcombine.high %v170_v46, %v170_v46  ;;  %v177_v51 = vrot.slane %v149_v45, %v139_v40 }
  0x14   :  { %913 = vmatprep.subr.bf16.mxu0 %v1051_v20 }
  0x15   :  { %934 = vmatpush3.bf16.msra.mxu1 %v1050_v19  ;;  %546 = vmatprep.mubr.bf16.mxu1 %v179_v50 }
  0x16   :  { %935 = vmatprep.subr.bf16.mxu1 %v1053_v22 }
  0x17   :  { %914 = vmatpush3.bf16.msra.mxu0 %v1052_v21 }
  0x18   :  { %915 = vmatprep.subr.bf16.mxu0 %v1055_v24 }
  0x19   :  { %936 = vmatpush3.bf16.msra.mxu1 %v1054_v23 }
  0x1a   :  { %937 = vmatprep.subr.bf16.mxu1 %v1057_v26 }
  0x1b   :  { %916 = vmatpush3.bf16.msra.mxu0 %v1056_v25 }
  0x1c   :  { %917 = vmatprep.subr.bf16.mxu0 %v1059_v28 }
  0x1d   :  { %938 = vmatpush3.bf16.msra.mxu1 %v1058_v27 }
  0x1e   :  { %939 = vmatprep.subr.bf16.mxu1 %v1061_v31 }
  0x1f   :  { %918 = vmatpush3.bf16.msra.mxu0 %v1060_v30 }
  0x20   :  { %947 = vmatprep.subr.bf16.mxu0 %v1064_v37 }
  0x21   :  { %940 = vmatpush3.bf16.msra.mxu1 %v1063_v36 }
  0x22   :  { %507 = vmatmul.mubr.bf16.vlgmr.msra.gmra.mxu0 %v156_v44 }
  0x23   :  { %948 = vmatpush3.bf16.msra.mxu0 %v1065_v47  ;;  %586 = vmatprep.mubr.bf16.mxu0 %v177_v51 }
  0x24   :  { %547 = vmatmul.mubr.bf16.vlgmr.msra.gmra.mxu1 %v178_v48  ;;  %949 = vmatprep.subr.bf16.mxu0 %v1066_v49 }
  0x27   :  { %950 = vmatpush3.bf16.msra.mxu0 %v1067_v52 }
  0x28   :  { %951 = vmatprep.subr.bf16.mxu0 %v1068_v53 }
  0x2b   :  { %952 = vmatpush3.bf16.msra.mxu0 %v1069_v54 }
  0x2c   :  { %953 = vmatprep.subr.bf16.mxu0 %v1070_v55 }
  0x2f   :  { %954 = vmatpush3.bf16.msra.mxu0 %v1071_v56 }
  0x30   :  { %955 = vmatprep.subr.bf16.mxu0 %v1072_v57 }
  0x31   :  { %12 = vsyncpa [#allocation3], 0  ;;  %v1075_v60 = vld [vmem:[%s1388_s1 + $0x110] sm:$0xff]   ;;  %v1076_v61 = vld [vmem:[%s1388_s1 + $0x148] sm:$0xff]   ;;  %v163_v1 = vrot.slane %v147_v42, %v139_v40  ;;  %v1119_v3 = vmov 0.0   ;;  %vm1120_vm0 = vmmov 0  }
  0x32   :  { %v1077_v62 = vld [vmem:[%s1388_s1 + $0x108] sm:$0xff]   ;;  %v1078_v63 = vld [vmem:[%s1388_s1 + $0x140] sm:$0xff]   ;;  %v1080_v2 = vld [vmem:[%s1390_s3 + $0x38] sm:$0xff]   ;;  %987 = vmatprep.subr.bf16.mxu1 %v1119_v3  ;;  %1003 = vmatprep.mubr.msk.bf16.mxu1 %vm1120_vm0, %v1119_v3  ;;  %s1121_s15 = smov [#allocation2]   ;;  %vm820_vm1 = vcmask 74752  }
  0x33   :  { %956 = vmatpush3.bf16.msra.mxu0 %v1073_v58  ;;  %v1079_v0 = vld [vmem:[%s1388_s1 + $0x100] sm:$0xff]   ;;  %988 = vmatpush3.bf16.msra.mxu1 %v1080_v2  ;;  %v1081_v4 = vld [vmem:[%s1390_s3 + $0x30] sm:$0xff]   ;;  %v1082_v5 = vld [vmem:[%s1390_s3 + $0x28] sm:$0xff]   ;;  %s828_s16 = sshll.u32 %s1121_s15, 4  ;;  %s829_s16 = int_to_ptr.vmem [resolvable:$true] %s828_s16 }
  0x34   :  { %957 = vmatprep.subr.bf16.mxu0 %v1074_v59  ;;  %989 = vmatprep.subr.bf16.mxu1 %v1119_v3  ;;  %v1083_v6 = vld [vmem:[%s1390_s3 + $0x20] sm:$0xff]   ;;  %v1084_v7 = vld [vmem:[%s1390_s3 + $0x18] sm:$0xff]   ;;  %v1085_v8 = vld [vmem:[%s1390_s3 + $0x10] sm:$0xff]   ;;  %p1101_p1 = scmp.lt.s32.totalorder %s829_s16, %s829_s16 }
  0x35   :  { %v1086_v9 = vld [vmem:[%s1390_s3 + $0x8] sm:$0xff]   ;;  %v1087_v10 = vld [vmem:[%s1390_s3] sm:$0xff]   ;;  %v1088_v11 = vld [vmem:[%s1392_s5 + $0x38] sm:$0xff]  }
  0x36   :  { %v1089_v12 = vld [vmem:[%s1392_s5 + $0x30] sm:$0xff]   ;;  %v1090_v13 = vld [vmem:[%s1392_s5 + $0x28] sm:$0xff]   ;;  %v1091_v14 = vld [vmem:[%s1392_s5 + $0x20] sm:$0xff]  }
  0x37   :  { %958 = vmatpush3.bf16.msra.mxu0 %v1075_v60  ;;  %990 = vmatpush3.bf16.msra.mxu1 %v1081_v4  ;;  %v1092_v15 = vld [vmem:[%s1392_s5 + $0x18] sm:$0xff]   ;;  %v1093_v16 = vld [vmem:[%s1392_s5 + $0x10] sm:$0xff]   ;;  %v836_v26 = vld [vmem:[%s1389_s2] ss:$0 sm:$0xff] }
  0x38   :  { %959 = vmatprep.subr.bf16.mxu0 %v1076_v61  ;;  %991 = vmatprep.subr.bf16.mxu1 %v1119_v3  ;;  %v1094_v38 = vld [vmem:[%s1392_s5 + $0x8] sm:$0xff]   ;;  %v1095_v39 = vld [vmem:[%s1392_s5] sm:$0xff]  }
  0x39   :  { %v885_v40 = vld [vmem:[%s1391_s4] ss:$0 sm:$0xff]  ;;  %s1096_s4 = scalar_lea.vmem %s829_s16, 32 }
  0x3a   :  { %v894_v48 = vld [vmem:[%s1393_s6] ss:$0 sm:$0xff]  ;;  %p1097_p0 = scmp.ne.s32.totalorder %s829_s16, %s1096_s4  ;;  %p1102_p2 = scmp.lt.s32.totalorder %s1096_s4, %s1096_s4 }
  0x3b   :  { %960 = vmatpush3.bf16.msra.mxu0 %v1077_v62  ;;  %992 = vmatpush3.bf16.msra.mxu1 %v1082_v5 }
  0x3c   :  { %961 = vmatprep.subr.bf16.mxu0 %v1078_v63  ;;  %993 = vmatprep.subr.bf16.mxu1 %v1119_v3  ;;  %p1103_p3 = por %p1102_p2, %p1101_p1 }
  0x3e   :  { %p1104_p4 = pnand %p1103_p3, %p1097_p0 }
  0x3f   :  { %962 = vmatpush3.bf16.msra.mxu0 %v1079_v0  ;;  %994 = vmatpush3.bf16.msra.mxu1 %v1083_v6 }
  0x40   :  { %1007 = vmatprep.subr.bf16.mxu0 %v1119_v3  ;;  %995 = vmatprep.subr.bf16.mxu1 %v1119_v3 }
  0x42   :  { %587 = vmatmul.mubr.bf16.vlgmr.msra.gmra.mxu0 %v163_v1 }
  0x43   :  { %996 = vmatpush3.bf16.msra.mxu1 %v1084_v7  ;;  %1023 = vmatprep.mubr.msk.bf16.mxu0 %vm1120_vm0, %v1119_v3 }
  0x44   :  { %997 = vmatprep.subr.bf16.mxu1 %v1119_v3  ;;  %1008 = vmatpush3.bf16.msra.mxu0 %v1088_v11 }
  0x45   :  { %1009 = vmatprep.subr.bf16.mxu0 %v1119_v3 }
  0x47   :  { %998 = vmatpush3.bf16.msra.mxu1 %v1085_v8 }
  0x48   :  { %999 = vmatprep.subr.bf16.mxu1 %v1119_v3  ;;  %1010 = vmatpush3.bf16.msra.mxu0 %v1089_v12 }
  0x49   :  { %1011 = vmatprep.subr.bf16.mxu0 %v1119_v3 }
  0x4b   :  { %1000 = vmatpush3.bf16.msra.mxu1 %v1086_v9 }
  0x4c   :  { %1001 = vmatprep.subr.bf16.mxu1 %v1119_v3  ;;  %1012 = vmatpush3.bf16.msra.mxu0 %v1090_v13 }
  0x4d   :  { %1013 = vmatprep.subr.bf16.mxu0 %v1119_v3 }
  0x4f   :  { %1002 = vmatpush3.bf16.msra.mxu1 %v1087_v10 }
  0x50   :  { %1014 = vmatpush3.bf16.msra.mxu0 %v1091_v14 }
  0x51   :  { %1015 = vmatprep.subr.bf16.mxu0 %v1119_v3 }
  0x54   :  { %1016 = vmatpush3.bf16.msra.mxu0 %v1092_v15 }
  0x55   :  { %1017 = vmatprep.subr.bf16.mxu0 %v1119_v3 }
  0x58   :  { %1018 = vmatpush3.bf16.msra.mxu0 %v1093_v16 }
  0x59   :  { %1019 = vmatprep.subr.bf16.mxu0 %v1119_v3 }
  0x5c   :  { %1020 = vmatpush3.bf16.msra.mxu0 %v1094_v38 }
  0x5d   :  { %1021 = vmatprep.subr.bf16.mxu0 %v1119_v3 }
  0x60   :  { %1022 = vmatpush3.bf16.msra.mxu0 %v1095_v39 }
  0xe2   :  { %v919_v17 = vpop.f32.mrf.mxu0 }
  0xe4   :  { %v920_v18 = vpop.f32.mrf.mxu0  ;;  %v941_v19 = vpop.f32.mrf.mxu1 }
  0xe5   :  { %v921_v25 = vadd.f32 %v920_v18, %v919_v17 }
  0xe6   :  { %v922_v20 = vpop.f32.mrf.mxu0  ;;  %v942_v21 = vpop.f32.mrf.mxu1 }
  0xe7   :  { %v509_v27 = vadd.f32 %v921_v25, %v836_v26  ;;  %v943_v28 = vadd.f32 %v942_v21, %v941_v19 }
  0xe8   :  { %v923_v22 = vpop.f32.mrf.mxu0  ;;  %v944_v23 = vpop.f32.mrf.mxu1 }
  0xe9   :  { %v549_v31 = vadd.f32 %v943_v28, %v509_v27 }
  0xea   :  { %v945_v24 = vpop.f32.mrf.mxu1 }
 0x102   :  { %v963_v29 = vpop.f32.mrf.mxu0 }
 0x104   :  { %v964_v30 = vpop.f32.mrf.mxu0 }
 0x105   :  { %v965_v32 = vadd.f32 %v964_v30, %v963_v29 }
 0x106   :  { %v966_v33 = vpop.f32.mrf.mxu0 }
 0x107   :  { %v589_v34 = vadd.f32 %v965_v32, %v549_v31 }
 0x108   :  { %v967_v35 = vpop.f32.mrf.mxu0 }
 0x109   :  { %v594_v36 = vmax.f32 %v589_v34, 0.0 }
 0x10b   :  { %v595_v37 = vpack.c.bf16 %v594_v36, %v594_v36 }
 0x10d   :  { %1004 = vmatmul.mubr.bf16.vlgmr.msra.gmra.mxu1 %v595_v37 }
 0x1cd   :  { %v701_v41 = vpop.f32.mrf.mxu1 }
 0x1ce   :  { %v702_v42 = vadd.f32 %v885_v40, %v701_v41 }
 0x1cf   :  { %v1005_v43 = vpop.f32.mrf.mxu1 }
 0x1d0   :  { %v707_v44 = vmax.f32 %v702_v42, 0.0 }
 0x1d1   :  { %v704_v45 = vpop.f32.mrf.mxu1 }
 0x1d2   :  { %v708_v46 = vpack.c.bf16 %v707_v44, %v707_v44 }
 0x1d3   :  { %v1006_v47 = vpop.f32.mrf.mxu1 }
 0x1d4   :  { %1024 = vmatmul.mubr.bf16.vlgmr.msra.gmra.mxu0 %v708_v46 }
 0x294   :  { %v814_v49 = vpop.f32.mrf.mxu0 }
 0x295   :  { %v815_v50 = vadd.f32 %v894_v48, %v814_v49 }
 0x296   :  { %v1025_v51 = vpop.f32.mrf.mxu0 }
 0x297   :  { %821 = vst.msk [vmem:[#allocation2] sm:$0x3] %vm820_vm1, %v815_v50 }
 0x298   :  { %v817_v52 = vpop.f32.mrf.mxu0 }
 0x299   :  { %1107 = shalt.err (!%p1104_p4)
}
 0x29a   :  { %831 = dma.vmem_to_hbm [thread:$0]  %s829_s16, 32, %s1394_s7, [#allocation3]   ;;  %v1026_v53 = vpop.f32.mrf.mxu0 }
 0x29b   :  { %1116 = dma.done.wait [#allocation3], 32  }
 0x29c   :  { %1117 = vsyncadd [#allocation3], 4294967264 }
 0x29d   :  { %835 = vsyncpa [#allocation3], 1 }

</bundles_post_ra>
